<compile_context>
chip_gen: v6e
topology: v6e:2x2x1
jax: 0.10.0
libtpu: 0.0.40
codegen_flags: <defaults>
</compile_context>

<pallas_src>
import jax
import jax.numpy as jnp
from jax import lax
from jax.experimental import pallas as pl
from jax.experimental.pallas import tpu as pltpu

corpus = ('Deep learning is a subfield of artificial intelligence that focuses on '
          'learning data representations and feature learning methods. It aims to '
          'build models that can simulate high-level abstractions in data by using '
          'deep architectures with multiple nonlinear transformations. Deep learning '
          'techniques have achieved remarkable success in various tasks such as image '
          'recognition, speech recognition, natural language processing, and more.')
vocab = sorted(set(corpus.split()))
vocab_size = len(vocab)

HIDDEN = 128
INPUT_SIZE = 1
NUM_LAYERS = 2
OUTPUT_SIZE = vocab_size
VOCAB_PAD = ((OUTPUT_SIZE + 127) // 128) * 128   # lane-dense head output


# ---------------------------------------------------------------------------
# Fused Pallas kernel: LSTM layer 0 + LSTM layer 1 (skewed interleave) -> FC head
# ---------------------------------------------------------------------------
def _fused_lstm_fc_kernel(x_ref, wih0_ref, whh0_ref, b0_ref,
                          w1_ref, b1_ref, fcw_ref, fcb_ref,
                          h0_ref, c0_ref,
                          out_ref, hn_ref, cn_ref,
                          y1_ref, gx_ref):
    """Shapes:
      x_ref:   (T, Bp, 1) f32     wih0_ref: (1, 4H) f32    whh0_ref: (H, 4H) bf16
      w1_ref:  (2H, 4H) bf16 (stacked [wih1; whh1])         b*_ref:   (1, 4H) f32
      fcw_ref: (H, VPAD) bf16     fcb_ref:  (1, VPAD) f32
      h0/c0:   (2, Bp, H) f32     out_ref:  (T, Bp, VPAD) f32
      hn/cn:   (2, Bp, H) f32     y1_ref:   (T, Bp, H) f32 scratch (layer-1 outputs)
      gx_ref:  (T, Bp, 4H) f32 scratch (layer-0 precomputed input gates)
    """
    T, Bp, _ = x_ref.shape
    H = whh0_ref.shape[0]

    # ---- Layer 0 input projection for the whole sequence. Din == 1, so this is a
    # VPU broadcast multiply (no degenerate K=1 MXU matmul); bias folded in once.
    # (x kept in its (T, Bp, 1) layout: negligible at T*Bp = 64 scalars.)
    gx_ref[...] = x_ref[...] * wih0_ref[...] + b0_ref[...]          # (T, Bp, 4H)

    whh0 = whh0_ref[...]                                            # (H, 4H) bf16
    w1 = w1_ref[...]                                                # (2H, 4H) bf16
    b1 = jnp.broadcast_to(b1_ref[...], (Bp, 4 * H))                 # hoisted out of loop

    def gates_to_hc(g, c):
        # Gate elementwise math stays f32 (v5e VPU/EUP have no bf16 path).
        i = jax.nn.sigmoid(g[:, 0:H])
        f = jax.nn.sigmoid(g[:, H:2 * H])
        gg = jnp.tanh(g[:, 2 * H:3 * H])
        o = jax.nn.sigmoid(g[:, 3 * H:4 * H])
        c_new = f * c + i * gg
        h_new = o * jnp.tanh(c_new)
        return h_new, c_new

    def step_l0(t, h, c):
        g = gx_ref[t] + jnp.dot(h.astype(jnp.bfloat16), whh0,
                                preferred_element_type=jnp.float32)
        return gates_to_hc(g, c)

    def step_l1(t, y_in, h, c):
        # Fused input + recurrent projection: [y0_t, h1_{t-1}] @ [wih1; whh1].
        xin = jnp.concatenate([y_in, h], axis=-1).astype(jnp.bfloat16)   # (Bp, 2H)
        g = jnp.dot(xin, w1, preferred_element_type=jnp.float32) + b1
        h_new, c_new = gates_to_hc(g, c)
        y1_ref[t] = h_new
        return h_new, c_new

    # ---- Skewed wavefront over the two layers.
    h0, c0 = step_l0(0, h0_ref[0], c0_ref[0])                       # prologue (layer 0, t=0)
    h1, c1 = h0_ref[1], c0_ref[1]
    y_prev = h0

    def body(t, carry):
        h0, c0, h1, c1, y_prev = carry
        h0n, c0n = step_l0(t, h0, c0)                                # layer 0, step t
        h1n, c1n = step_l1(t - 1, y_prev, h1, c1)                    # layer 1, step t-1
        return (h0n, c0n, h1n, c1n, h0n)

    h0, c0, h1, c1, y_prev = lax.fori_loop(1, T, body,
                                           (h0, c0, h1, c1, y_prev),
                                           unroll=True)
    h1, c1 = step_l1(T - 1, y_prev, h1, c1)                          # epilogue (layer 1, t=T-1)

    hn_ref[0] = h0
    cn_ref[0] = c0
    hn_ref[1] = h1
    cn_ref[1] = c1

    # ---- FC head on the full (T*Bp, H) slab; VOCAB_PAD lanes -> unmasked stores.
    acts = y1_ref[...].reshape(T * Bp, H).astype(jnp.bfloat16)
    logits = jnp.dot(acts, fcw_ref[...],
                     preferred_element_type=jnp.float32) + fcb_ref[...]
    out_ref[...] = logits.reshape(T, Bp, out_ref.shape[-1])


_VMEM = pl.BlockSpec(memory_space=pltpu.MemorySpace.VMEM)


def _vmem_limit_bytes(T, Bp):
    """Honest scoped-VMEM request computed from actual buffer sizes."""
    f32, bf16 = 4, 2
    buf = (T * Bp * 1 * f32                       # x
           + T * Bp * 4 * HIDDEN * f32            # gx scratch
           + T * Bp * HIDDEN * f32                # y1 scratch
           + T * Bp * VOCAB_PAD * f32             # out
           + 4 * NUM_LAYERS * Bp * HIDDEN * f32   # h0, c0, hn, cn
           + HIDDEN * 4 * HIDDEN * bf16           # whh0
           + 2 * HIDDEN * 4 * HIDDEN * bf16       # stacked W1
           + HIDDEN * VOCAB_PAD * bf16            # fcw
           + 3 * 4 * HIDDEN * f32                 # wih0, b0, b1
           + VOCAB_PAD * f32)                     # fcb
    # 2x headroom for compiler temporaries / layout padding; 8 MiB floor, 64 MiB
    # ceiling so the request stays valid on v7x's smaller physical VMEM.
    return int(min(max(2 * buf, 8 * 1024 * 1024), 64 * 1024 * 1024))


# ---------------------------------------------------------------------------
# Parameters (deterministic, PyTorch-style uniform(-1/sqrt(H), 1/sqrt(H)))
# ---------------------------------------------------------------------------
def init_params(key):
    params = {}
    k = 1.0 / jnp.sqrt(jnp.float32(HIDDEN))
    keys = jax.random.split(key, 4 * NUM_LAYERS + 2)
    ki = 0
    for l in range(NUM_LAYERS):
        din = INPUT_SIZE if l == 0 else HIDDEN
        params[f'wih{l}'] = jax.random.uniform(
            keys[ki], (4 * HIDDEN, din), jnp.float32, -k, k); ki += 1
        params[f'whh{l}'] = jax.random.uniform(
            keys[ki], (4 * HIDDEN, HIDDEN), jnp.float32, -k, k); ki += 1
        params[f'bih{l}'] = jax.random.uniform(
            keys[ki], (4 * HIDDEN,), jnp.float32, -k, k); ki += 1
        params[f'bhh{l}'] = jax.random.uniform(
            keys[ki], (4 * HIDDEN,), jnp.float32, -k, k); ki += 1
    params['fcw'] = jax.random.uniform(
        keys[ki], (OUTPUT_SIZE, HIDDEN), jnp.float32, -k, k); ki += 1
    params['fcb'] = jax.random.uniform(
        keys[ki], (OUTPUT_SIZE,), jnp.float32, -k, k)
    return params


def prepare_params(params):
    """One-time weight prep: transposes, combined biases, stacked layer-1 weight,
    lane-padded FC head, bf16 matmul operands (f32 accumulation kept in-kernel)."""
    prep = {
        'wih0': params['wih0'].T,                                        # (1, 4H) f32 (VPU)
        'whh0': params['whh0'].T.astype(jnp.bfloat16),                   # (H, 4H)
        'b0':   (params['bih0'] + params['bhh0'])[None, :],              # (1, 4H) f32
        'w1':   jnp.concatenate([params['wih1'].T, params['whh1'].T],
                                axis=0).astype(jnp.bfloat16),            # (2H, 4H)
        'b1':   (params['bih1'] + params['bhh1'])[None, :],              # (1, 4H) f32
    }
    fcw_t = params['fcw'].T                                              # (H, V)
    prep['fcw'] = (jnp.zeros((HIDDEN, VOCAB_PAD), jnp.float32)
                   .at[:, :OUTPUT_SIZE].set(fcw_t).astype(jnp.bfloat16))
    prep['fcb'] = jnp.zeros((1, VOCAB_PAD), jnp.float32).at[:, :OUTPUT_SIZE].set(params['fcb'])
    return prep


# ---------------------------------------------------------------------------
# Forward pass == LSTMTextGenerator.forward(x, hidden)
# ---------------------------------------------------------------------------
@jax.jit
def lstm_text_generator_forward(x, hidden, prep):
    """x: (B, T, input_size); hidden = (h0, c0), each (num_layers, B, H).

    Returns (output, (h_n, c_n)) with output (B, T, vocab_size)."""
    h0, c0 = hidden
    B, T, _ = x.shape
    Bp = ((B + 7) // 8) * 8                        # pad batch to sublane multiple

    x_tm = jnp.transpose(x, (1, 0, 2)).astype(jnp.float32)               # (T, B, 1)
    x_tm = jnp.pad(x_tm, ((0, 0), (0, Bp - B), (0, 0)))
    h0p = jnp.pad(h0.astype(jnp.float32), ((0, 0), (0, Bp - B), (0, 0)))
    c0p = jnp.pad(c0.astype(jnp.float32), ((0, 0), (0, Bp - B), (0, 0)))

    out_p, hn_p, cn_p = pl.pallas_call(
        _fused_lstm_fc_kernel,
        out_shape=(jax.ShapeDtypeStruct((T, Bp, VOCAB_PAD), jnp.float32),
                   jax.ShapeDtypeStruct((NUM_LAYERS, Bp, HIDDEN), jnp.float32),
                   jax.ShapeDtypeStruct((NUM_LAYERS, Bp, HIDDEN), jnp.float32)),
        in_specs=[_VMEM] * 10,
        out_specs=(_VMEM, _VMEM, _VMEM),
        scratch_shapes=[pltpu.VMEM((T, Bp, HIDDEN), jnp.float32),        # layer-1 outputs
                        pltpu.VMEM((T, Bp, 4 * HIDDEN), jnp.float32)],   # layer-0 gate slab
        compiler_params=pltpu.CompilerParams(
            vmem_limit_bytes=_vmem_limit_bytes(T, Bp)),
    )(x_tm, prep['wih0'], prep['whh0'], prep['b0'],
      prep['w1'], prep['b1'], prep['fcw'], prep['fcb'], h0p, c0p)

    out = jnp.transpose(out_p[:, :B, :OUTPUT_SIZE], (1, 0, 2))           # (B, T, V)
    return out, (hn_p[:, :B, :], cn_p[:, :B, :])


def init_hidden(batch_size):
    return (jnp.zeros((NUM_LAYERS, batch_size, HIDDEN), jnp.float32),
            jnp.zeros((NUM_LAYERS, batch_size, HIDDEN), jnp.float32))


if __name__ == "__main__":
    key = jax.random.PRNGKey(0)
    pkey, xkey = jax.random.split(key)

    params = init_params(pkey)
    prep = prepare_params(params)                  # one-time weight prep (not per call)

    batch_size = 2
    seq_len = 8
    x = jax.random.normal(xkey, (batch_size, seq_len, INPUT_SIZE), jnp.float32)
    hidden = init_hidden(batch_size)

    out, (h_n, c_n) = lstm_text_generator_forward(x, hidden, prep)
    jax.block_until_ready((out, h_n, c_n))

    assert out.shape == (batch_size, seq_len, OUTPUT_SIZE)
    assert h_n.shape == (NUM_LAYERS, batch_size, HIDDEN)
    assert c_n.shape == (NUM_LAYERS, batch_size, HIDDEN)
    assert bool(jnp.all(jnp.isfinite(out)))
    assert bool(jnp.all(jnp.isfinite(h_n))) and bool(jnp.all(jnp.isfinite(c_n)))
    print("KERNEL_OK")
</pallas_src>

<mosaic_0001>
module attributes {stable_mosaic.version = 11 : i64} {
  func.func @_fused_lstm_fc_kernel(%arg0: memref<8x8x1xf32, #tpu.memory_space<vmem>>, %arg1: memref<1x512xf32, #tpu.memory_space<vmem>>, %arg2: memref<128x512xbf16, #tpu.memory_space<vmem>>, %arg3: memref<1x512xf32, #tpu.memory_space<vmem>>, %arg4: memref<256x512xbf16, #tpu.memory_space<vmem>>, %arg5: memref<1x512xf32, #tpu.memory_space<vmem>>, %arg6: memref<128x128xbf16, #tpu.memory_space<vmem>>, %arg7: memref<1x128xf32, #tpu.memory_space<vmem>>, %arg8: memref<2x8x128xf32, #tpu.memory_space<vmem>>, %arg9: memref<2x8x128xf32, #tpu.memory_space<vmem>>, %arg10: memref<8x8x128xf32, #tpu.memory_space<vmem>>, %arg11: memref<2x8x128xf32, #tpu.memory_space<vmem>>, %arg12: memref<2x8x128xf32, #tpu.memory_space<vmem>>, %arg13: memref<8x8x128xf32, #tpu.memory_space<vmem>>, %arg14: memref<8x8x512xf32, #tpu.memory_space<vmem>>) attributes {dimension_semantics = [], scalar_prefetch = 0 : i64, scratch_operands = 2 : i64, tpu.core_type = #tpu.core_type<tc>} {
    %c0 = arith.constant 0 : index
    %c0_0 = arith.constant 0 : index
    %c0_1 = arith.constant 0 : index
    %0 = vector.load %arg0[%c0, %c0_0, %c0_1] : memref<8x8x1xf32, #tpu.memory_space<vmem>>, vector<8x8x1xf32>
    %c0_2 = arith.constant 0 : index
    %c0_3 = arith.constant 0 : index
    %1 = vector.load %arg1[%c0_2, %c0_3] : memref<1x512xf32, #tpu.memory_space<vmem>>, vector<1x512xf32>
    %2 = vector.shape_cast %1 : vector<1x512xf32> to vector<1x1x512xf32>
    %3 = vector.broadcast %0 : vector<8x8x1xf32> to vector<8x8x512xf32>
    %4 = vector.broadcast %2 : vector<1x1x512xf32> to vector<8x8x512xf32>
    %5 = arith.mulf %3, %4 : vector<8x8x512xf32>
    %c0_4 = arith.constant 0 : index
    %c0_5 = arith.constant 0 : index
    %6 = vector.load %arg3[%c0_4, %c0_5] : memref<1x512xf32, #tpu.memory_space<vmem>>, vector<1x512xf32>
    %7 = vector.shape_cast %6 : vector<1x512xf32> to vector<1x1x512xf32>
    %8 = vector.broadcast %7 : vector<1x1x512xf32> to vector<8x8x512xf32>
    %9 = arith.addf %5, %8 : vector<8x8x512xf32>
    %c0_6 = arith.constant 0 : index
    %c0_7 = arith.constant 0 : index
    %c0_8 = arith.constant 0 : index
    %10 = vector.load %arg14[%c0_6, %c0_7, %c0_8] : memref<8x8x512xf32, #tpu.memory_space<vmem>>, vector<8x8x512xf32>
    tpu.vector_store %arg14[%c0_6, %c0_7, %c0_8], %9 {strides = array<i32>} : memref<8x8x512xf32, #tpu.memory_space<vmem>>, vector<8x8x512xf32>,
    %c0_9 = arith.constant 0 : index
    %c0_10 = arith.constant 0 : index
    %11 = vector.load %arg2[%c0_9, %c0_10] : memref<128x512xbf16, #tpu.memory_space<vmem>>, vector<128x512xbf16>
    %c0_11 = arith.constant 0 : index
    %c0_12 = arith.constant 0 : index
    %12 = vector.load %arg4[%c0_11, %c0_12] : memref<256x512xbf16, #tpu.memory_space<vmem>>, vector<256x512xbf16>
    %c0_13 = arith.constant 0 : index
    %c0_14 = arith.constant 0 : index
    %13 = vector.load %arg5[%c0_13, %c0_14] : memref<1x512xf32, #tpu.memory_space<vmem>>, vector<1x512xf32>
    %14 = vector.shape_cast %13 : vector<1x512xf32> to vector<1x512xf32>
    %15 = vector.broadcast %14 : vector<1x512xf32> to vector<8x512xf32>
    %c0_15 = arith.constant 0 : index
    %c0_16 = arith.constant 0 : index
    %c0_17 = arith.constant 0 : index
    %16 = vector.load %arg8[%c0_15, %c0_16, %c0_17] : memref<2x8x128xf32, #tpu.memory_space<vmem>>, vector<1x8x128xf32>
    %17 = vector.shape_cast %16 : vector<1x8x128xf32> to vector<8x128xf32>
    %c0_18 = arith.constant 0 : index
    %c0_19 = arith.constant 0 : index
    %c0_20 = arith.constant 0 : index
    %18 = vector.load %arg9[%c0_18, %c0_19, %c0_20] : memref<2x8x128xf32, #tpu.memory_space<vmem>>, vector<1x8x128xf32>
    %19 = vector.shape_cast %18 : vector<1x8x128xf32> to vector<8x128xf32>
    %c0_21 = arith.constant 0 : index
    %c0_22 = arith.constant 0 : index
    %c0_23 = arith.constant 0 : index
    %20 = vector.load %arg14[%c0_21, %c0_22, %c0_23] : memref<8x8x512xf32, #tpu.memory_space<vmem>>, vector<1x8x512xf32>
    %21 = vector.shape_cast %20 : vector<1x8x512xf32> to vector<8x512xf32>
    %22 = arith.truncf %17 : vector<8x128xf32> to vector<8x128xbf16>
    %cst = arith.constant dense<0.000000e+00> : vector<8x512xf32>
    %23 = tpu.matmul %22, %11, %cst {dimension_numbers = #tpu.dot_dimension_numbers<[1], [0], [0], [1], [0, 0, 1, 1], [], []>} : vector<8x128xbf16>, vector<128x512xbf16>, vector<8x512xf32> -> vector<8x512xf32>
    %24 = arith.addf %21, %23 : vector<8x512xf32>
    %25 = vector.extract_strided_slice %24 {offsets = [0, 0], sizes = [8, 128], strides = [1, 1]} : vector<8x512xf32> to vector<8x128xf32>
    %26 = arith.negf %25 : vector<8x128xf32>
    %27 = math.exp %26 : vector<8x128xf32>
    %cst_24 = arith.constant 1.000000e+00 : f32
    %28 = vector.broadcast %cst_24 : f32 to vector<8x128xf32>
    %29 = arith.addf %28, %27 : vector<8x128xf32>
    %30 = arith.divf %28, %29 : vector<8x128xf32>
    %31 = vector.extract_strided_slice %24 {offsets = [0, 128], sizes = [8, 128], strides = [1, 1]} : vector<8x512xf32> to vector<8x128xf32>
    %32 = arith.negf %31 : vector<8x128xf32>
    %33 = math.exp %32 : vector<8x128xf32>
    %cst_25 = arith.constant 1.000000e+00 : f32
    %34 = vector.broadcast %cst_25 : f32 to vector<8x128xf32>
    %35 = arith.addf %34, %33 : vector<8x128xf32>
    %36 = arith.divf %34, %35 : vector<8x128xf32>
    %37 = vector.extract_strided_slice %24 {offsets = [0, 256], sizes = [8, 128], strides = [1, 1]} : vector<8x512xf32> to vector<8x128xf32>
    %38 = math.tanh %37 : vector<8x128xf32>
    %39 = vector.extract_strided_slice %24 {offsets = [0, 384], sizes = [8, 128], strides = [1, 1]} : vector<8x512xf32> to vector<8x128xf32>
    %40 = arith.negf %39 : vector<8x128xf32>
    %41 = math.exp %40 : vector<8x128xf32>
    %cst_26 = arith.constant 1.000000e+00 : f32
    %42 = vector.broadcast %cst_26 : f32 to vector<8x128xf32>
    %43 = arith.addf %42, %41 : vector<8x128xf32>
    %44 = arith.divf %42, %43 : vector<8x128xf32>
    %45 = arith.mulf %36, %19 : vector<8x128xf32>
    %46 = arith.mulf %30, %38 : vector<8x128xf32>
    %47 = arith.addf %45, %46 : vector<8x128xf32>
    %48 = math.tanh %47 : vector<8x128xf32>
    %49 = arith.mulf %44, %48 : vector<8x128xf32>
    %c1 = arith.constant 1 : index
    %c0_27 = arith.constant 0 : index
    %c0_28 = arith.constant 0 : index
    %50 = vector.load %arg8[%c1, %c0_27, %c0_28] : memref<2x8x128xf32, #tpu.memory_space<vmem>>, vector<1x8x128xf32>
    %51 = vector.shape_cast %50 : vector<1x8x128xf32> to vector<8x128xf32>
    %c1_29 = arith.constant 1 : index
    %c0_30 = arith.constant 0 : index
    %c0_31 = arith.constant 0 : index
    %52 = vector.load %arg9[%c1_29, %c0_30, %c0_31] : memref<2x8x128xf32, #tpu.memory_space<vmem>>, vector<1x8x128xf32>
    %53 = vector.shape_cast %52 : vector<1x8x128xf32> to vector<8x128xf32>
    %c1_i32 = arith.constant 1 : i32
    %54 = arith.index_cast %c1_i32 : i32 to index
    %c0_32 = arith.constant 0 : index
    %c0_33 = arith.constant 0 : index
    %55 = vector.load %arg14[%54, %c0_32, %c0_33] : memref<8x8x512xf32, #tpu.memory_space<vmem>>, vector<1x8x512xf32>
    %56 = vector.shape_cast %55 : vector<1x8x512xf32> to vector<8x512xf32>
    %57 = arith.truncf %49 : vector<8x128xf32> to vector<8x128xbf16>
    %cst_34 = arith.constant dense<0.000000e+00> : vector<8x512xf32>
    %58 = tpu.matmul %57, %11, %cst_34 {dimension_numbers = #tpu.dot_dimension_numbers<[1], [0], [0], [1], [0, 0, 1, 1], [], []>} : vector<8x128xbf16>, vector<128x512xbf16>, vector<8x512xf32> -> vector<8x512xf32>
    %59 = arith.addf %56, %58 : vector<8x512xf32>
    %60 = vector.extract_strided_slice %59 {offsets = [0, 0], sizes = [8, 128], strides = [1, 1]} : vector<8x512xf32> to vector<8x128xf32>
    %61 = arith.negf %60 : vector<8x128xf32>
    %62 = math.exp %61 : vector<8x128xf32>
    %cst_35 = arith.constant 1.000000e+00 : f32
    %63 = vector.broadcast %cst_35 : f32 to vector<8x128xf32>
    %64 = arith.addf %63, %62 : vector<8x128xf32>
    %65 = arith.divf %63, %64 : vector<8x128xf32>
    %66 = vector.extract_strided_slice %59 {offsets = [0, 128], sizes = [8, 128], strides = [1, 1]} : vector<8x512xf32> to vector<8x128xf32>
    %67 = arith.negf %66 : vector<8x128xf32>
    %68 = math.exp %67 : vector<8x128xf32>
    %cst_36 = arith.constant 1.000000e+00 : f32
    %69 = vector.broadcast %cst_36 : f32 to vector<8x128xf32>
    %70 = arith.addf %69, %68 : vector<8x128xf32>
    %71 = arith.divf %69, %70 : vector<8x128xf32>
    %72 = vector.extract_strided_slice %59 {offsets = [0, 256], sizes = [8, 128], strides = [1, 1]} : vector<8x512xf32> to vector<8x128xf32>
    %73 = math.tanh %72 : vector<8x128xf32>
    %74 = vector.extract_strided_slice %59 {offsets = [0, 384], sizes = [8, 128], strides = [1, 1]} : vector<8x512xf32> to vector<8x128xf32>
    %75 = arith.negf %74 : vector<8x128xf32>
    %76 = math.exp %75 : vector<8x128xf32>
    %cst_37 = arith.constant 1.000000e+00 : f32
    %77 = vector.broadcast %cst_37 : f32 to vector<8x128xf32>
    %78 = arith.addf %77, %76 : vector<8x128xf32>
    %79 = arith.divf %77, %78 : vector<8x128xf32>
    %80 = arith.mulf %71, %47 : vector<8x128xf32>
    %81 = arith.mulf %65, %73 : vector<8x128xf32>
    %82 = arith.addf %80, %81 : vector<8x128xf32>
    %83 = math.tanh %82 : vector<8x128xf32>
    %84 = arith.mulf %79, %83 : vector<8x128xf32>
    %c1_i32_38 = arith.constant 1 : i32
    %85 = arith.subi %c1_i32, %c1_i32_38 : i32
    %86 = tpu.concatenate %49, %51 in 1 : vector<8x128xf32>, vector<8x128xf32> -> vector<8x256xf32>
    %87 = arith.truncf %86 : vector<8x256xf32> to vector<8x256xbf16>
    %cst_39 = arith.constant dense<0.000000e+00> : vector<8x512xf32>
    %88 = tpu.matmul %87, %12, %cst_39 {dimension_numbers = #tpu.dot_dimension_numbers<[1], [0], [0], [1], [0, 0, 1, 1], [], []>} : vector<8x256xbf16>, vector<256x512xbf16>, vector<8x512xf32> -> vector<8x512xf32>
    %89 = arith.addf %88, %15 : vector<8x512xf32>
    %90 = vector.extract_strided_slice %89 {offsets = [0, 0], sizes = [8, 128], strides = [1, 1]} : vector<8x512xf32> to vector<8x128xf32>
    %91 = arith.negf %90 : vector<8x128xf32>
    %92 = math.exp %91 : vector<8x128xf32>
    %cst_40 = arith.constant 1.000000e+00 : f32
    %93 = vector.broadcast %cst_40 : f32 to vector<8x128xf32>
    %94 = arith.addf %93, %92 : vector<8x128xf32>
    %95 = arith.divf %93, %94 : vector<8x128xf32>
    %96 = vector.extract_strided_slice %89 {offsets = [0, 128], sizes = [8, 128], strides = [1, 1]} : vector<8x512xf32> to vector<8x128xf32>
    %97 = arith.negf %96 : vector<8x128xf32>
    %98 = math.exp %97 : vector<8x128xf32>
    %cst_41 = arith.constant 1.000000e+00 : f32
    %99 = vector.broadcast %cst_41 : f32 to vector<8x128xf32>
    %100 = arith.addf %99, %98 : vector<8x128xf32>
    %101 = arith.divf %99, %100 : vector<8x128xf32>
    %102 = vector.extract_strided_slice %89 {offsets = [0, 256], sizes = [8, 128], strides = [1, 1]} : vector<8x512xf32> to vector<8x128xf32>
    %103 = math.tanh %102 : vector<8x128xf32>
    %104 = vector.extract_strided_slice %89 {offsets = [0, 384], sizes = [8, 128], strides = [1, 1]} : vector<8x512xf32> to vector<8x128xf32>
    %105 = arith.negf %104 : vector<8x128xf32>
    %106 = math.exp %105 : vector<8x128xf32>
    %cst_42 = arith.constant 1.000000e+00 : f32
    %107 = vector.broadcast %cst_42 : f32 to vector<8x128xf32>
    %108 = arith.addf %107, %106 : vector<8x128xf32>
    %109 = arith.divf %107, %108 : vector<8x128xf32>
    %110 = arith.mulf %101, %53 : vector<8x128xf32>
    %111 = arith.mulf %95, %103 : vector<8x128xf32>
    %112 = arith.addf %110, %111 : vector<8x128xf32>
    %113 = math.tanh %112 : vector<8x128xf32>
    %114 = arith.mulf %109, %113 : vector<8x128xf32>
    %115 = arith.index_cast %85 : i32 to index
    %c0_43 = arith.constant 0 : index
    %c0_44 = arith.constant 0 : index
    %116 = vector.load %arg13[%115, %c0_43, %c0_44] : memref<8x8x128xf32, #tpu.memory_space<vmem>>, vector<1x8x128xf32>
    %117 = vector.shape_cast %116 : vector<1x8x128xf32> to vector<8x128xf32>
    %118 = vector.shape_cast %114 : vector<8x128xf32> to vector<1x8x128xf32>
    tpu.vector_store %arg13[%115, %c0_43, %c0_44], %118 {strides = array<i32>} : memref<8x8x128xf32, #tpu.memory_space<vmem>>, vector<1x8x128xf32>,
    %c2_i32 = arith.constant 2 : i32
    %119 = arith.index_cast %c2_i32 : i32 to index
    %c0_45 = arith.constant 0 : index
    %c0_46 = arith.constant 0 : index
    %120 = vector.load %arg14[%119, %c0_45, %c0_46] : memref<8x8x512xf32, #tpu.memory_space<vmem>>, vector<1x8x512xf32>
    %121 = vector.shape_cast %120 : vector<1x8x512xf32> to vector<8x512xf32>
    %122 = arith.truncf %84 : vector<8x128xf32> to vector<8x128xbf16>
    %cst_47 = arith.constant dense<0.000000e+00> : vector<8x512xf32>
    %123 = tpu.matmul %122, %11, %cst_47 {dimension_numbers = #tpu.dot_dimension_numbers<[1], [0], [0], [1], [0, 0, 1, 1], [], []>} : vector<8x128xbf16>, vector<128x512xbf16>, vector<8x512xf32> -> vector<8x512xf32>
    %124 = arith.addf %121, %123 : vector<8x512xf32>
    %125 = vector.extract_strided_slice %124 {offsets = [0, 0], sizes = [8, 128], strides = [1, 1]} : vector<8x512xf32> to vector<8x128xf32>
    %126 = arith.negf %125 : vector<8x128xf32>
    %127 = math.exp %126 : vector<8x128xf32>
    %cst_48 = arith.constant 1.000000e+00 : f32
    %128 = vector.broadcast %cst_48 : f32 to vector<8x128xf32>
    %129 = arith.addf %128, %127 : vector<8x128xf32>
    %130 = arith.divf %128, %129 : vector<8x128xf32>
    %131 = vector.extract_strided_slice %124 {offsets = [0, 128], sizes = [8, 128], strides = [1, 1]} : vector<8x512xf32> to vector<8x128xf32>
    %132 = arith.negf %131 : vector<8x128xf32>
    %133 = math.exp %132 : vector<8x128xf32>
    %cst_49 = arith.constant 1.000000e+00 : f32
    %134 = vector.broadcast %cst_49 : f32 to vector<8x128xf32>
    %135 = arith.addf %134, %133 : vector<8x128xf32>
    %136 = arith.divf %134, %135 : vector<8x128xf32>
    %137 = vector.extract_strided_slice %124 {offsets = [0, 256], sizes = [8, 128], strides = [1, 1]} : vector<8x512xf32> to vector<8x128xf32>
    %138 = math.tanh %137 : vector<8x128xf32>
    %139 = vector.extract_strided_slice %124 {offsets = [0, 384], sizes = [8, 128], strides = [1, 1]} : vector<8x512xf32> to vector<8x128xf32>
    %140 = arith.negf %139 : vector<8x128xf32>
    %141 = math.exp %140 : vector<8x128xf32>
    %cst_50 = arith.constant 1.000000e+00 : f32
    %142 = vector.broadcast %cst_50 : f32 to vector<8x128xf32>
    %143 = arith.addf %142, %141 : vector<8x128xf32>
    %144 = arith.divf %142, %143 : vector<8x128xf32>
    %145 = arith.mulf %136, %82 : vector<8x128xf32>
    %146 = arith.mulf %130, %138 : vector<8x128xf32>
    %147 = arith.addf %145, %146 : vector<8x128xf32>
    %148 = math.tanh %147 : vector<8x128xf32>
    %149 = arith.mulf %144, %148 : vector<8x128xf32>
    %c1_i32_51 = arith.constant 1 : i32
    %150 = arith.subi %c2_i32, %c1_i32_51 : i32
    %151 = tpu.concatenate %84, %114 in 1 : vector<8x128xf32>, vector<8x128xf32> -> vector<8x256xf32>
    %152 = arith.truncf %151 : vector<8x256xf32> to vector<8x256xbf16>
    %cst_52 = arith.constant dense<0.000000e+00> : vector<8x512xf32>
    %153 = tpu.matmul %152, %12, %cst_52 {dimension_numbers = #tpu.dot_dimension_numbers<[1], [0], [0], [1], [0, 0, 1, 1], [], []>} : vector<8x256xbf16>, vector<256x512xbf16>, vector<8x512xf32> -> vector<8x512xf32>
    %154 = arith.addf %153, %15 : vector<8x512xf32>
    %155 = vector.extract_strided_slice %154 {offsets = [0, 0], sizes = [8, 128], strides = [1, 1]} : vector<8x512xf32> to vector<8x128xf32>
    %156 = arith.negf %155 : vector<8x128xf32>
    %157 = math.exp %156 : vector<8x128xf32>
    %cst_53 = arith.constant 1.000000e+00 : f32
    %158 = vector.broadcast %cst_53 : f32 to vector<8x128xf32>
    %159 = arith.addf %158, %157 : vector<8x128xf32>
    %160 = arith.divf %158, %159 : vector<8x128xf32>
    %161 = vector.extract_strided_slice %154 {offsets = [0, 128], sizes = [8, 128], strides = [1, 1]} : vector<8x512xf32> to vector<8x128xf32>
    %162 = arith.negf %161 : vector<8x128xf32>
    %163 = math.exp %162 : vector<8x128xf32>
    %cst_54 = arith.constant 1.000000e+00 : f32
    %164 = vector.broadcast %cst_54 : f32 to vector<8x128xf32>
    %165 = arith.addf %164, %163 : vector<8x128xf32>
    %166 = arith.divf %164, %165 : vector<8x128xf32>
    %167 = vector.extract_strided_slice %154 {offsets = [0, 256], sizes = [8, 128], strides = [1, 1]} : vector<8x512xf32> to vector<8x128xf32>
    %168 = math.tanh %167 : vector<8x128xf32>
    %169 = vector.extract_strided_slice %154 {offsets = [0, 384], sizes = [8, 128], strides = [1, 1]} : vector<8x512xf32> to vector<8x128xf32>
    %170 = arith.negf %169 : vector<8x128xf32>
    %171 = math.exp %170 : vector<8x128xf32>
    %cst_55 = arith.constant 1.000000e+00 : f32
    %172 = vector.broadcast %cst_55 : f32 to vector<8x128xf32>
    %173 = arith.addf %172, %171 : vector<8x128xf32>
    %174 = arith.divf %172, %173 : vector<8x128xf32>
    %175 = arith.mulf %166, %112 : vector<8x128xf32>
    %176 = arith.mulf %160, %168 : vector<8x128xf32>
    %177 = arith.addf %175, %176 : vector<8x128xf32>
    %178 = math.tanh %177 : vector<8x128xf32>
    %179 = arith.mulf %174, %178 : vector<8x128xf32>
    %180 = arith.index_cast %150 : i32 to index
    %c0_56 = arith.constant 0 : index
    %c0_57 = arith.constant 0 : index
    %181 = vector.load %arg13[%180, %c0_56, %c0_57] : memref<8x8x128xf32, #tpu.memory_space<vmem>>, vector<1x8x128xf32>
    %182 = vector.shape_cast %181 : vector<1x8x128xf32> to vector<8x128xf32>
    %183 = vector.shape_cast %179 : vector<8x128xf32> to vector<1x8x128xf32>
    tpu.vector_store %arg13[%180, %c0_56, %c0_57], %183 {strides = array<i32>} : memref<8x8x128xf32, #tpu.memory_space<vmem>>, vector<1x8x128xf32>,
    %c3_i32 = arith.constant 3 : i32
    %184 = arith.index_cast %c3_i32 : i32 to index
    %c0_58 = arith.constant 0 : index
    %c0_59 = arith.constant 0 : index
    %185 = vector.load %arg14[%184, %c0_58, %c0_59] : memref<8x8x512xf32, #tpu.memory_space<vmem>>, vector<1x8x512xf32>
    %186 = vector.shape_cast %185 : vector<1x8x512xf32> to vector<8x512xf32>
    %187 = arith.truncf %149 : vector<8x128xf32> to vector<8x128xbf16>
    %cst_60 = arith.constant dense<0.000000e+00> : vector<8x512xf32>
    %188 = tpu.matmul %187, %11, %cst_60 {dimension_numbers = #tpu.dot_dimension_numbers<[1], [0], [0], [1], [0, 0, 1, 1], [], []>} : vector<8x128xbf16>, vector<128x512xbf16>, vector<8x512xf32> -> vector<8x512xf32>
    %189 = arith.addf %186, %188 : vector<8x512xf32>
    %190 = vector.extract_strided_slice %189 {offsets = [0, 0], sizes = [8, 128], strides = [1, 1]} : vector<8x512xf32> to vector<8x128xf32>
    %191 = arith.negf %190 : vector<8x128xf32>
    %192 = math.exp %191 : vector<8x128xf32>
    %cst_61 = arith.constant 1.000000e+00 : f32
    %193 = vector.broadcast %cst_61 : f32 to vector<8x128xf32>
    %194 = arith.addf %193, %192 : vector<8x128xf32>
    %195 = arith.divf %193, %194 : vector<8x128xf32>
    %196 = vector.extract_strided_slice %189 {offsets = [0, 128], sizes = [8, 128], strides = [1, 1]} : vector<8x512xf32> to vector<8x128xf32>
    %197 = arith.negf %196 : vector<8x128xf32>
    %198 = math.exp %197 : vector<8x128xf32>
    %cst_62 = arith.constant 1.000000e+00 : f32
    %199 = vector.broadcast %cst_62 : f32 to vector<8x128xf32>
    %200 = arith.addf %199, %198 : vector<8x128xf32>
    %201 = arith.divf %199, %200 : vector<8x128xf32>
    %202 = vector.extract_strided_slice %189 {offsets = [0, 256], sizes = [8, 128], strides = [1, 1]} : vector<8x512xf32> to vector<8x128xf32>
    %203 = math.tanh %202 : vector<8x128xf32>
    %204 = vector.extract_strided_slice %189 {offsets = [0, 384], sizes = [8, 128], strides = [1, 1]} : vector<8x512xf32> to vector<8x128xf32>
    %205 = arith.negf %204 : vector<8x128xf32>
    %206 = math.exp %205 : vector<8x128xf32>
    %cst_63 = arith.constant 1.000000e+00 : f32
    %207 = vector.broadcast %cst_63 : f32 to vector<8x128xf32>
    %208 = arith.addf %207, %206 : vector<8x128xf32>
    %209 = arith.divf %207, %208 : vector<8x128xf32>
    %210 = arith.mulf %201, %147 : vector<8x128xf32>
    %211 = arith.mulf %195, %203 : vector<8x128xf32>
    %212 = arith.addf %210, %211 : vector<8x128xf32>
    %213 = math.tanh %212 : vector<8x128xf32>
    %214 = arith.mulf %209, %213 : vector<8x128xf32>
    %c1_i32_64 = arith.constant 1 : i32
    %215 = arith.subi %c3_i32, %c1_i32_64 : i32
    %216 = tpu.concatenate %149, %179 in 1 : vector<8x128xf32>, vector<8x128xf32> -> vector<8x256xf32>
    %217 = arith.truncf %216 : vector<8x256xf32> to vector<8x256xbf16>
    %cst_65 = arith.constant dense<0.000000e+00> : vector<8x512xf32>
    %218 = tpu.matmul %217, %12, %cst_65 {dimension_numbers = #tpu.dot_dimension_numbers<[1], [0], [0], [1], [0, 0, 1, 1], [], []>} : vector<8x256xbf16>, vector<256x512xbf16>, vector<8x512xf32> -> vector<8x512xf32>
    %219 = arith.addf %218, %15 : vector<8x512xf32>
    %220 = vector.extract_strided_slice %219 {offsets = [0, 0], sizes = [8, 128], strides = [1, 1]} : vector<8x512xf32> to vector<8x128xf32>
    %221 = arith.negf %220 : vector<8x128xf32>
    %222 = math.exp %221 : vector<8x128xf32>
    %cst_66 = arith.constant 1.000000e+00 : f32
    %223 = vector.broadcast %cst_66 : f32 to vector<8x128xf32>
    %224 = arith.addf %223, %222 : vector<8x128xf32>
    %225 = arith.divf %223, %224 : vector<8x128xf32>
    %226 = vector.extract_strided_slice %219 {offsets = [0, 128], sizes = [8, 128], strides = [1, 1]} : vector<8x512xf32> to vector<8x128xf32>
    %227 = arith.negf %226 : vector<8x128xf32>
    %228 = math.exp %227 : vector<8x128xf32>
    %cst_67 = arith.constant 1.000000e+00 : f32
    %229 = vector.broadcast %cst_67 : f32 to vector<8x128xf32>
    %230 = arith.addf %229, %228 : vector<8x128xf32>
    %231 = arith.divf %229, %230 : vector<8x128xf32>
    %232 = vector.extract_strided_slice %219 {offsets = [0, 256], sizes = [8, 128], strides = [1, 1]} : vector<8x512xf32> to vector<8x128xf32>
    %233 = math.tanh %232 : vector<8x128xf32>
    %234 = vector.extract_strided_slice %219 {offsets = [0, 384], sizes = [8, 128], strides = [1, 1]} : vector<8x512xf32> to vector<8x128xf32>
    %235 = arith.negf %234 : vector<8x128xf32>
    %236 = math.exp %235 : vector<8x128xf32>
    %cst_68 = arith.constant 1.000000e+00 : f32
    %237 = vector.broadcast %cst_68 : f32 to vector<8x128xf32>
    %238 = arith.addf %237, %236 : vector<8x128xf32>
    %239 = arith.divf %237, %238 : vector<8x128xf32>
    %240 = arith.mulf %231, %177 : vector<8x128xf32>
    %241 = arith.mulf %225, %233 : vector<8x128xf32>
    %242 = arith.addf %240, %241 : vector<8x128xf32>
    %243 = math.tanh %242 : vector<8x128xf32>
    %244 = arith.mulf %239, %243 : vector<8x128xf32>
    %245 = arith.index_cast %215 : i32 to index
    %c0_69 = arith.constant 0 : index
    %c0_70 = arith.constant 0 : index
    %246 = vector.load %arg13[%245, %c0_69, %c0_70] : memref<8x8x128xf32, #tpu.memory_space<vmem>>, vector<1x8x128xf32>
    %247 = vector.shape_cast %246 : vector<1x8x128xf32> to vector<8x128xf32>
    %248 = vector.shape_cast %244 : vector<8x128xf32> to vector<1x8x128xf32>
    tpu.vector_store %arg13[%245, %c0_69, %c0_70], %248 {strides = array<i32>} : memref<8x8x128xf32, #tpu.memory_space<vmem>>, vector<1x8x128xf32>,
    %c4_i32 = arith.constant 4 : i32
    %249 = arith.index_cast %c4_i32 : i32 to index
    %c0_71 = arith.constant 0 : index
    %c0_72 = arith.constant 0 : index
    %250 = vector.load %arg14[%249, %c0_71, %c0_72] : memref<8x8x512xf32, #tpu.memory_space<vmem>>, vector<1x8x512xf32>
    %251 = vector.shape_cast %250 : vector<1x8x512xf32> to vector<8x512xf32>
    %252 = arith.truncf %214 : vector<8x128xf32> to vector<8x128xbf16>
    %cst_73 = arith.constant dense<0.000000e+00> : vector<8x512xf32>
    %253 = tpu.matmul %252, %11, %cst_73 {dimension_numbers = #tpu.dot_dimension_numbers<[1], [0], [0], [1], [0, 0, 1, 1], [], []>} : vector<8x128xbf16>, vector<128x512xbf16>, vector<8x512xf32> -> vector<8x512xf32>
    %254 = arith.addf %251, %253 : vector<8x512xf32>
    %255 = vector.extract_strided_slice %254 {offsets = [0, 0], sizes = [8, 128], strides = [1, 1]} : vector<8x512xf32> to vector<8x128xf32>
    %256 = arith.negf %255 : vector<8x128xf32>
    %257 = math.exp %256 : vector<8x128xf32>
    %cst_74 = arith.constant 1.000000e+00 : f32
    %258 = vector.broadcast %cst_74 : f32 to vector<8x128xf32>
    %259 = arith.addf %258, %257 : vector<8x128xf32>
    %260 = arith.divf %258, %259 : vector<8x128xf32>
    %261 = vector.extract_strided_slice %254 {offsets = [0, 128], sizes = [8, 128], strides = [1, 1]} : vector<8x512xf32> to vector<8x128xf32>
    %262 = arith.negf %261 : vector<8x128xf32>
    %263 = math.exp %262 : vector<8x128xf32>
    %cst_75 = arith.constant 1.000000e+00 : f32
    %264 = vector.broadcast %cst_75 : f32 to vector<8x128xf32>
    %265 = arith.addf %264, %263 : vector<8x128xf32>
    %266 = arith.divf %264, %265 : vector<8x128xf32>
    %267 = vector.extract_strided_slice %254 {offsets = [0, 256], sizes = [8, 128], strides = [1, 1]} : vector<8x512xf32> to vector<8x128xf32>
    %268 = math.tanh %267 : vector<8x128xf32>
    %269 = vector.extract_strided_slice %254 {offsets = [0, 384], sizes = [8, 128], strides = [1, 1]} : vector<8x512xf32> to vector<8x128xf32>
    %270 = arith.negf %269 : vector<8x128xf32>
    %271 = math.exp %270 : vector<8x128xf32>
    %cst_76 = arith.constant 1.000000e+00 : f32
    %272 = vector.broadcast %cst_76 : f32 to vector<8x128xf32>
    %273 = arith.addf %272, %271 : vector<8x128xf32>
    %274 = arith.divf %272, %273 : vector<8x128xf32>
    %275 = arith.mulf %266, %212 : vector<8x128xf32>
    %276 = arith.mulf %260, %268 : vector<8x128xf32>
    %277 = arith.addf %275, %276 : vector<8x128xf32>
    %278 = math.tanh %277 : vector<8x128xf32>
    %279 = arith.mulf %274, %278 : vector<8x128xf32>
    %c1_i32_77 = arith.constant 1 : i32
    %280 = arith.subi %c4_i32, %c1_i32_77 : i32
    %281 = tpu.concatenate %214, %244 in 1 : vector<8x128xf32>, vector<8x128xf32> -> vector<8x256xf32>
    %282 = arith.truncf %281 : vector<8x256xf32> to vector<8x256xbf16>
    %cst_78 = arith.constant dense<0.000000e+00> : vector<8x512xf32>
    %283 = tpu.matmul %282, %12, %cst_78 {dimension_numbers = #tpu.dot_dimension_numbers<[1], [0], [0], [1], [0, 0, 1, 1], [], []>} : vector<8x256xbf16>, vector<256x512xbf16>, vector<8x512xf32> -> vector<8x512xf32>
    %284 = arith.addf %283, %15 : vector<8x512xf32>
    %285 = vector.extract_strided_slice %284 {offsets = [0, 0], sizes = [8, 128], strides = [1, 1]} : vector<8x512xf32> to vector<8x128xf32>
    %286 = arith.negf %285 : vector<8x128xf32>
    %287 = math.exp %286 : vector<8x128xf32>
    %cst_79 = arith.constant 1.000000e+00 : f32
    %288 = vector.broadcast %cst_79 : f32 to vector<8x128xf32>
    %289 = arith.addf %288, %287 : vector<8x128xf32>
    %290 = arith.divf %288, %289 : vector<8x128xf32>
    %291 = vector.extract_strided_slice %284 {offsets = [0, 128], sizes = [8, 128], strides = [1, 1]} : vector<8x512xf32> to vector<8x128xf32>
    %292 = arith.negf %291 : vector<8x128xf32>
    %293 = math.exp %292 : vector<8x128xf32>
    %cst_80 = arith.constant 1.000000e+00 : f32
    %294 = vector.broadcast %cst_80 : f32 to vector<8x128xf32>
    %295 = arith.addf %294, %293 : vector<8x128xf32>
    %296 = arith.divf %294, %295 : vector<8x128xf32>
    %297 = vector.extract_strided_slice %284 {offsets = [0, 256], sizes = [8, 128], strides = [1, 1]} : vector<8x512xf32> to vector<8x128xf32>
    %298 = math.tanh %297 : vector<8x128xf32>
    %299 = vector.extract_strided_slice %284 {offsets = [0, 384], sizes = [8, 128], strides = [1, 1]} : vector<8x512xf32> to vector<8x128xf32>
    %300 = arith.negf %299 : vector<8x128xf32>
    %301 = math.exp %300 : vector<8x128xf32>
    %cst_81 = arith.constant 1.000000e+00 : f32
    %302 = vector.broadcast %cst_81 : f32 to vector<8x128xf32>
    %303 = arith.addf %302, %301 : vector<8x128xf32>
    %304 = arith.divf %302, %303 : vector<8x128xf32>
    %305 = arith.mulf %296, %242 : vector<8x128xf32>
    %306 = arith.mulf %290, %298 : vector<8x128xf32>
    %307 = arith.addf %305, %306 : vector<8x128xf32>
    %308 = math.tanh %307 : vector<8x128xf32>
    %309 = arith.mulf %304, %308 : vector<8x128xf32>
    %310 = arith.index_cast %280 : i32 to index
    %c0_82 = arith.constant 0 : index
    %c0_83 = arith.constant 0 : index
    %311 = vector.load %arg13[%310, %c0_82, %c0_83] : memref<8x8x128xf32, #tpu.memory_space<vmem>>, vector<1x8x128xf32>
    %312 = vector.shape_cast %311 : vector<1x8x128xf32> to vector<8x128xf32>
    %313 = vector.shape_cast %309 : vector<8x128xf32> to vector<1x8x128xf32>
    tpu.vector_store %arg13[%310, %c0_82, %c0_83], %313 {strides = array<i32>} : memref<8x8x128xf32, #tpu.memory_space<vmem>>, vector<1x8x128xf32>,
    %c5_i32 = arith.constant 5 : i32
    %314 = arith.index_cast %c5_i32 : i32 to index
    %c0_84 = arith.constant 0 : index
    %c0_85 = arith.constant 0 : index
    %315 = vector.load %arg14[%314, %c0_84, %c0_85] : memref<8x8x512xf32, #tpu.memory_space<vmem>>, vector<1x8x512xf32>
    %316 = vector.shape_cast %315 : vector<1x8x512xf32> to vector<8x512xf32>
    %317 = arith.truncf %279 : vector<8x128xf32> to vector<8x128xbf16>
    %cst_86 = arith.constant dense<0.000000e+00> : vector<8x512xf32>
    %318 = tpu.matmul %317, %11, %cst_86 {dimension_numbers = #tpu.dot_dimension_numbers<[1], [0], [0], [1], [0, 0, 1, 1], [], []>} : vector<8x128xbf16>, vector<128x512xbf16>, vector<8x512xf32> -> vector<8x512xf32>
    %319 = arith.addf %316, %318 : vector<8x512xf32>
    %320 = vector.extract_strided_slice %319 {offsets = [0, 0], sizes = [8, 128], strides = [1, 1]} : vector<8x512xf32> to vector<8x128xf32>
    %321 = arith.negf %320 : vector<8x128xf32>
    %322 = math.exp %321 : vector<8x128xf32>
    %cst_87 = arith.constant 1.000000e+00 : f32
    %323 = vector.broadcast %cst_87 : f32 to vector<8x128xf32>
    %324 = arith.addf %323, %322 : vector<8x128xf32>
    %325 = arith.divf %323, %324 : vector<8x128xf32>
    %326 = vector.extract_strided_slice %319 {offsets = [0, 128], sizes = [8, 128], strides = [1, 1]} : vector<8x512xf32> to vector<8x128xf32>
    %327 = arith.negf %326 : vector<8x128xf32>
    %328 = math.exp %327 : vector<8x128xf32>
    %cst_88 = arith.constant 1.000000e+00 : f32
    %329 = vector.broadcast %cst_88 : f32 to vector<8x128xf32>
    %330 = arith.addf %329, %328 : vector<8x128xf32>
    %331 = arith.divf %329, %330 : vector<8x128xf32>
    %332 = vector.extract_strided_slice %319 {offsets = [0, 256], sizes = [8, 128], strides = [1, 1]} : vector<8x512xf32> to vector<8x128xf32>
    %333 = math.tanh %332 : vector<8x128xf32>
    %334 = vector.extract_strided_slice %319 {offsets = [0, 384], sizes = [8, 128], strides = [1, 1]} : vector<8x512xf32> to vector<8x128xf32>
    %335 = arith.negf %334 : vector<8x128xf32>
    %336 = math.exp %335 : vector<8x128xf32>
    %cst_89 = arith.constant 1.000000e+00 : f32
    %337 = vector.broadcast %cst_89 : f32 to vector<8x128xf32>
    %338 = arith.addf %337, %336 : vector<8x128xf32>
    %339 = arith.divf %337, %338 : vector<8x128xf32>
    %340 = arith.mulf %331, %277 : vector<8x128xf32>
    %341 = arith.mulf %325, %333 : vector<8x128xf32>
    %342 = arith.addf %340, %341 : vector<8x128xf32>
    %343 = math.tanh %342 : vector<8x128xf32>
    %344 = arith.mulf %339, %343 : vector<8x128xf32>
    %c1_i32_90 = arith.constant 1 : i32
    %345 = arith.subi %c5_i32, %c1_i32_90 : i32
    %346 = tpu.concatenate %279, %309 in 1 : vector<8x128xf32>, vector<8x128xf32> -> vector<8x256xf32>
    %347 = arith.truncf %346 : vector<8x256xf32> to vector<8x256xbf16>
    %cst_91 = arith.constant dense<0.000000e+00> : vector<8x512xf32>
    %348 = tpu.matmul %347, %12, %cst_91 {dimension_numbers = #tpu.dot_dimension_numbers<[1], [0], [0], [1], [0, 0, 1, 1], [], []>} : vector<8x256xbf16>, vector<256x512xbf16>, vector<8x512xf32> -> vector<8x512xf32>
    %349 = arith.addf %348, %15 : vector<8x512xf32>
    %350 = vector.extract_strided_slice %349 {offsets = [0, 0], sizes = [8, 128], strides = [1, 1]} : vector<8x512xf32> to vector<8x128xf32>
    %351 = arith.negf %350 : vector<8x128xf32>
    %352 = math.exp %351 : vector<8x128xf32>
    %cst_92 = arith.constant 1.000000e+00 : f32
    %353 = vector.broadcast %cst_92 : f32 to vector<8x128xf32>
    %354 = arith.addf %353, %352 : vector<8x128xf32>
    %355 = arith.divf %353, %354 : vector<8x128xf32>
    %356 = vector.extract_strided_slice %349 {offsets = [0, 128], sizes = [8, 128], strides = [1, 1]} : vector<8x512xf32> to vector<8x128xf32>
    %357 = arith.negf %356 : vector<8x128xf32>
    %358 = math.exp %357 : vector<8x128xf32>
    %cst_93 = arith.constant 1.000000e+00 : f32
    %359 = vector.broadcast %cst_93 : f32 to vector<8x128xf32>
    %360 = arith.addf %359, %358 : vector<8x128xf32>
    %361 = arith.divf %359, %360 : vector<8x128xf32>
    %362 = vector.extract_strided_slice %349 {offsets = [0, 256], sizes = [8, 128], strides = [1, 1]} : vector<8x512xf32> to vector<8x128xf32>
    %363 = math.tanh %362 : vector<8x128xf32>
    %364 = vector.extract_strided_slice %349 {offsets = [0, 384], sizes = [8, 128], strides = [1, 1]} : vector<8x512xf32> to vector<8x128xf32>
    %365 = arith.negf %364 : vector<8x128xf32>
    %366 = math.exp %365 : vector<8x128xf32>
    %cst_94 = arith.constant 1.000000e+00 : f32
    %367 = vector.broadcast %cst_94 : f32 to vector<8x128xf32>
    %368 = arith.addf %367, %366 : vector<8x128xf32>
    %369 = arith.divf %367, %368 : vector<8x128xf32>
    %370 = arith.mulf %361, %307 : vector<8x128xf32>
    %371 = arith.mulf %355, %363 : vector<8x128xf32>
    %372 = arith.addf %370, %371 : vector<8x128xf32>
    %373 = math.tanh %372 : vector<8x128xf32>
    %374 = arith.mulf %369, %373 : vector<8x128xf32>
    %375 = arith.index_cast %345 : i32 to index
    %c0_95 = arith.constant 0 : index
    %c0_96 = arith.constant 0 : index
    %376 = vector.load %arg13[%375, %c0_95, %c0_96] : memref<8x8x128xf32, #tpu.memory_space<vmem>>, vector<1x8x128xf32>
    %377 = vector.shape_cast %376 : vector<1x8x128xf32> to vector<8x128xf32>
    %378 = vector.shape_cast %374 : vector<8x128xf32> to vector<1x8x128xf32>
    tpu.vector_store %arg13[%375, %c0_95, %c0_96], %378 {strides = array<i32>} : memref<8x8x128xf32, #tpu.memory_space<vmem>>, vector<1x8x128xf32>,
    %c6_i32 = arith.constant 6 : i32
    %379 = arith.index_cast %c6_i32 : i32 to index
    %c0_97 = arith.constant 0 : index
    %c0_98 = arith.constant 0 : index
    %380 = vector.load %arg14[%379, %c0_97, %c0_98] : memref<8x8x512xf32, #tpu.memory_space<vmem>>, vector<1x8x512xf32>
    %381 = vector.shape_cast %380 : vector<1x8x512xf32> to vector<8x512xf32>
    %382 = arith.truncf %344 : vector<8x128xf32> to vector<8x128xbf16>
    %cst_99 = arith.constant dense<0.000000e+00> : vector<8x512xf32>
    %383 = tpu.matmul %382, %11, %cst_99 {dimension_numbers = #tpu.dot_dimension_numbers<[1], [0], [0], [1], [0, 0, 1, 1], [], []>} : vector<8x128xbf16>, vector<128x512xbf16>, vector<8x512xf32> -> vector<8x512xf32>
    %384 = arith.addf %381, %383 : vector<8x512xf32>
    %385 = vector.extract_strided_slice %384 {offsets = [0, 0], sizes = [8, 128], strides = [1, 1]} : vector<8x512xf32> to vector<8x128xf32>
    %386 = arith.negf %385 : vector<8x128xf32>
    %387 = math.exp %386 : vector<8x128xf32>
    %cst_100 = arith.constant 1.000000e+00 : f32
    %388 = vector.broadcast %cst_100 : f32 to vector<8x128xf32>
    %389 = arith.addf %388, %387 : vector<8x128xf32>
    %390 = arith.divf %388, %389 : vector<8x128xf32>
    %391 = vector.extract_strided_slice %384 {offsets = [0, 128], sizes = [8, 128], strides = [1, 1]} : vector<8x512xf32> to vector<8x128xf32>
    %392 = arith.negf %391 : vector<8x128xf32>
    %393 = math.exp %392 : vector<8x128xf32>
    %cst_101 = arith.constant 1.000000e+00 : f32
    %394 = vector.broadcast %cst_101 : f32 to vector<8x128xf32>
    %395 = arith.addf %394, %393 : vector<8x128xf32>
    %396 = arith.divf %394, %395 : vector<8x128xf32>
    %397 = vector.extract_strided_slice %384 {offsets = [0, 256], sizes = [8, 128], strides = [1, 1]} : vector<8x512xf32> to vector<8x128xf32>
    %398 = math.tanh %397 : vector<8x128xf32>
    %399 = vector.extract_strided_slice %384 {offsets = [0, 384], sizes = [8, 128], strides = [1, 1]} : vector<8x512xf32> to vector<8x128xf32>
    %400 = arith.negf %399 : vector<8x128xf32>
    %401 = math.exp %400 : vector<8x128xf32>
    %cst_102 = arith.constant 1.000000e+00 : f32
    %402 = vector.broadcast %cst_102 : f32 to vector<8x128xf32>
    %403 = arith.addf %402, %401 : vector<8x128xf32>
    %404 = arith.divf %402, %403 : vector<8x128xf32>
    %405 = arith.mulf %396, %342 : vector<8x128xf32>
    %406 = arith.mulf %390, %398 : vector<8x128xf32>
    %407 = arith.addf %405, %406 : vector<8x128xf32>
    %408 = math.tanh %407 : vector<8x128xf32>
    %409 = arith.mulf %404, %408 : vector<8x128xf32>
    %c1_i32_103 = arith.constant 1 : i32
    %410 = arith.subi %c6_i32, %c1_i32_103 : i32
    %411 = tpu.concatenate %344, %374 in 1 : vector<8x128xf32>, vector<8x128xf32> -> vector<8x256xf32>
    %412 = arith.truncf %411 : vector<8x256xf32> to vector<8x256xbf16>
    %cst_104 = arith.constant dense<0.000000e+00> : vector<8x512xf32>
    %413 = tpu.matmul %412, %12, %cst_104 {dimension_numbers = #tpu.dot_dimension_numbers<[1], [0], [0], [1], [0, 0, 1, 1], [], []>} : vector<8x256xbf16>, vector<256x512xbf16>, vector<8x512xf32> -> vector<8x512xf32>
    %414 = arith.addf %413, %15 : vector<8x512xf32>
    %415 = vector.extract_strided_slice %414 {offsets = [0, 0], sizes = [8, 128], strides = [1, 1]} : vector<8x512xf32> to vector<8x128xf32>
    %416 = arith.negf %415 : vector<8x128xf32>
    %417 = math.exp %416 : vector<8x128xf32>
    %cst_105 = arith.constant 1.000000e+00 : f32
    %418 = vector.broadcast %cst_105 : f32 to vector<8x128xf32>
    %419 = arith.addf %418, %417 : vector<8x128xf32>
    %420 = arith.divf %418, %419 : vector<8x128xf32>
    %421 = vector.extract_strided_slice %414 {offsets = [0, 128], sizes = [8, 128], strides = [1, 1]} : vector<8x512xf32> to vector<8x128xf32>
    %422 = arith.negf %421 : vector<8x128xf32>
    %423 = math.exp %422 : vector<8x128xf32>
    %cst_106 = arith.constant 1.000000e+00 : f32
    %424 = vector.broadcast %cst_106 : f32 to vector<8x128xf32>
    %425 = arith.addf %424, %423 : vector<8x128xf32>
    %426 = arith.divf %424, %425 : vector<8x128xf32>
    %427 = vector.extract_strided_slice %414 {offsets = [0, 256], sizes = [8, 128], strides = [1, 1]} : vector<8x512xf32> to vector<8x128xf32>
    %428 = math.tanh %427 : vector<8x128xf32>
    %429 = vector.extract_strided_slice %414 {offsets = [0, 384], sizes = [8, 128], strides = [1, 1]} : vector<8x512xf32> to vector<8x128xf32>
    %430 = arith.negf %429 : vector<8x128xf32>
    %431 = math.exp %430 : vector<8x128xf32>
    %cst_107 = arith.constant 1.000000e+00 : f32
    %432 = vector.broadcast %cst_107 : f32 to vector<8x128xf32>
    %433 = arith.addf %432, %431 : vector<8x128xf32>
    %434 = arith.divf %432, %433 : vector<8x128xf32>
    %435 = arith.mulf %426, %372 : vector<8x128xf32>
    %436 = arith.mulf %420, %428 : vector<8x128xf32>
    %437 = arith.addf %435, %436 : vector<8x128xf32>
    %438 = math.tanh %437 : vector<8x128xf32>
    %439 = arith.mulf %434, %438 : vector<8x128xf32>
    %440 = arith.index_cast %410 : i32 to index
    %c0_108 = arith.constant 0 : index
    %c0_109 = arith.constant 0 : index
    %441 = vector.load %arg13[%440, %c0_108, %c0_109] : memref<8x8x128xf32, #tpu.memory_space<vmem>>, vector<1x8x128xf32>
    %442 = vector.shape_cast %441 : vector<1x8x128xf32> to vector<8x128xf32>
    %443 = vector.shape_cast %439 : vector<8x128xf32> to vector<1x8x128xf32>
    tpu.vector_store %arg13[%440, %c0_108, %c0_109], %443 {strides = array<i32>} : memref<8x8x128xf32, #tpu.memory_space<vmem>>, vector<1x8x128xf32>,
    %c7_i32 = arith.constant 7 : i32
    %444 = arith.index_cast %c7_i32 : i32 to index
    %c0_110 = arith.constant 0 : index
    %c0_111 = arith.constant 0 : index
    %445 = vector.load %arg14[%444, %c0_110, %c0_111] : memref<8x8x512xf32, #tpu.memory_space<vmem>>, vector<1x8x512xf32>
    %446 = vector.shape_cast %445 : vector<1x8x512xf32> to vector<8x512xf32>
    %447 = arith.truncf %409 : vector<8x128xf32> to vector<8x128xbf16>
    %cst_112 = arith.constant dense<0.000000e+00> : vector<8x512xf32>
    %448 = tpu.matmul %447, %11, %cst_112 {dimension_numbers = #tpu.dot_dimension_numbers<[1], [0], [0], [1], [0, 0, 1, 1], [], []>} : vector<8x128xbf16>, vector<128x512xbf16>, vector<8x512xf32> -> vector<8x512xf32>
    %449 = arith.addf %446, %448 : vector<8x512xf32>
    %450 = vector.extract_strided_slice %449 {offsets = [0, 0], sizes = [8, 128], strides = [1, 1]} : vector<8x512xf32> to vector<8x128xf32>
    %451 = arith.negf %450 : vector<8x128xf32>
    %452 = math.exp %451 : vector<8x128xf32>
    %cst_113 = arith.constant 1.000000e+00 : f32
    %453 = vector.broadcast %cst_113 : f32 to vector<8x128xf32>
    %454 = arith.addf %453, %452 : vector<8x128xf32>
    %455 = arith.divf %453, %454 : vector<8x128xf32>
    %456 = vector.extract_strided_slice %449 {offsets = [0, 128], sizes = [8, 128], strides = [1, 1]} : vector<8x512xf32> to vector<8x128xf32>
    %457 = arith.negf %456 : vector<8x128xf32>
    %458 = math.exp %457 : vector<8x128xf32>
    %cst_114 = arith.constant 1.000000e+00 : f32
    %459 = vector.broadcast %cst_114 : f32 to vector<8x128xf32>
    %460 = arith.addf %459, %458 : vector<8x128xf32>
    %461 = arith.divf %459, %460 : vector<8x128xf32>
    %462 = vector.extract_strided_slice %449 {offsets = [0, 256], sizes = [8, 128], strides = [1, 1]} : vector<8x512xf32> to vector<8x128xf32>
    %463 = math.tanh %462 : vector<8x128xf32>
    %464 = vector.extract_strided_slice %449 {offsets = [0, 384], sizes = [8, 128], strides = [1, 1]} : vector<8x512xf32> to vector<8x128xf32>
    %465 = arith.negf %464 : vector<8x128xf32>
    %466 = math.exp %465 : vector<8x128xf32>
    %cst_115 = arith.constant 1.000000e+00 : f32
    %467 = vector.broadcast %cst_115 : f32 to vector<8x128xf32>
    %468 = arith.addf %467, %466 : vector<8x128xf32>
    %469 = arith.divf %467, %468 : vector<8x128xf32>
    %470 = arith.mulf %461, %407 : vector<8x128xf32>
    %471 = arith.mulf %455, %463 : vector<8x128xf32>
    %472 = arith.addf %470, %471 : vector<8x128xf32>
    %473 = math.tanh %472 : vector<8x128xf32>
    %474 = arith.mulf %469, %473 : vector<8x128xf32>
    %c1_i32_116 = arith.constant 1 : i32
    %475 = arith.subi %c7_i32, %c1_i32_116 : i32
    %476 = tpu.concatenate %409, %439 in 1 : vector<8x128xf32>, vector<8x128xf32> -> vector<8x256xf32>
    %477 = arith.truncf %476 : vector<8x256xf32> to vector<8x256xbf16>
    %cst_117 = arith.constant dense<0.000000e+00> : vector<8x512xf32>
    %478 = tpu.matmul %477, %12, %cst_117 {dimension_numbers = #tpu.dot_dimension_numbers<[1], [0], [0], [1], [0, 0, 1, 1], [], []>} : vector<8x256xbf16>, vector<256x512xbf16>, vector<8x512xf32> -> vector<8x512xf32>
    %479 = arith.addf %478, %15 : vector<8x512xf32>
    %480 = vector.extract_strided_slice %479 {offsets = [0, 0], sizes = [8, 128], strides = [1, 1]} : vector<8x512xf32> to vector<8x128xf32>
    %481 = arith.negf %480 : vector<8x128xf32>
    %482 = math.exp %481 : vector<8x128xf32>
    %cst_118 = arith.constant 1.000000e+00 : f32
    %483 = vector.broadcast %cst_118 : f32 to vector<8x128xf32>
    %484 = arith.addf %483, %482 : vector<8x128xf32>
    %485 = arith.divf %483, %484 : vector<8x128xf32>
    %486 = vector.extract_strided_slice %479 {offsets = [0, 128], sizes = [8, 128], strides = [1, 1]} : vector<8x512xf32> to vector<8x128xf32>
    %487 = arith.negf %486 : vector<8x128xf32>
    %488 = math.exp %487 : vector<8x128xf32>
    %cst_119 = arith.constant 1.000000e+00 : f32
    %489 = vector.broadcast %cst_119 : f32 to vector<8x128xf32>
    %490 = arith.addf %489, %488 : vector<8x128xf32>
    %491 = arith.divf %489, %490 : vector<8x128xf32>
    %492 = vector.extract_strided_slice %479 {offsets = [0, 256], sizes = [8, 128], strides = [1, 1]} : vector<8x512xf32> to vector<8x128xf32>
    %493 = math.tanh %492 : vector<8x128xf32>
    %494 = vector.extract_strided_slice %479 {offsets = [0, 384], sizes = [8, 128], strides = [1, 1]} : vector<8x512xf32> to vector<8x128xf32>
    %495 = arith.negf %494 : vector<8x128xf32>
    %496 = math.exp %495 : vector<8x128xf32>
    %cst_120 = arith.constant 1.000000e+00 : f32
    %497 = vector.broadcast %cst_120 : f32 to vector<8x128xf32>
    %498 = arith.addf %497, %496 : vector<8x128xf32>
    %499 = arith.divf %497, %498 : vector<8x128xf32>
    %500 = arith.mulf %491, %437 : vector<8x128xf32>
    %501 = arith.mulf %485, %493 : vector<8x128xf32>
    %502 = arith.addf %500, %501 : vector<8x128xf32>
    %503 = math.tanh %502 : vector<8x128xf32>
    %504 = arith.mulf %499, %503 : vector<8x128xf32>
    %505 = arith.index_cast %475 : i32 to index
    %c0_121 = arith.constant 0 : index
    %c0_122 = arith.constant 0 : index
    %506 = vector.load %arg13[%505, %c0_121, %c0_122] : memref<8x8x128xf32, #tpu.memory_space<vmem>>, vector<1x8x128xf32>
    %507 = vector.shape_cast %506 : vector<1x8x128xf32> to vector<8x128xf32>
    %508 = vector.shape_cast %504 : vector<8x128xf32> to vector<1x8x128xf32>
    tpu.vector_store %arg13[%505, %c0_121, %c0_122], %508 {strides = array<i32>} : memref<8x8x128xf32, #tpu.memory_space<vmem>>, vector<1x8x128xf32>,
    %c7_i32_123 = arith.constant 7 : i32
    %509 = tpu.concatenate %474, %504 in 1 : vector<8x128xf32>, vector<8x128xf32> -> vector<8x256xf32>
    %510 = arith.truncf %509 : vector<8x256xf32> to vector<8x256xbf16>
    %cst_124 = arith.constant dense<0.000000e+00> : vector<8x512xf32>
    %511 = tpu.matmul %510, %12, %cst_124 {dimension_numbers = #tpu.dot_dimension_numbers<[1], [0], [0], [1], [0, 0, 1, 1], [], []>} : vector<8x256xbf16>, vector<256x512xbf16>, vector<8x512xf32> -> vector<8x512xf32>
    %512 = arith.addf %511, %15 : vector<8x512xf32>
    %513 = vector.extract_strided_slice %512 {offsets = [0, 0], sizes = [8, 128], strides = [1, 1]} : vector<8x512xf32> to vector<8x128xf32>
    %514 = arith.negf %513 : vector<8x128xf32>
    %515 = math.exp %514 : vector<8x128xf32>
    %cst_125 = arith.constant 1.000000e+00 : f32
    %516 = vector.broadcast %cst_125 : f32 to vector<8x128xf32>
    %517 = arith.addf %516, %515 : vector<8x128xf32>
    %518 = arith.divf %516, %517 : vector<8x128xf32>
    %519 = vector.extract_strided_slice %512 {offsets = [0, 128], sizes = [8, 128], strides = [1, 1]} : vector<8x512xf32> to vector<8x128xf32>
    %520 = arith.negf %519 : vector<8x128xf32>
    %521 = math.exp %520 : vector<8x128xf32>
    %cst_126 = arith.constant 1.000000e+00 : f32
    %522 = vector.broadcast %cst_126 : f32 to vector<8x128xf32>
    %523 = arith.addf %522, %521 : vector<8x128xf32>
    %524 = arith.divf %522, %523 : vector<8x128xf32>
    %525 = vector.extract_strided_slice %512 {offsets = [0, 256], sizes = [8, 128], strides = [1, 1]} : vector<8x512xf32> to vector<8x128xf32>
    %526 = math.tanh %525 : vector<8x128xf32>
    %527 = vector.extract_strided_slice %512 {offsets = [0, 384], sizes = [8, 128], strides = [1, 1]} : vector<8x512xf32> to vector<8x128xf32>
    %528 = arith.negf %527 : vector<8x128xf32>
    %529 = math.exp %528 : vector<8x128xf32>
    %cst_127 = arith.constant 1.000000e+00 : f32
    %530 = vector.broadcast %cst_127 : f32 to vector<8x128xf32>
    %531 = arith.addf %530, %529 : vector<8x128xf32>
    %532 = arith.divf %530, %531 : vector<8x128xf32>
    %533 = arith.mulf %524, %502 : vector<8x128xf32>
    %534 = arith.mulf %518, %526 : vector<8x128xf32>
    %535 = arith.addf %533, %534 : vector<8x128xf32>
    %536 = math.tanh %535 : vector<8x128xf32>
    %537 = arith.mulf %532, %536 : vector<8x128xf32>
    %c7 = arith.constant 7 : index
    %c0_128 = arith.constant 0 : index
    %c0_129 = arith.constant 0 : index
    %538 = vector.load %arg13[%c7, %c0_128, %c0_129] : memref<8x8x128xf32, #tpu.memory_space<vmem>>, vector<1x8x128xf32>
    %539 = vector.shape_cast %538 : vector<1x8x128xf32> to vector<8x128xf32>
    %540 = vector.shape_cast %537 : vector<8x128xf32> to vector<1x8x128xf32>
    tpu.vector_store %arg13[%c7, %c0_128, %c0_129], %540 {strides = array<i32>} : memref<8x8x128xf32, #tpu.memory_space<vmem>>, vector<1x8x128xf32>,
    %c0_130 = arith.constant 0 : index
    %c0_131 = arith.constant 0 : index
    %c0_132 = arith.constant 0 : index
    %541 = vector.load %arg11[%c0_130, %c0_131, %c0_132] : memref<2x8x128xf32, #tpu.memory_space<vmem>>, vector<1x8x128xf32>
    %542 = vector.shape_cast %541 : vector<1x8x128xf32> to vector<8x128xf32>
    %543 = vector.shape_cast %474 : vector<8x128xf32> to vector<1x8x128xf32>
    tpu.vector_store %arg11[%c0_130, %c0_131, %c0_132], %543 {strides = array<i32>} : memref<2x8x128xf32, #tpu.memory_space<vmem>>, vector<1x8x128xf32>,
    %c0_133 = arith.constant 0 : index
    %c0_134 = arith.constant 0 : index
    %c0_135 = arith.constant 0 : index
    %544 = vector.load %arg12[%c0_133, %c0_134, %c0_135] : memref<2x8x128xf32, #tpu.memory_space<vmem>>, vector<1x8x128xf32>
    %545 = vector.shape_cast %544 : vector<1x8x128xf32> to vector<8x128xf32>
    %546 = vector.shape_cast %472 : vector<8x128xf32> to vector<1x8x128xf32>
    tpu.vector_store %arg12[%c0_133, %c0_134, %c0_135], %546 {strides = array<i32>} : memref<2x8x128xf32, #tpu.memory_space<vmem>>, vector<1x8x128xf32>,
    %c1_136 = arith.constant 1 : index
    %c0_137 = arith.constant 0 : index
    %c0_138 = arith.constant 0 : index
    %547 = vector.load %arg11[%c1_136, %c0_137, %c0_138] : memref<2x8x128xf32, #tpu.memory_space<vmem>>, vector<1x8x128xf32>
    %548 = vector.shape_cast %547 : vector<1x8x128xf32> to vector<8x128xf32>
    %549 = vector.shape_cast %537 : vector<8x128xf32> to vector<1x8x128xf32>
    tpu.vector_store %arg11[%c1_136, %c0_137, %c0_138], %549 {strides = array<i32>} : memref<2x8x128xf32, #tpu.memory_space<vmem>>, vector<1x8x128xf32>,
    %c1_139 = arith.constant 1 : index
    %c0_140 = arith.constant 0 : index
    %c0_141 = arith.constant 0 : index
    %550 = vector.load %arg12[%c1_139, %c0_140, %c0_141] : memref<2x8x128xf32, #tpu.memory_space<vmem>>, vector<1x8x128xf32>
    %551 = vector.shape_cast %550 : vector<1x8x128xf32> to vector<8x128xf32>
    %552 = vector.shape_cast %535 : vector<8x128xf32> to vector<1x8x128xf32>
    tpu.vector_store %arg12[%c1_139, %c0_140, %c0_141], %552 {strides = array<i32>} : memref<2x8x128xf32, #tpu.memory_space<vmem>>, vector<1x8x128xf32>,
    %c0_142 = arith.constant 0 : index
    %c0_143 = arith.constant 0 : index
    %c0_144 = arith.constant 0 : index
    %553 = vector.load %arg13[%c0_142, %c0_143, %c0_144] : memref<8x8x128xf32, #tpu.memory_space<vmem>>, vector<8x8x128xf32>
    %554 = vector.shape_cast %553 : vector<8x8x128xf32> to vector<64x128xf32>
    %555 = arith.truncf %554 : vector<64x128xf32> to vector<64x128xbf16>
    %c0_145 = arith.constant 0 : index
    %c0_146 = arith.constant 0 : index
    %556 = vector.load %arg6[%c0_145, %c0_146] : memref<128x128xbf16, #tpu.memory_space<vmem>>, vector<128x128xbf16>
    %cst_147 = arith.constant dense<0.000000e+00> : vector<64x128xf32>
    %557 = tpu.matmul %555, %556, %cst_147 {dimension_numbers = #tpu.dot_dimension_numbers<[1], [0], [0], [1], [0, 0, 1, 1], [], []>} : vector<64x128xbf16>, vector<128x128xbf16>, vector<64x128xf32> -> vector<64x128xf32>
    %c0_148 = arith.constant 0 : index
    %c0_149 = arith.constant 0 : index
    %558 = vector.load %arg7[%c0_148, %c0_149] : memref<1x128xf32, #tpu.memory_space<vmem>>, vector<1x128xf32>
    %559 = vector.broadcast %558 : vector<1x128xf32> to vector<64x128xf32>
    %560 = arith.addf %557, %559 : vector<64x128xf32>
    %561 = vector.shape_cast %560 : vector<64x128xf32> to vector<8x8x128xf32>
    %c0_150 = arith.constant 0 : index
    %c0_151 = arith.constant 0 : index
    %c0_152 = arith.constant 0 : index
    %562 = vector.load %arg10[%c0_150, %c0_151, %c0_152] : memref<8x8x128xf32, #tpu.memory_space<vmem>>, vector<8x8x128xf32>
    tpu.vector_store %arg10[%c0_150, %c0_151, %c0_152], %561 {strides = array<i32>} : memref<8x8x128xf32, #tpu.memory_space<vmem>>, vector<8x8x128xf32>,
    return
  }
}

</mosaic_0001>

<bundles_post_ra>
// kernel: lstm_text_generator_forward.1
= control target key start
LH: loop header
LB: loop body
LE: loop exit
PB: predicated region body
PF: predicated region fallthrough
CT: control target
= control target key end

     0   :  { %18 = vsyncpa [#allocation5], 0  ;;  %s5468_s0 = inlined_call_operand.vmem [shape: f32[8,8,1], index: 0, kind: input, shape index: {}]   ;;  %s5469_s1 = inlined_call_operand.vmem [shape: f32[1,512], index: 1, kind: input, shape index: {}]   ;;  %s5470_s2 = inlined_call_operand.hbm [shape: bf16[128,512], index: 2, kind: input, shape index: {}]   ;;  %s5471_s3 = inlined_call_operand.vmem [shape: f32[1,512], index: 3, kind: input, shape index: {}]   ;;  %s5472_s4 = inlined_call_operand.hbm [shape: bf16[256,512], index: 4, kind: input, shape index: {}]   ;;  %s5473_s5 = inlined_call_operand.vmem [shape: f32[1,512], index: 5, kind: input, shape index: {}]   ;;  %s5474_s6 = inlined_call_operand.vmem [shape: bf16[128,128], index: 6, kind: input, shape index: {}]   ;;  %s5475_s7 = inlined_call_operand.vmem [shape: f32[1,128], index: 7, kind: input, shape index: {}]   ;;  %s5476_s8 = inlined_call_operand.vmem [shape: f32[2,8,128], index: 8, kind: input, shape index: {}]   ;;  %s5477_s9 = inlined_call_operand.vmem [shape: f32[2,8,128], index: 9, kind: input, shape index: {}]   ;;  %s5478_s10 = inlined_call_operand.vmem [shape: f32[8,8,128], index: 10, kind: output, shape index: {0}]   ;;  %s5479_s11 = inlined_call_operand.vmem [shape: f32[2,8,128], index: 11, kind: output, shape index: {1}]   ;;  %s5480_s12 = inlined_call_operand.vmem [shape: f32[2,8,128], index: 12, kind: output, shape index: {2}]  }
   0x1   :  { %19 = vsyncpa [#allocation7], 0  ;;  %s3678_s21 = smov [#allocation4]  }
   0x2   :  { %s29_s22 = sshll.u32 %s3678_s21, 4  ;;  %s30_s22 = int_to_ptr.vmem [resolvable:$true] %s29_s22 }
   0x3   :  { %s3642_s23 = scalar_lea.vmem %s30_s22, 4096  ;;  %p3647_p1 = scmp.lt.s32.totalorder %s30_s22, %s30_s22 }
   0x4   :  { %p3643_p0 = scmp.ne.s32.totalorder %s30_s22, %s3642_s23  ;;  %p3648_p2 = scmp.lt.s32.totalorder %s3642_s23, %s3642_s23 }
   0x6   :  { %p3649_p3 = por %p3648_p2, %p3647_p1 }
   0x8   :  { %p3650_p4 = pnand %p3649_p3, %p3643_p0 }
   0xa   :  { %3653 = shalt.err (!%p3650_p4)
}
   0xb   :  { %s3679_s24 = smov 256   ;;  %s3680_s25 = smov 16  }
   0xc   :  { %35 = dma.hbm_to_vmem [thread:$0]  %s5470_s2, 4096, %s30_s22, [#allocation5], %s3679_s24, %s3679_s24, %s3680_s25  }
   0xd   :  { %s3681_s28 = smov [#allocation6]  }
   0xe   :  { %s43_s29 = sshll.u32 %s3681_s28, 4  ;;  %s44_s29 = int_to_ptr.vmem [resolvable:$true] %s43_s29 }
   0xf   :  { %s3662_s30 = scalar_lea.vmem %s44_s29, 8192  ;;  %p3667_p6 = scmp.lt.s32.totalorder %s44_s29, %s44_s29 }
  0x10   :  { %p3663_p5 = scmp.ne.s32.totalorder %s44_s29, %s3662_s30  ;;  %p3668_p7 = scmp.lt.s32.totalorder %s3662_s30, %s3662_s30 }
  0x12   :  { %p3669_p8 = por %p3668_p7, %p3667_p6 }
  0x14   :  { %p3670_p9 = pnand %p3669_p8, %p3663_p5 }
  0x16   :  { %3673 = shalt.err (!%p3670_p9)
}
  0x17   :  { %49 = dma.hbm_to_vmem [thread:$0]  %s5472_s4, 8192, %s44_s29, [#allocation7], %s3679_s24, %s3679_s24, %s3680_s25  }
  0x18   :  { %3674 = dma.done.wait [#allocation5], 4096  }
  0x19   :  { %3675 = vsyncadd [#allocation5], 4294963200 }
  0x1a   :  { %3676 = dma.done.wait [#allocation7], 8192  }
  0x1b   :  { %3677 = vsyncadd [#allocation7], 4294959104  ;;  %v5481_v0 = vmov 0   ;;  %v3758_v1 = vld [vmem:[#allocation4 + $0xe4] ss:$16 sps:$4 sm:$0xff]   ;;  %v68_v17 = vld [vmem:[%s5468_s0 + $0x8] sm:$0xff]  ;;  %v117_v41 = vlaneseq }
  0x1c   :  { %572 = vmatprep.mubr.bf16.mxu1 %v5481_v0  ;;  %3032 = vset.pattern.permute.xlu0 %v5481_v0  ;;  %v3760_v2 = vld [vmem:[#allocation4 + $0xe0] ss:$16 sps:$4 sm:$0xff]   ;;  %v3763_v3 = vld [vmem:[#allocation4 + $0xc4] ss:$16 sps:$4 sm:$0xff]   ;;  %v3828_v21 = vld [vmem:[#allocation4 + $0xec] ss:$16 sps:$4 sm:$0xff]  }
  0x1d   :  { %692 = vmatprep.mubr.bf16.mxu0 %v5481_v0  ;;  %3033 = vset.pattern.permute.xlu1 %v5481_v0  ;;  %v3767_v4 = vld [vmem:[#allocation4 + $0xc0] ss:$16 sps:$4 sm:$0xff]   ;;  %v3771_v5 = vld [vmem:[#allocation4 + $0xa4] ss:$16 sps:$4 sm:$0xff]   ;;  %v3834_v22 = vld [vmem:[#allocation4 + $0xe8] ss:$16 sps:$4 sm:$0xff]  }
  0x1e   :  { %540 = vmatprep.subr.bf16.mxu1 %v3758_v1  ;;  %660 = vmatprep.subr.bf16.mxu0 %v3758_v1  ;;  %v3775_v6 = vld [vmem:[#allocation4 + $0xa0] ss:$16 sps:$4 sm:$0xff]   ;;  %v3779_v7 = vld [vmem:[#allocation4 + $0x84] ss:$16 sps:$4 sm:$0xff]   ;;  %v3839_v25 = vld [vmem:[#allocation4 + $0xcc] ss:$16 sps:$4 sm:$0xff]  }
  0x1f   :  { %541 = vmatpush1.bf16.msra.mxu1 %v3760_v2  ;;  %661 = vmatpush1.bf16.msra.mxu0 %v3760_v2  ;;  %v3783_v8 = vld [vmem:[#allocation4 + $0x80] ss:$16 sps:$4 sm:$0xff]   ;;  %v3787_v9 = vld [vmem:[#allocation4 + $0x64] ss:$16 sps:$4 sm:$0xff]   ;;  %v3844_v26 = vld [vmem:[#allocation4 + $0xc8] ss:$16 sps:$4 sm:$0xff]  }
  0x20   :  { %542 = vmatprep.subr.bf16.mxu1 %v3763_v3  ;;  %662 = vmatprep.subr.bf16.mxu0 %v3763_v3  ;;  %v3791_v10 = vld [vmem:[#allocation4 + $0x60] ss:$16 sps:$4 sm:$0xff]   ;;  %v3795_v11 = vld [vmem:[#allocation4 + $0x44] ss:$16 sps:$4 sm:$0xff]   ;;  %v3846_v27 = vld [vmem:[#allocation4 + $0xac] ss:$16 sps:$4 sm:$0xff]  }
  0x21   :  { %v3799_v12 = vld [vmem:[#allocation4 + $0x40] ss:$16 sps:$4 sm:$0xff]   ;;  %v3803_v13 = vld [vmem:[#allocation4 + $0x24] ss:$16 sps:$4 sm:$0xff]   ;;  %v3851_v28 = vld [vmem:[#allocation4 + $0xa8] ss:$16 sps:$4 sm:$0xff]  }
  0x22   :  { %v67_v14 = vld [vmem:[%s5468_s0] sm:$0xff]  ;;  %v73_v23 = vld [vmem:[%s5468_s0 + $0x30] sm:$0xff]  ;;  %v3853_v29 = vld [vmem:[#allocation4 + $0x8c] ss:$16 sps:$4 sm:$0xff]   ;;  %v118_v42 = vshrl.u32 %v117_v41, 7 }
  0x23   :  { %543 = vmatpush1.bf16.msra.mxu1 %v3767_v4  ;;  %663 = vmatpush1.bf16.msra.mxu0 %v3767_v4  ;;  %v3809_v15 = vld [vmem:[#allocation4 + $0x20] ss:$16 sps:$4 sm:$0xff]   ;;  %v3812_v16 = vld [vmem:[#allocation4 + $0x4] ss:$16 sps:$4 sm:$0xff]   ;;  %v3857_v30 = vld [vmem:[#allocation4 + $0x88] ss:$16 sps:$4 sm:$0xff]  }
  0x24   :  { %544 = vmatprep.subr.bf16.mxu1 %v3771_v5  ;;  %664 = vmatprep.subr.bf16.mxu0 %v3771_v5  ;;  %v3820_v18 = vld [vmem:[#allocation4] ss:$16 sps:$4 sm:$0xff]   ;;  %v3859_v31 = vld [vmem:[#allocation4 + $0x6c] ss:$16 sps:$4 sm:$0xff]   ;;  %v3863_v32 = vld [vmem:[#allocation4 + $0x68] ss:$16 sps:$4 sm:$0xff]  }
  0x25   :  { %78 = vperm.xlu0 %3032, %v67_v14   ;;  %v373_v19 = vld [vmem:[%s5476_s8] sm:$0xff]  ;;  %v3865_v33 = vld [vmem:[#allocation4 + $0x4c] ss:$16 sps:$4 sm:$0xff]   ;;  %v3870_v34 = vld [vmem:[#allocation4 + $0x48] ss:$16 sps:$4 sm:$0xff]   ;;  %v3909_v43 = vsub.s32 1, %v118_v42 }
  0x26   :  { %v71_v20 = vld [vmem:[%s5468_s0 + $0x20] sm:$0xff]  ;;  %v379_v24 = vpack.c.bf16 %v373_v19, %v373_v19  ;;  %v3873_v35 = vld [vmem:[#allocation4 + $0x2c] ss:$16 sps:$4 sm:$0xff]   ;;  %v3876_v36 = vld [vmem:[#allocation4 + $0x28] ss:$16 sps:$4 sm:$0xff]   ;;  %v3914_v45 = vsub.s32 0, %v118_v42 }
  0x27   :  { %545 = vmatpush1.bf16.msra.mxu1 %v3775_v6  ;;  %665 = vmatpush1.bf16.msra.mxu0 %v3775_v6  ;;  %v3879_v37 = vld [vmem:[#allocation4 + $0xc] ss:$16 sps:$4 sm:$0xff]   ;;  %v3882_v38 = vld [vmem:[#allocation4 + $0x8] ss:$16 sps:$4 sm:$0xff]   ;;  %v3903_v39 = vld [vmem:[#allocation6 + $0xe4] ss:$16 sps:$4 sm:$0xff]  }
  0x28   :  { %546 = vmatprep.subr.bf16.mxu1 %v3779_v7  ;;  %666 = vmatprep.subr.bf16.mxu0 %v3779_v7  ;;  %v3905_v40 = vld [vmem:[#allocation6 + $0xec] ss:$16 sps:$4 sm:$0xff]   ;;  %v75_v44 = vld [vmem:[%s5469_s1] sm:$0xf]  ;;  %v3935_v14 = vsub.s32 2, %v118_v42 }
  0x29   :  { %83 = vperm.xlu0 %3032, %v68_v17   ;;  %v3917_v46 = vrot.slane %v75_v44, %v3909_v43  ;;  %v3920_v48 = vrot.slane %v75_v44, %v3914_v45  ;;  %v169_v49 = vld [vmem:[%s5471_s3] sm:$0xf]  ;;  %v3937_v17 = vsub.s32 3, %v118_v42 }
  0x2a   :  { %v3927_v51 = vrot.slane %v169_v49, %v3909_v43  ;;  %v3931_v53 = vrot.slane %v169_v49, %v3914_v45  ;;  %5768 = vst [vmem:[#allocation14_spill] sm:$0xff] %v3935_v14  ;;  %v3940_v19 = vrot.slane %v75_v44, %v3935_v14 }
  0x2b   :  { %547 = vmatpush1.bf16.msra.mxu1 %v3783_v8  ;;  %667 = vmatpush1.bf16.msra.mxu0 %v3783_v8  ;;  %5764 = vst [vmem:[#allocation10_spill] sm:$0xff] %v3917_v46  ;;  %5765 = vst [vmem:[#allocation11_spill] sm:$0xff] %v3920_v48 }
  0x2c   :  { %548 = vmatprep.subr.bf16.mxu1 %v3787_v9  ;;  %668 = vmatprep.subr.bf16.mxu0 %v3787_v9  ;;  %5766 = vst [vmem:[#allocation12_spill] sm:$0xff] %v3927_v51  ;;  %5767 = vst [vmem:[#allocation13_spill] sm:$0xff] %v3931_v53 }
  0x2d   :  { %98 = vperm.xlu0 %3032, %v71_v20   ;;  %5769 = vst [vmem:[#allocation15_spill] sm:$0xff] %v3937_v17  ;;  %5770 = vst [vmem:[#allocation16_spill] sm:$0xff] %v3940_v19  ;;  %v3943_v20 = vrot.slane %v75_v44, %v3937_v17 }
  0x2f   :  { %549 = vmatpush1.bf16.msra.mxu1 %v3791_v10  ;;  %669 = vmatpush1.bf16.msra.mxu0 %v3791_v10  ;;  %5771 = vst [vmem:[#allocation17_spill] sm:$0xff] %v3943_v20 }
  0x30   :  { %550 = vmatprep.subr.bf16.mxu1 %v3795_v11  ;;  %670 = vmatprep.subr.bf16.mxu0 %v3795_v11 }
  0x31   :  { %108 = vperm.xlu0 %3032, %v73_v23  }
  0x33   :  { %551 = vmatpush1.bf16.msra.mxu1 %v3799_v12  ;;  %671 = vmatpush1.bf16.msra.mxu0 %v3799_v12 }
  0x34   :  { %552 = vmatprep.subr.bf16.mxu1 %v3803_v13  ;;  %672 = vmatprep.subr.bf16.mxu0 %v3803_v13 }
  0x37   :  { %553 = vmatpush1.bf16.msra.mxu1 %v3809_v15  ;;  %673 = vmatpush1.bf16.msra.mxu0 %v3809_v15 }
  0x38   :  { %554 = vmatprep.subr.bf16.mxu1 %v3812_v16  ;;  %674 = vmatprep.subr.bf16.mxu0 %v3812_v16 }
  0x3b   :  { %555 = vmatpush1.bf16.msra.mxu1 %v3820_v18  ;;  %675 = vmatpush1.bf16.msra.mxu0 %v3820_v18 }
  0x3c   :  { %581 = vmatprep.subr.bf16.mxu1 %v3828_v21  ;;  %1091 = vmatprep.subr.bf16.mxu0 %v3903_v39 }
  0x3e   :  { %573 = vmatmul.mubr.bf16.vlgmr.msra.gmra.mxu1 %v379_v24 }
  0x3f   :  { %582 = vmatpush1.bf16.msra.mxu1 %v3834_v22  ;;  %613 = vmatprep.mubr.bf16.mxu1 %v5481_v0 }
  0x40   :  { %583 = vmatprep.subr.bf16.mxu1 %v3839_v25 }
  0x43   :  { %584 = vmatpush1.bf16.msra.mxu1 %v3844_v26 }
  0x44   :  { %585 = vmatprep.subr.bf16.mxu1 %v3846_v27 }
  0x47   :  { %586 = vmatpush1.bf16.msra.mxu1 %v3851_v28 }
  0x48   :  { %587 = vmatprep.subr.bf16.mxu1 %v3853_v29 }
  0x4b   :  { %588 = vmatpush1.bf16.msra.mxu1 %v3857_v30 }
  0x4c   :  { %589 = vmatprep.subr.bf16.mxu1 %v3859_v31 }
  0x4f   :  { %590 = vmatpush1.bf16.msra.mxu1 %v3863_v32 }
  0x50   :  { %591 = vmatprep.subr.bf16.mxu1 %v3865_v33 }
  0x53   :  { %592 = vmatpush1.bf16.msra.mxu1 %v3870_v34 }
  0x54   :  { %593 = vmatprep.subr.bf16.mxu1 %v3873_v35 }
  0x57   :  { %594 = vmatpush1.bf16.msra.mxu1 %v3876_v36 }
  0x58   :  { %595 = vmatprep.subr.bf16.mxu1 %v3879_v37 }
  0x5b   :  { %596 = vmatpush1.bf16.msra.mxu1 %v3882_v38 }
  0x5c   :  { %701 = vmatprep.subr.bf16.mxu1 %v3828_v21 }
  0x5e   :  { %614 = vmatmul.mubr.bf16.vlgmr.msra.gmra.mxu1 %v379_v24 }
  0x5f   :  { %702 = vmatpush1.bf16.msra.mxu1 %v3834_v22  ;;  %733 = vmatprep.mubr.bf16.mxu1 %v5481_v0  ;;  %v4010_v0 = vld [vmem:[#allocation6 + $0x6c] ss:$16 sps:$4 sm:$0xff]  }
  0x60   :  { %703 = vmatprep.subr.bf16.mxu1 %v3839_v25  ;;  %5780 = vst [vmem:[#allocation26_spill] sm:$0xff] %v4010_v0 }
  0x63   :  { %704 = vmatpush1.bf16.msra.mxu1 %v3844_v26 }
  0x64   :  { %705 = vmatprep.subr.bf16.mxu1 %v3846_v27 }
  0x67   :  { %706 = vmatpush1.bf16.msra.mxu1 %v3851_v28 }
  0x68   :  { %707 = vmatprep.subr.bf16.mxu1 %v3853_v29 }
  0x6b   :  { %708 = vmatpush1.bf16.msra.mxu1 %v3857_v30 }
  0x6c   :  { %709 = vmatprep.subr.bf16.mxu1 %v3859_v31 }
  0x6f   :  { %710 = vmatpush1.bf16.msra.mxu1 %v3863_v32 }
  0x70   :  { %711 = vmatprep.subr.bf16.mxu1 %v3865_v33 }
  0x73   :  { %712 = vmatpush1.bf16.msra.mxu1 %v3870_v34 }
  0x74   :  { %713 = vmatprep.subr.bf16.mxu1 %v3873_v35 }
  0x77   :  { %714 = vmatpush1.bf16.msra.mxu1 %v3876_v36 }
  0x78   :  { %715 = vmatprep.subr.bf16.mxu1 %v3879_v37 }
  0x7b   :  { %716 = vmatpush1.bf16.msra.mxu1 %v3882_v38 }
  0x7c   :  { %1132 = vmatprep.subr.bf16.mxu1 %v3905_v40 }
  0xa0   :  { %v79_v47 = vpop.permute.xlu0 %78 }
  0xa1   :  { %v138_v50 = vmul.f32 %v3917_v46, %v79_v47  ;;  %v137_v52 = vmul.f32 %v3920_v48, %v79_v47  ;;  %v139_v41 = vmul.f32 %v3940_v19, %v79_v47 }
  0xa3   :  { %v192_v55 = vadd.f32 %v3927_v51, %v138_v50  ;;  %v191_v56 = vadd.f32 %v3931_v53, %v137_v52  ;;  %v3947_v50 = vrot.slane %v169_v49, %v3935_v14  ;;  %v4014_v14 = vld [vmem:[#allocation6 + $0x60] ss:$16 sps:$4 sm:$0xff]  }
  0xa4   :  { %5781 = vst [vmem:[#allocation27_spill] sm:$0xff] %v4014_v14 }
  0xa5   :  { %5772 = vst [vmem:[#allocation18_spill] sm:$0xff] %v3947_v50 }
  0xfe   :  { %v574_v54 = vpop.f32.mrf.mxu1 }
  0xff   :  { %v622_v60 = vadd.f32 %v574_v54, %v191_v56  ;;  %v140_v54 = vmul.f32 %v3943_v20, %v79_v47  ;;  %v193_v56 = vadd.f32 %v3947_v50, %v139_v41 }
 0x100   :  { %v576_v57 = vpop.f32.mrf.mxu1 }
 0x101   :  { %v623_v59 = vadd.f32 %v576_v57, %v192_v55  ;;  %v2866_v63 = vmul.f32 -1.442695, %v622_v60  ;;  %v3951_v55 = vrot.slane %v169_v49, %v3937_v17  ;;  %v374_v49 = vld [vmem:[%s5477_s9] sm:$0xff]  ;;  %v4016_v17 = vld [vmem:[#allocation6 + $0x68] ss:$16 sps:$4 sm:$0xff]  }
 0x102   :  { %v578_v58 = vpop.f32.mrf.mxu1  ;;  %5782 = vst [vmem:[#allocation28_spill] sm:$0xff] %v4016_v17 }
 0x103   :  { %v2867_v62 = vmul.f32 -1.442695, %v623_v59  ;;  %5773 = vst [vmem:[#allocation19_spill] sm:$0xff] %v3951_v55  ;;  %v194_v58 = vadd.f32 %v3951_v55, %v140_v54 }
 0x104   :  { %v579_v61 = vpop.f32.mrf.mxu1 }
 0x105   :  { %3186 = vpow2.f32 %v2867_v62 }
 0x106   :  { %3188 = vpow2.f32 %v2866_v63 }
 0x112   :  { %v3187_v23 = vpop.eup %3186 }
 0x113   :  { %v3189_v24 = vpop.eup %3188  ;;  %v635_v52 = vadd.f32 1.0, %v3187_v23 }
 0x114   :  { %v629_v42 = vadd.f32 1.0, %v3189_v24 }
 0x115   :  { %3190 = vrcp.f32 %v635_v52 }
 0x116   :  { %3192 = vrcp.f32 %v629_v42 }
 0x11e   :  { %v615_v57 = vpop.f32.mrf.mxu1 }
 0x11f   :  { %v624_v44 = vadd.f32 %v615_v57, %v193_v56 }
 0x120   :  { %v617_v59 = vpop.f32.mrf.mxu1 }
 0x121   :  { %3194 = vtanh.f32 %v624_v44  ;;  %v625_v60 = vadd.f32 %v617_v59, %v194_v58  ;;  %v2869_v59 = vld [vmem:[%s5476_s8 + $0x8] sm:$0xff] }
 0x122   :  { %v619_v61 = vpop.f32.mrf.mxu1  ;;  %v3191_v47 = vpop.eup %3190 }
 0x123   :  { %v2868_v62 = vmul.f32 -1.442695, %v625_v60  ;;  %v3193_v23 = vpop.eup %3192  ;;  %v645_v41 = vmul.f32 %v3191_v47, %v374_v49  ;;  %v3964_v60 = vld [vmem:[#allocation6 + $0xe0] ss:$16 sps:$4 sm:$0xff]   ;;  %v3966_v61 = vld [vmem:[#allocation6 + $0xe8] ss:$16 sps:$4 sm:$0xff]   ;;  %v770_v49 = vpack.c.bf16 %v2869_v59, %v2869_v59 }
 0x124   :  { %v620_v63 = vpop.f32.mrf.mxu1  ;;  %v3972_v47 = vld [vmem:[#allocation6 + $0xcc] ss:$16 sps:$4 sm:$0xff]   ;;  %v4004_v59 = vld [vmem:[#allocation6 + $0x88] ss:$16 sps:$4 sm:$0xff]  }
 0x125   :  { %3196 = vpow2.f32 %v2868_v62  ;;  %v3970_v63 = vld [vmem:[#allocation6 + $0xc4] ss:$16 sps:$4 sm:$0xff]   ;;  %5778 = vst [vmem:[#allocation24_spill] sm:$0xff] %v4004_v59 }
 0x12e   :  { %v3195_v24 = vpop.eup %3194 }
 0x12f   :  { %v646_v52 = vmul.f32 %v3195_v24, %v3193_v23  ;;  %v3978_v23 = vld [vmem:[#allocation6 + $0xc0] ss:$16 sps:$4 sm:$0xff]   ;;  %v3980_v24 = vld [vmem:[#allocation6 + $0xc8] ss:$16 sps:$4 sm:$0xff]  }
 0x131   :  { %v3958_v56 = vadd.f32 %v646_v52, %v645_v41  ;;  %v3984_v41 = vld [vmem:[#allocation6 + $0xa4] ss:$16 sps:$4 sm:$0xff]   ;;  %v3986_v52 = vld [vmem:[#allocation6 + $0xac] ss:$16 sps:$4 sm:$0xff]  }
 0x132   :  { %v3197_v54 = vpop.eup %3196 }
 0x133   :  { %v642_v42 = vadd.f32 1.0, %v3197_v54  ;;  %3198 = vtanh.f32 %v3958_v56  ;;  %v3990_v54 = vld [vmem:[#allocation6 + $0xa0] ss:$16 sps:$4 sm:$0xff]  }
 0x135   :  { %3200 = vrcp.f32 %v642_v42  ;;  %v3992_v42 = vld [vmem:[#allocation6 + $0xa8] ss:$16 sps:$4 sm:$0xff]  }
 0x136   :  { %5774 = vst [vmem:[#allocation20_spill] sm:$0xff] %v3992_v42 }
 0x140   :  { %v3199_v57 = vpop.eup %3198 }
 0x142   :  { %v3201_v44 = vpop.eup %3200 }
 0x143   :  { %v649_v58 = vmul.f32 %v3201_v44, %v3199_v57  ;;  %v3996_v57 = vld [vmem:[#allocation6 + $0x84] ss:$16 sps:$4 sm:$0xff]   ;;  %v3998_v44 = vld [vmem:[#allocation6 + $0x8c] ss:$16 sps:$4 sm:$0xff]  }
 0x144   :  { %5775 = vst [vmem:[#allocation21_spill] sm:$0xff] %v3996_v57  ;;  %5776 = vst [vmem:[#allocation22_spill] sm:$0xff] %v3998_v44 }
 0x145   :  { %v3968_v62 = vpack.c.bf16 %v649_v58, %v649_v58  ;;  %v4002_v58 = vld [vmem:[#allocation6 + $0x80] ss:$16 sps:$4 sm:$0xff]  }
 0x146   :  { %5777 = vst [vmem:[#allocation23_spill] sm:$0xff] %v4002_v58 }
 0x147   :  { %693 = vmatmul.mubr.bf16.vlgmr.msra.gmra.mxu0 %v3968_v62  ;;  %734 = vmatmul.mubr.bf16.vlgmr.msra.gmra.mxu1 %v3968_v62 }
 0x148   :  { %1092 = vmatpush1.bf16.msra.mxu0 %v3964_v60  ;;  %1133 = vmatpush1.bf16.msra.mxu1 %v3966_v61 }
 0x149   :  { %1093 = vmatprep.subr.bf16.mxu0 %v3970_v63  ;;  %1134 = vmatprep.subr.bf16.mxu1 %v3972_v47 }
 0x14a   :  { %1123 = vmatprep.mubr.bf16.mxu0 %v770_v49  ;;  %1164 = vmatprep.mubr.bf16.mxu1 %v770_v49  ;;  %v4008_v49 = vld [vmem:[#allocation6 + $0x64] ss:$16 sps:$4 sm:$0xff]  }
 0x14b   :  { %5779 = vst [vmem:[#allocation25_spill] sm:$0xff] %v4008_v49 }
 0x14c   :  { %1094 = vmatpush1.bf16.msra.mxu0 %v3978_v23  ;;  %1135 = vmatpush1.bf16.msra.mxu1 %v3980_v24 }
 0x14d   :  { %1095 = vmatprep.subr.bf16.mxu0 %v3984_v41  ;;  %1136 = vmatprep.subr.bf16.mxu1 %v3986_v52 }
 0x150   :  { %1096 = vmatpush1.bf16.msra.mxu0 %v3990_v54  ;;  %1137 = vmatpush1.bf16.msra.mxu1 %v3992_v42  ;;  %v4020_v42 = vld [vmem:[#allocation6 + $0x44] ss:$16 sps:$4 sm:$0xff]  }
 0x151   :  { %1097 = vmatprep.subr.bf16.mxu0 %v3996_v57  ;;  %1138 = vmatprep.subr.bf16.mxu1 %v3998_v44  ;;  %5783 = vst [vmem:[#allocation29_spill] sm:$0xff] %v4020_v42  ;;  %v4022_v57 = vld [vmem:[#allocation6 + $0x4c] ss:$16 sps:$4 sm:$0xff]   ;;  %v4026_v44 = vld [vmem:[#allocation6 + $0x40] ss:$16 sps:$4 sm:$0xff]  }
 0x152   :  { %5784 = vst [vmem:[#allocation30_spill] sm:$0xff] %v4022_v57  ;;  %5785 = vst [vmem:[#allocation31_spill] sm:$0xff] %v4026_v44 }
 0x154   :  { %1098 = vmatpush1.bf16.msra.mxu0 %v4002_v58  ;;  %1139 = vmatpush1.bf16.msra.mxu1 %v4004_v59  ;;  %v4028_v58 = vld [vmem:[#allocation6 + $0x48] ss:$16 sps:$4 sm:$0xff]   ;;  %v4032_v59 = vld [vmem:[#allocation6 + $0x24] ss:$16 sps:$4 sm:$0xff]  }
 0x155   :  { %1099 = vmatprep.subr.bf16.mxu0 %v4008_v49  ;;  %1140 = vmatprep.subr.bf16.mxu1 %v4010_v0  ;;  %5786 = vst [vmem:[#allocation32_spill] sm:$0xff] %v4028_v58  ;;  %5787 = vst [vmem:[#allocation33_spill] sm:$0xff] %v4032_v59  ;;  %v4034_v49 = vld [vmem:[#allocation6 + $0x2c] ss:$16 sps:$4 sm:$0xff]   ;;  %v4038_v0 = vld [vmem:[#allocation6 + $0x20] ss:$16 sps:$4 sm:$0xff]  }
 0x156   :  { %5788 = vst [vmem:[#allocation34_spill] sm:$0xff] %v4034_v49  ;;  %5789 = vst [vmem:[#allocation35_spill] sm:$0xff] %v4038_v0 }
 0x158   :  { %1100 = vmatpush1.bf16.msra.mxu0 %v4014_v14  ;;  %1141 = vmatpush1.bf16.msra.mxu1 %v4016_v17  ;;  %v4040_v14 = vld [vmem:[#allocation6 + $0x28] ss:$16 sps:$4 sm:$0xff]   ;;  %v4044_v17 = vld [vmem:[#allocation6 + $0x4] ss:$16 sps:$4 sm:$0xff]  }
 0x159   :  { %1101 = vmatprep.subr.bf16.mxu0 %v4020_v42  ;;  %1142 = vmatprep.subr.bf16.mxu1 %v4022_v57  ;;  %5790 = vst [vmem:[#allocation36_spill] sm:$0xff] %v4040_v14  ;;  %5791 = vst [vmem:[#allocation37_spill] sm:$0xff] %v4044_v17  ;;  %v4046_v42 = vld [vmem:[#allocation6 + $0xc] ss:$16 sps:$4 sm:$0xff]   ;;  %v4050_v57 = vld [vmem:[#allocation6] ss:$16 sps:$4 sm:$0xff]  }
 0x15a   :  { %5792 = vst [vmem:[#allocation38_spill] sm:$0xff] %v4046_v42  ;;  %5793 = vst [vmem:[#allocation39_spill] sm:$0xff] %v4050_v57 }
 0x15c   :  { %1102 = vmatpush1.bf16.msra.mxu0 %v4026_v44  ;;  %1143 = vmatpush1.bf16.msra.mxu1 %v4028_v58  ;;  %v4052_v44 = vld [vmem:[#allocation6 + $0x8] ss:$16 sps:$4 sm:$0xff]   ;;  %v4056_v58 = vld [vmem:[#allocation6 + $0x1e4] ss:$16 sps:$4 sm:$0xff]  }
 0x15d   :  { %1103 = vmatprep.subr.bf16.mxu0 %v4032_v59  ;;  %1144 = vmatprep.subr.bf16.mxu1 %v4034_v49  ;;  %5794 = vst [vmem:[#allocation40_spill] sm:$0xff] %v4052_v44  ;;  %5795 = vst [vmem:[#allocation41_spill] sm:$0xff] %v4056_v58  ;;  %v4058_v59 = vld [vmem:[#allocation6 + $0x1ec] ss:$16 sps:$4 sm:$0xff]   ;;  %v4062_v49 = vld [vmem:[#allocation6 + $0x1e0] ss:$16 sps:$4 sm:$0xff]  }
 0x15e   :  { %5796 = vst [vmem:[#allocation42_spill] sm:$0xff] %v4058_v59  ;;  %5797 = vst [vmem:[#allocation43_spill] sm:$0xff] %v4062_v49 }
 0x160   :  { %1104 = vmatpush1.bf16.msra.mxu0 %v4038_v0  ;;  %1145 = vmatpush1.bf16.msra.mxu1 %v4040_v14  ;;  %v4064_v0 = vld [vmem:[#allocation6 + $0x1e8] ss:$16 sps:$4 sm:$0xff]   ;;  %v4068_v14 = vld [vmem:[#allocation6 + $0x1c4] ss:$16 sps:$4 sm:$0xff]  }
 0x161   :  { %1105 = vmatprep.subr.bf16.mxu0 %v4044_v17  ;;  %1146 = vmatprep.subr.bf16.mxu1 %v4046_v42  ;;  %5798 = vst [vmem:[#allocation44_spill] sm:$0xff] %v4064_v0  ;;  %5799 = vst [vmem:[#allocation45_spill] sm:$0xff] %v4068_v14  ;;  %v4070_v17 = vld [vmem:[#allocation6 + $0x1cc] ss:$16 sps:$4 sm:$0xff]   ;;  %v4074_v42 = vld [vmem:[#allocation6 + $0x1c0] ss:$16 sps:$4 sm:$0xff]  }
 0x162   :  { %5800 = vst [vmem:[#allocation46_spill] sm:$0xff] %v4070_v17  ;;  %5801 = vst [vmem:[#allocation47_spill] sm:$0xff] %v4074_v42 }
 0x164   :  { %1106 = vmatpush1.bf16.msra.mxu0 %v4050_v57  ;;  %1147 = vmatpush1.bf16.msra.mxu1 %v4052_v44  ;;  %v4076_v57 = vld [vmem:[#allocation6 + $0x1c8] ss:$16 sps:$4 sm:$0xff]   ;;  %v4080_v44 = vld [vmem:[#allocation6 + $0x1a4] ss:$16 sps:$4 sm:$0xff]  }
 0x165   :  { %1107 = vmatprep.subr.bf16.mxu0 %v4056_v58  ;;  %1148 = vmatprep.subr.bf16.mxu1 %v4058_v59  ;;  %5802 = vst [vmem:[#allocation48_spill] sm:$0xff] %v4076_v57  ;;  %5803 = vst [vmem:[#allocation49_spill] sm:$0xff] %v4080_v44  ;;  %v4082_v58 = vld [vmem:[#allocation6 + $0x1ac] ss:$16 sps:$4 sm:$0xff]   ;;  %v4086_v59 = vld [vmem:[#allocation6 + $0x1a0] ss:$16 sps:$4 sm:$0xff]  }
 0x166   :  { %5804 = vst [vmem:[#allocation50_spill] sm:$0xff] %v4082_v58  ;;  %5805 = vst [vmem:[#allocation51_spill] sm:$0xff] %v4086_v59 }
 0x168   :  { %1108 = vmatpush2.bf16.msra.mxu0 %v4062_v49  ;;  %1149 = vmatpush2.bf16.msra.mxu1 %v4064_v0  ;;  %v4088_v49 = vld [vmem:[#allocation6 + $0x1a8] ss:$16 sps:$4 sm:$0xff]   ;;  %v4092_v0 = vld [vmem:[#allocation6 + $0x184] ss:$16 sps:$4 sm:$0xff]  }
 0x169   :  { %1109 = vmatprep.subr.bf16.mxu0 %v4068_v14  ;;  %1150 = vmatprep.subr.bf16.mxu1 %v4070_v17  ;;  %5806 = vst [vmem:[#allocation52_spill] sm:$0xff] %v4088_v49  ;;  %5807 = vst [vmem:[#allocation53_spill] sm:$0xff] %v4092_v0  ;;  %v4094_v14 = vld [vmem:[#allocation6 + $0x18c] ss:$16 sps:$4 sm:$0xff]   ;;  %v4098_v17 = vld [vmem:[#allocation6 + $0x180] ss:$16 sps:$4 sm:$0xff]  }
 0x16a   :  { %5808 = vst [vmem:[#allocation54_spill] sm:$0xff] %v4094_v14  ;;  %5809 = vst [vmem:[#allocation55_spill] sm:$0xff] %v4098_v17 }
 0x16c   :  { %1110 = vmatpush2.bf16.msra.mxu0 %v4074_v42  ;;  %1151 = vmatpush2.bf16.msra.mxu1 %v4076_v57  ;;  %v4100_v42 = vld [vmem:[#allocation6 + $0x188] ss:$16 sps:$4 sm:$0xff]   ;;  %v4104_v57 = vld [vmem:[#allocation6 + $0x164] ss:$16 sps:$4 sm:$0xff]  }
 0x16d   :  { %1111 = vmatprep.subr.bf16.mxu0 %v4080_v44  ;;  %1152 = vmatprep.subr.bf16.mxu1 %v4082_v58  ;;  %5810 = vst [vmem:[#allocation56_spill] sm:$0xff] %v4100_v42  ;;  %5811 = vst [vmem:[#allocation57_spill] sm:$0xff] %v4104_v57  ;;  %v4106_v44 = vld [vmem:[#allocation6 + $0x16c] ss:$16 sps:$4 sm:$0xff]   ;;  %v4110_v58 = vld [vmem:[#allocation6 + $0x160] ss:$16 sps:$4 sm:$0xff]  }
 0x16e   :  { %5812 = vst [vmem:[#allocation58_spill] sm:$0xff] %v4106_v44  ;;  %5813 = vst [vmem:[#allocation59_spill] sm:$0xff] %v4110_v58 }
 0x170   :  { %1112 = vmatpush2.bf16.msra.mxu0 %v4086_v59  ;;  %1153 = vmatpush2.bf16.msra.mxu1 %v4088_v49  ;;  %v4112_v59 = vld [vmem:[#allocation6 + $0x168] ss:$16 sps:$4 sm:$0xff]   ;;  %v4116_v49 = vld [vmem:[#allocation6 + $0x144] ss:$16 sps:$4 sm:$0xff]  }
 0x171   :  { %1113 = vmatprep.subr.bf16.mxu0 %v4092_v0  ;;  %1154 = vmatprep.subr.bf16.mxu1 %v4094_v14  ;;  %5814 = vst [vmem:[#allocation60_spill] sm:$0xff] %v4112_v59  ;;  %5815 = vst [vmem:[#allocation61_spill] sm:$0xff] %v4116_v49  ;;  %v4118_v0 = vld [vmem:[#allocation6 + $0x14c] ss:$16 sps:$4 sm:$0xff]   ;;  %v4122_v14 = vld [vmem:[#allocation6 + $0x140] ss:$16 sps:$4 sm:$0xff]  }
 0x172   :  { %5816 = vst [vmem:[#allocation62_spill] sm:$0xff] %v4118_v0  ;;  %5817 = vst [vmem:[#allocation63_spill] sm:$0xff] %v4122_v14 }
 0x174   :  { %1114 = vmatpush2.bf16.msra.mxu0 %v4098_v17  ;;  %1155 = vmatpush2.bf16.msra.mxu1 %v4100_v42  ;;  %v4124_v17 = vld [vmem:[#allocation6 + $0x148] ss:$16 sps:$4 sm:$0xff]   ;;  %v4128_v42 = vld [vmem:[#allocation6 + $0x124] ss:$16 sps:$4 sm:$0xff]  }
 0x175   :  { %1115 = vmatprep.subr.bf16.mxu0 %v4104_v57  ;;  %1156 = vmatprep.subr.bf16.mxu1 %v4106_v44  ;;  %5818 = vst [vmem:[#allocation64_spill] sm:$0xff] %v4128_v42  ;;  %v4130_v57 = vld [vmem:[#allocation6 + $0x12c] ss:$16 sps:$4 sm:$0xff]   ;;  %v4134_v44 = vld [vmem:[#allocation6 + $0x120] ss:$16 sps:$4 sm:$0xff]  }
 0x176   :  { %5819 = vst [vmem:[#allocation65_spill] sm:$0xff] %v4130_v57 }
 0x178   :  { %1116 = vmatpush2.bf16.msra.mxu0 %v4110_v58  ;;  %1157 = vmatpush2.bf16.msra.mxu1 %v4112_v59  ;;  %v4136_v58 = vld [vmem:[#allocation6 + $0x128] ss:$16 sps:$4 sm:$0xff]   ;;  %v4140_v59 = vld [vmem:[#allocation6 + $0x104] ss:$16 sps:$4 sm:$0xff]  }
 0x179   :  { %1117 = vmatprep.subr.bf16.mxu0 %v4116_v49  ;;  %1158 = vmatprep.subr.bf16.mxu1 %v4118_v0  ;;  %5820 = vst [vmem:[#allocation66_spill] sm:$0xff] %v4136_v58  ;;  %v4142_v49 = vld [vmem:[#allocation6 + $0x10c] ss:$16 sps:$4 sm:$0xff]   ;;  %v4146_v0 = vld [vmem:[#allocation6 + $0x100] ss:$16 sps:$4 sm:$0xff]  }
 0x17a   :  { %5821 = vst [vmem:[#allocation67_spill] sm:$0xff] %v4142_v49 }
 0x17c   :  { %1118 = vmatpush2.bf16.msra.mxu0 %v4122_v14  ;;  %1159 = vmatpush2.bf16.msra.mxu1 %v4124_v17  ;;  %v4148_v14 = vld [vmem:[#allocation6 + $0x108] ss:$16 sps:$4 sm:$0xff]  }
 0x17d   :  { %1119 = vmatprep.subr.bf16.mxu0 %v4128_v42  ;;  %1160 = vmatprep.subr.bf16.mxu1 %v4130_v57 }
 0x180   :  { %1120 = vmatpush2.bf16.msra.mxu0 %v4134_v44  ;;  %1161 = vmatpush2.bf16.msra.mxu1 %v4136_v58 }
 0x181   :  { %1121 = vmatprep.subr.bf16.mxu0 %v4140_v59  ;;  %1162 = vmatprep.subr.bf16.mxu1 %v4142_v49  ;;  %v5822_v49 = vmov 0  }
 0x184   :  { %1122 = vmatpush2.bf16.msra.mxu0 %v4146_v0  ;;  %1163 = vmatpush2.bf16.msra.mxu1 %v4148_v14 }
 0x185   :  { %1204 = vmatprep.subr.bf16.mxu0 %v3758_v1  ;;  %1245 = vmatprep.subr.bf16.mxu1 %v3828_v21  ;;  %v69_v1 = vld [vmem:[%s5468_s0 + $0x10] sm:$0xff] }
 0x186   :  { %88 = vperm.xlu1 %3033, %v69_v1  }
 0x187   :  { %1124 = vmatmul.mubr.bf16.vlgmr.msra.gmra.mxu0 %v3968_v62  ;;  %1165 = vmatmul.mubr.bf16.vlgmr.msra.gmra.mxu1 %v3968_v62 }
 0x188   :  { %1205 = vmatpush1.bf16.msra.mxu0 %v3760_v2  ;;  %1246 = vmatpush1.bf16.msra.mxu1 %v3834_v22  ;;  %v70_v2 = vld [vmem:[%s5468_s0 + $0x18] sm:$0xff] }
 0x189   :  { %1206 = vmatprep.subr.bf16.mxu0 %v3763_v3  ;;  %1247 = vmatprep.subr.bf16.mxu1 %v3839_v25  ;;  %v84_v3 = vpop.permute.xlu0 %83 }
 0x18a   :  { %1236 = vmatprep.mubr.bf16.mxu0 %v5822_v49  ;;  %1277 = vmatprep.mubr.bf16.mxu1 %v5822_v49 }
 0x18b   :  { %93 = vperm.xlu1 %3033, %v70_v2   ;;  %v143_v2 = vmul.f32 %v3940_v19, %v84_v3 }
 0x18c   :  { %1207 = vmatpush1.bf16.msra.mxu0 %v3767_v4  ;;  %1248 = vmatpush1.bf16.msra.mxu1 %v3844_v26  ;;  %v141_v4 = vmul.f32 %v3920_v48, %v84_v3  ;;  %v144_v26 = vmul.f32 %v3943_v20, %v84_v3 }
 0x18d   :  { %1208 = vmatprep.subr.bf16.mxu0 %v3771_v5  ;;  %1249 = vmatprep.subr.bf16.mxu1 %v3846_v27  ;;  %v72_v5 = vld [vmem:[%s5468_s0 + $0x28] sm:$0xff] }
 0x18e   :  { %v198_v1 = vadd.f32 %v3951_v55, %v144_v26 }
 0x18f   :  { %103 = vperm.xlu1 %3033, %v72_v5   ;;  %v197_v5 = vadd.f32 %v3947_v50, %v143_v2 }
 0x190   :  { %1209 = vmatpush1.bf16.msra.mxu0 %v3775_v6  ;;  %1250 = vmatpush1.bf16.msra.mxu1 %v3851_v28  ;;  %v142_v6 = vmul.f32 %v3917_v46, %v84_v3 }
 0x191   :  { %1210 = vmatprep.subr.bf16.mxu0 %v3779_v7  ;;  %1251 = vmatprep.subr.bf16.mxu1 %v3853_v29  ;;  %v74_v7 = vld [vmem:[%s5468_s0 + $0x38] sm:$0xff] }
 0x193   :  { %113 = vperm.xlu1 %3033, %v74_v7  }
 0x194   :  { %1211 = vmatpush1.bf16.msra.mxu0 %v3783_v8  ;;  %1252 = vmatpush1.bf16.msra.mxu1 %v3857_v30  ;;  %v195_v8 = vadd.f32 %v3931_v53, %v141_v4 }
 0x195   :  { %1212 = vmatprep.subr.bf16.mxu0 %v3787_v9  ;;  %1253 = vmatprep.subr.bf16.mxu1 %v3859_v31 }
 0x198   :  { %1213 = vmatpush1.bf16.msra.mxu0 %v3791_v10  ;;  %1254 = vmatpush1.bf16.msra.mxu1 %v3863_v32 }
 0x199   :  { %1214 = vmatprep.subr.bf16.mxu0 %v3795_v11  ;;  %1255 = vmatprep.subr.bf16.mxu1 %v3865_v33 }
 0x19c   :  { %1215 = vmatpush1.bf16.msra.mxu0 %v3799_v12  ;;  %1256 = vmatpush1.bf16.msra.mxu1 %v3870_v34  ;;  %v196_v12 = vadd.f32 %v3927_v51, %v142_v6 }
 0x19d   :  { %1216 = vmatprep.subr.bf16.mxu0 %v3803_v13  ;;  %1257 = vmatprep.subr.bf16.mxu1 %v3873_v35 }
 0x1a0   :  { %1217 = vmatpush1.bf16.msra.mxu0 %v3809_v15  ;;  %1258 = vmatpush1.bf16.msra.mxu1 %v3876_v36 }
 0x1a1   :  { %1218 = vmatprep.subr.bf16.mxu0 %v3812_v16  ;;  %1259 = vmatprep.subr.bf16.mxu1 %v3879_v37 }
 0x1a4   :  { %1219 = vmatpush1.bf16.msra.mxu0 %v3820_v18  ;;  %1260 = vmatpush1.bf16.msra.mxu1 %v3882_v38 }
 0x1a5   :  { %1315 = vmatprep.subr.bf16.mxu0 %v3903_v39  ;;  %1356 = vmatprep.subr.bf16.mxu1 %v3905_v40 }
 0x207   :  { %v694_v9 = vpop.f32.mrf.mxu0  ;;  %v735_v10 = vpop.f32.mrf.mxu1 }
 0x208   :  { %v742_v11 = vadd.f32 %v694_v9, %v195_v8  ;;  %v744_v8 = vadd.f32 %v735_v10, %v197_v5 }
 0x209   :  { %v696_v13 = vpop.f32.mrf.mxu0  ;;  %v737_v15 = vpop.f32.mrf.mxu1 }
 0x20a   :  { %v2871_v16 = vmul.f32 -1.442695, %v742_v11  ;;  %v743_v18 = vadd.f32 %v696_v13, %v196_v12  ;;  %v745_v4 = vadd.f32 %v737_v15, %v198_v1  ;;  %v351_v1 = vld [vmem:[%s5473_s5] sm:$0xf] }
 0x20b   :  { %v698_v21 = vpop.f32.mrf.mxu0  ;;  %v739_v22 = vpop.f32.mrf.mxu1  ;;  %v4231_v2 = vrot.slane %v351_v1, %v3909_v43 }
 0x20c   :  { %3202 = vpow2.f32 %v2871_v16  ;;  %v2872_v25 = vmul.f32 -1.442695, %v743_v18  ;;  %v2873_v6 = vmul.f32 -1.442695, %v745_v4 }
 0x20d   :  { %v699_v27 = vpop.f32.mrf.mxu0  ;;  %v740_v62 = vpop.f32.mrf.mxu1  ;;  %5824 = vst [vmem:[#allocation69_spill] sm:$0xff] %v4231_v2 }
 0x20e   :  { %3204 = vpow2.f32 %v2872_v25 }
 0x20f   :  { %3206 = vpow2.f32 %v2873_v6 }
 0x219   :  { %v3203_v7 = vpop.eup %3202 }
 0x21a   :  { %v749_v9 = vadd.f32 1.0, %v3203_v7 }
 0x21b   :  { %v3205_v11 = vpop.eup %3204 }
 0x21c   :  { %3208 = vrcp.f32 %v749_v9  ;;  %v755_v12 = vadd.f32 1.0, %v3205_v11  ;;  %v3207_v13 = vpop.eup %3206 }
 0x21d   :  { %3210 = vtanh.f32 %v744_v8  ;;  %v762_v22 = vadd.f32 1.0, %v3207_v13 }
 0x21e   :  { %3212 = vrcp.f32 %v755_v12  ;;  %v5825_v12 = vld [vmem:[#allocation20_spill] sm:$0xff] }
 0x21f   :  { %3214 = vrcp.f32 %v762_v22 }
 0x229   :  { %v3209_v16 = vpop.eup %3208 }
 0x22a   :  { %v3211_v18 = vpop.eup %3210 }
 0x22b   :  { %v3213_v21 = vpop.eup %3212  ;;  %v766_v25 = vmul.f32 %v3211_v18, %v3209_v16  ;;  %v5826_v16 = vld [vmem:[#allocation21_spill] sm:$0xff]  ;;  %v5827_v18 = vld [vmem:[#allocation22_spill] sm:$0xff] }
 0x22c   :  { %v765_v3 = vmul.f32 %v3213_v21, %v3958_v56  ;;  %v3215_v10 = vpop.eup %3214  ;;  %v4226_v56 = vrot.slane %v351_v1, %v3914_v45 }
 0x22e   :  { %v4213_v15 = vadd.f32 %v766_v25, %v765_v3  ;;  %5823 = vst [vmem:[#allocation68_spill] sm:$0xff] %v4226_v56  ;;  %v5828_v25 = vld [vmem:[#allocation15_spill] sm:$0xff] }
 0x22f   :  { %v4244_v3 = vrot.slane %v351_v1, %v5828_v25  ;;  %v5841_v25 = vld [vmem:[#allocation32_spill] sm:$0xff] }
 0x230   :  { %3216 = vtanh.f32 %v4213_v15 }
 0x231   :  { %5829 = vst [vmem:[#allocation20_spill] sm:$0xff] %v4244_v3 }
 0x23d   :  { %v3217_v26 = vpop.eup %3216 }
 0x23e   :  { %v769_v27 = vmul.f32 %v3217_v26, %v3215_v10  ;;  %v5830_v10 = vld [vmem:[#allocation23_spill] sm:$0xff]  ;;  %v5831_v26 = vld [vmem:[#allocation24_spill] sm:$0xff] }
 0x240   :  { %v4216_v62 = vpack.c.bf16 %v769_v27, %v769_v27  ;;  %v5832_v27 = vld [vmem:[#allocation25_spill] sm:$0xff] }
 0x242   :  { %1237 = vmatmul.mubr.bf16.vlgmr.msra.gmra.mxu0 %v4216_v62  ;;  %1278 = vmatmul.mubr.bf16.vlgmr.msra.gmra.mxu1 %v4216_v62 }
 0x243   :  { %1316 = vmatpush1.bf16.msra.mxu0 %v3964_v60  ;;  %1357 = vmatpush1.bf16.msra.mxu1 %v3966_v61 }
 0x244   :  { %1317 = vmatprep.subr.bf16.mxu0 %v3970_v63  ;;  %1358 = vmatprep.subr.bf16.mxu1 %v3972_v47 }
 0x247   :  { %v1125_v4 = vpop.f32.mrf.mxu0  ;;  %v1166_v5 = vpop.f32.mrf.mxu1  ;;  %1318 = vmatpush1.bf16.msra.mxu0 %v3978_v23  ;;  %1359 = vmatpush1.bf16.msra.mxu1 %v3980_v24 }
 0x248   :  { %v1126_v6 = vadd.f32 %v1125_v4, %v4226_v56  ;;  %1319 = vmatprep.subr.bf16.mxu0 %v3984_v41  ;;  %1360 = vmatprep.subr.bf16.mxu1 %v3986_v52  ;;  %v5833_v4 = vld [vmem:[#allocation26_spill] sm:$0xff] }
 0x249   :  { %v1127_v45 = vpop.f32.mrf.mxu0  ;;  %v1168_v7 = vpop.f32.mrf.mxu1 }
 0x24a   :  { %v2938_v8 = vmul.f32 -1.442695, %v1126_v6  ;;  %v1128_v9 = vadd.f32 %v1127_v45, %v4231_v2  ;;  %v1169_v6 = vadd.f32 %v1168_v7, %v4244_v3  ;;  %v5834_v45 = vld [vmem:[#allocation27_spill] sm:$0xff] }
 0x24b   :  { %v1129_v11 = vpop.f32.mrf.mxu0  ;;  %v1170_v43 = vpop.f32.mrf.mxu1  ;;  %1320 = vmatpush1.bf16.msra.mxu0 %v3990_v54  ;;  %1361 = vmatpush1.bf16.msra.mxu1 %v5825_v12 }
 0x24c   :  { %3218 = vpow2.f32 %v2938_v8  ;;  %v2939_v13 = vmul.f32 -1.442695, %v1128_v9  ;;  %1321 = vmatprep.subr.bf16.mxu0 %v5826_v16  ;;  %1362 = vmatprep.subr.bf16.mxu1 %v5827_v18  ;;  %v5835_v8 = vld [vmem:[#allocation28_spill] sm:$0xff]  ;;  %v5836_v9 = vld [vmem:[#allocation29_spill] sm:$0xff]  ;;  %v5837_v11 = vld [vmem:[#allocation30_spill] sm:$0xff] }
 0x24d   :  { %v1130_v21 = vpop.f32.mrf.mxu0  ;;  %v1171_v22 = vpop.f32.mrf.mxu1  ;;  %v5838_v43 = vld [vmem:[#allocation14_spill] sm:$0xff] }
 0x24e   :  { %3220 = vpow2.f32 %v2939_v13  ;;  %v4256_v13 = vrot.slane %v351_v1, %v5838_v43  ;;  %v2940_v21 = vmul.f32 -1.442695, %v1169_v6  ;;  %v5840_v22 = vld [vmem:[#allocation31_spill] sm:$0xff]  ;;  %v5846_v6 = vld [vmem:[#allocation37_spill] sm:$0xff]  ;;  %v5847_v43 = vld [vmem:[#allocation38_spill] sm:$0xff] }
 0x24f   :  { %1322 = vmatpush1.bf16.msra.mxu0 %v5830_v10  ;;  %1363 = vmatpush1.bf16.msra.mxu1 %v5831_v26 }
 0x250   :  { %1323 = vmatprep.subr.bf16.mxu0 %v5832_v27  ;;  %1364 = vmatprep.subr.bf16.mxu1 %v5833_v4  ;;  %5839 = vst [vmem:[#allocation21_spill] sm:$0xff] %v4256_v13  ;;  %v5842_v27 = vld [vmem:[#allocation33_spill] sm:$0xff]  ;;  %v5843_v4 = vld [vmem:[#allocation34_spill] sm:$0xff]  ;;  %v1167_v3 = vadd.f32 %v1166_v5, %v4256_v13  ;;  %3222 = vpow2.f32 %v2940_v21  ;;  %v5852_v21 = vld [vmem:[#allocation43_spill] sm:$0xff] }
 0x251   :  { %v5850_v5 = vld [vmem:[#allocation41_spill] sm:$0xff]  ;;  %v5863_v13 = vld [vmem:[#allocation54_spill] sm:$0xff] }
 0x253   :  { %1324 = vmatpush1.bf16.msra.mxu0 %v5834_v45  ;;  %1365 = vmatpush1.bf16.msra.mxu1 %v5835_v8 }
 0x254   :  { %1325 = vmatprep.subr.bf16.mxu0 %v5836_v9  ;;  %1366 = vmatprep.subr.bf16.mxu1 %v5837_v11  ;;  %v5844_v9 = vld [vmem:[#allocation35_spill] sm:$0xff]  ;;  %v5845_v11 = vld [vmem:[#allocation36_spill] sm:$0xff] }
 0x257   :  { %1326 = vmatpush1.bf16.msra.mxu0 %v5840_v22  ;;  %1367 = vmatpush1.bf16.msra.mxu1 %v5841_v25  ;;  %v5865_v25 = vld [vmem:[#allocation56_spill] sm:$0xff]  ;;  %v5866_v22 = vld [vmem:[#allocation57_spill] sm:$0xff] }
 0x258   :  { %1327 = vmatprep.subr.bf16.mxu0 %v5842_v27  ;;  %1368 = vmatprep.subr.bf16.mxu1 %v5843_v4  ;;  %v5848_v27 = vld [vmem:[#allocation39_spill] sm:$0xff]  ;;  %v5849_v4 = vld [vmem:[#allocation40_spill] sm:$0xff] }
 0x259   :  { %v3219_v7 = vpop.eup %3218 }
 0x25a   :  { %v1176_v8 = vadd.f32 1.0, %v3219_v7  ;;  %v5851_v7 = vld [vmem:[#allocation42_spill] sm:$0xff] }
 0x25b   :  { %v3221_v45 = vpop.eup %3220  ;;  %1328 = vmatpush1.bf16.msra.mxu0 %v5844_v9  ;;  %1369 = vmatpush1.bf16.msra.mxu1 %v5845_v11  ;;  %v5853_v9 = vld [vmem:[#allocation44_spill] sm:$0xff] }
 0x25c   :  { %3224 = vrcp.f32 %v1176_v8  ;;  %v1182_v1 = vadd.f32 1.0, %v3221_v45  ;;  %1329 = vmatprep.subr.bf16.mxu0 %v5846_v6  ;;  %1370 = vmatprep.subr.bf16.mxu1 %v5847_v43  ;;  %v5854_v8 = vld [vmem:[#allocation45_spill] sm:$0xff]  ;;  %v5855_v45 = vld [vmem:[#allocation46_spill] sm:$0xff]  ;;  %v5856_v6 = vld [vmem:[#allocation47_spill] sm:$0xff] }
 0x25d   :  { %3226 = vtanh.f32 %v1167_v3  ;;  %v5857_v3 = vld [vmem:[#allocation48_spill] sm:$0xff] }
 0x25e   :  { %3228 = vrcp.f32 %v1182_v1  ;;  %v3223_v1 = vpop.eup %3222 }
 0x25f   :  { %1330 = vmatpush1.bf16.msra.mxu0 %v5848_v27  ;;  %1371 = vmatpush1.bf16.msra.mxu1 %v5849_v4  ;;  %v5858_v27 = vld [vmem:[#allocation49_spill] sm:$0xff]  ;;  %v5859_v4 = vld [vmem:[#allocation50_spill] sm:$0xff]  ;;  %v1189_v43 = vadd.f32 1.0, %v3223_v1 }
 0x260   :  { %1331 = vmatprep.subr.bf16.mxu0 %v5850_v5  ;;  %1372 = vmatprep.subr.bf16.mxu1 %v5851_v7  ;;  %v5867_v1 = vld [vmem:[#allocation58_spill] sm:$0xff] }
 0x261   :  { %3230 = vrcp.f32 %v1189_v43  ;;  %v5873_v43 = vld [vmem:[#allocation67_spill] sm:$0xff] }
 0x263   :  { %1332 = vmatpush2.bf16.msra.mxu0 %v5852_v21  ;;  %1373 = vmatpush2.bf16.msra.mxu1 %v5853_v9  ;;  %v2870_v21 = vld [vmem:[%s5477_s9 + $0x8] sm:$0xff] }
 0x264   :  { %1333 = vmatprep.subr.bf16.mxu0 %v5854_v8  ;;  %1374 = vmatprep.subr.bf16.mxu1 %v5855_v45  ;;  %v5860_v8 = vld [vmem:[#allocation51_spill] sm:$0xff]  ;;  %v5861_v45 = vld [vmem:[#allocation52_spill] sm:$0xff] }
 0x267   :  { %1334 = vmatpush2.bf16.msra.mxu0 %v5856_v6  ;;  %1375 = vmatpush2.bf16.msra.mxu1 %v5857_v3  ;;  %v5862_v3 = vld [vmem:[#allocation53_spill] sm:$0xff] }
 0x268   :  { %1335 = vmatprep.subr.bf16.mxu0 %v5858_v27  ;;  %1376 = vmatprep.subr.bf16.mxu1 %v5859_v4  ;;  %v5864_v4 = vld [vmem:[#allocation55_spill] sm:$0xff] }
 0x269   :  { %v3225_v5 = vpop.eup %3224 }
 0x26a   :  { %v3227_v7 = vpop.eup %3226 }
 0x26b   :  { %v3229_v9 = vpop.eup %3228  ;;  %1336 = vmatpush2.bf16.msra.mxu0 %v5860_v8  ;;  %1377 = vmatpush2.bf16.msra.mxu1 %v5861_v45  ;;  %v1193_v6 = vmul.f32 %v3227_v7, %v3225_v5  ;;  %v5868_v45 = vld [vmem:[#allocation59_spill] sm:$0xff]  ;;  %v5870_v5 = vld [vmem:[#allocation61_spill] sm:$0xff]  ;;  %v5871_v7 = vld [vmem:[#allocation62_spill] sm:$0xff] }
 0x26c   :  { %v1192_v11 = vmul.f32 %v3229_v9, %v2870_v21  ;;  %1337 = vmatprep.subr.bf16.mxu0 %v5862_v3  ;;  %1378 = vmatprep.subr.bf16.mxu1 %v5863_v13  ;;  %v5869_v9 = vld [vmem:[#allocation60_spill] sm:$0xff] }
 0x26e   :  { %v4286_v27 = vadd.f32 %v1193_v6, %v1192_v11  ;;  %v5872_v11 = vld [vmem:[#allocation63_spill] sm:$0xff]  ;;  %v3231_v6 = vpop.eup %3230 }
 0x26f   :  { %1338 = vmatpush2.bf16.msra.mxu0 %v5864_v4  ;;  %1379 = vmatpush2.bf16.msra.mxu1 %v5865_v25 }
 0x270   :  { %1339 = vmatprep.subr.bf16.mxu0 %v5866_v22  ;;  %1380 = vmatprep.subr.bf16.mxu1 %v5867_v1  ;;  %3232 = vtanh.f32 %v4286_v27 }
 0x273   :  { %1340 = vmatpush2.bf16.msra.mxu0 %v5868_v45  ;;  %1381 = vmatpush2.bf16.msra.mxu1 %v5869_v9 }
 0x274   :  { %1341 = vmatprep.subr.bf16.mxu0 %v5870_v5  ;;  %1382 = vmatprep.subr.bf16.mxu1 %v5871_v7 }
 0x277   :  { %1342 = vmatpush2.bf16.msra.mxu0 %v5872_v11  ;;  %1383 = vmatpush2.bf16.msra.mxu1 %v4124_v17 }
 0x278   :  { %1343 = vmatprep.subr.bf16.mxu0 %v4128_v42  ;;  %1384 = vmatprep.subr.bf16.mxu1 %v4130_v57  ;;  %v4311_v57 = vld [vmem:[#allocation4 + $0xe4] ss:$16 sps:$4 sm:$0xff]  }
 0x279   :  { %5875 = vst [vmem:[#allocation15_spill] sm:$0xff] %v4311_v57 }
 0x27b   :  { %1344 = vmatpush2.bf16.msra.mxu0 %v4134_v44  ;;  %1385 = vmatpush2.bf16.msra.mxu1 %v4136_v58  ;;  %v4314_v58 = vld [vmem:[#allocation4 + $0xec] ss:$16 sps:$4 sm:$0xff]  }
 0x27c   :  { %1345 = vmatprep.subr.bf16.mxu0 %v4140_v59  ;;  %1386 = vmatprep.subr.bf16.mxu1 %v5873_v43 }
 0x27d   :  { %v3233_v21 = vpop.eup %3232 }
 0x27e   :  { %v4305_v5 = vmul.f32 %v3233_v21, %v3231_v6  ;;  %v4319_v6 = vld [vmem:[#allocation4 + $0xe0] ss:$16 sps:$4 sm:$0xff]   ;;  %v4322_v21 = vld [vmem:[#allocation4 + $0xe8] ss:$16 sps:$4 sm:$0xff]  }
 0x27f   :  { %1346 = vmatpush2.bf16.msra.mxu0 %v4146_v0  ;;  %1387 = vmatpush2.bf16.msra.mxu1 %v4148_v14  ;;  %5876 = vst [vmem:[#allocation23_spill] sm:$0xff] %v4322_v21 }
 0x280   :  { %5874 = vst [vmem:[#allocation22_spill] sm:$0xff] %v4305_v5  ;;  %v1314_v42 = vpack.c.bf16 %v4305_v5, %v4305_v5  ;;  %1429 = vmatprep.subr.bf16.mxu0 %v4311_v57  ;;  %1470 = vmatprep.subr.bf16.mxu1 %v4314_v58  ;;  %v4325_v5 = vld [vmem:[#allocation4 + $0xc4] ss:$16 sps:$4 sm:$0xff]   ;;  %v4328_v57 = vld [vmem:[#allocation4 + $0xcc] ss:$16 sps:$4 sm:$0xff]  }
 0x281   :  { %5877 = vst [vmem:[#allocation24_spill] sm:$0xff] %v4325_v5  ;;  %5878 = vst [vmem:[#allocation14_spill] sm:$0xff] %v4328_v57 }
 0x282   :  { %1347 = vmatprep.mubr.bf16.mxu0 %v1314_v42  ;;  %1388 = vmatprep.mubr.bf16.mxu1 %v1314_v42  ;;  %v4333_v42 = vld [vmem:[#allocation4 + $0xc0] ss:$16 sps:$4 sm:$0xff]  }
 0x283   :  { %1348 = vmatmul.mubr.bf16.vlgmr.msra.gmra.mxu0 %v4216_v62  ;;  %1389 = vmatmul.mubr.bf16.vlgmr.msra.gmra.mxu1 %v4216_v62  ;;  %v4336_v62 = vld [vmem:[#allocation4 + $0xc8] ss:$16 sps:$4 sm:$0xff]  }
 0x284   :  { %1430 = vmatpush1.bf16.msra.mxu0 %v4319_v6  ;;  %1471 = vmatpush1.bf16.msra.mxu1 %v4322_v21  ;;  %5879 = vst [vmem:[#allocation51_spill] sm:$0xff] %v4336_v62  ;;  %v4339_v21 = vld [vmem:[#allocation4 + $0xa4] ss:$16 sps:$4 sm:$0xff]  }
 0x285   :  { %1431 = vmatprep.subr.bf16.mxu0 %v4325_v5  ;;  %1472 = vmatprep.subr.bf16.mxu1 %v4328_v57  ;;  %5880 = vst [vmem:[#allocation53_spill] sm:$0xff] %v4339_v21  ;;  %v4342_v5 = vld [vmem:[#allocation4 + $0xac] ss:$16 sps:$4 sm:$0xff]   ;;  %v4345_v57 = vld [vmem:[#allocation4 + $0xa0] ss:$16 sps:$4 sm:$0xff]  }
 0x286   :  { %1461 = vmatprep.mubr.bf16.mxu0 %v5822_v49  ;;  %1502 = vmatprep.mubr.bf16.mxu1 %v5822_v49  ;;  %5881 = vst [vmem:[#allocation54_spill] sm:$0xff] %v4345_v57  ;;  %v4349_v49 = vld [vmem:[#allocation4 + $0x84] ss:$16 sps:$4 sm:$0xff]  }
 0x287   :  { %5882 = vst [vmem:[#allocation55_spill] sm:$0xff] %v4349_v49 }
 0x288   :  { %1432 = vmatpush1.bf16.msra.mxu0 %v4333_v42  ;;  %1473 = vmatpush1.bf16.msra.mxu1 %v4336_v62  ;;  %v4353_v62 = vld [vmem:[#allocation4 + $0x80] ss:$16 sps:$4 sm:$0xff]  }
 0x289   :  { %1433 = vmatprep.subr.bf16.mxu0 %v4339_v21  ;;  %1474 = vmatprep.subr.bf16.mxu1 %v4342_v5  ;;  %5883 = vst [vmem:[#allocation56_spill] sm:$0xff] %v4353_v62  ;;  %v4357_v21 = vld [vmem:[#allocation4 + $0x64] ss:$16 sps:$4 sm:$0xff]  }
 0x28a   :  { %5884 = vst [vmem:[#allocation57_spill] sm:$0xff] %v4357_v21 }
 0x28c   :  { %1434 = vmatpush1.bf16.msra.mxu0 %v4345_v57  ;;  %1475 = vmatpush1.bf16.msra.mxu1 %v3851_v28  ;;  %v4361_v57 = vld [vmem:[#allocation4 + $0x60] ss:$16 sps:$4 sm:$0xff]   ;;  %v4365_v28 = vld [vmem:[#allocation4 + $0x44] ss:$16 sps:$4 sm:$0xff]  }
 0x28d   :  { %1435 = vmatprep.subr.bf16.mxu0 %v4349_v49  ;;  %1476 = vmatprep.subr.bf16.mxu1 %v3853_v29  ;;  %5885 = vst [vmem:[#allocation58_spill] sm:$0xff] %v4361_v57  ;;  %5886 = vst [vmem:[#allocation59_spill] sm:$0xff] %v4365_v28  ;;  %v4369_v29 = vld [vmem:[#allocation4 + $0x40] ss:$16 sps:$4 sm:$0xff]  }
 0x28e   :  { %5887 = vst [vmem:[#allocation60_spill] sm:$0xff] %v4369_v29 }
 0x290   :  { %1436 = vmatpush1.bf16.msra.mxu0 %v4353_v62  ;;  %1477 = vmatpush1.bf16.msra.mxu1 %v3857_v30  ;;  %v4373_v30 = vld [vmem:[#allocation4 + $0x24] ss:$16 sps:$4 sm:$0xff]  }
 0x291   :  { %1437 = vmatprep.subr.bf16.mxu0 %v4357_v21  ;;  %1478 = vmatprep.subr.bf16.mxu1 %v3859_v31  ;;  %5888 = vst [vmem:[#allocation62_spill] sm:$0xff] %v4373_v30  ;;  %v4377_v31 = vld [vmem:[#allocation4 + $0x20] ss:$16 sps:$4 sm:$0xff]  }
 0x292   :  { %5889 = vst [vmem:[#allocation63_spill] sm:$0xff] %v4377_v31 }
 0x294   :  { %1438 = vmatpush1.bf16.msra.mxu0 %v4361_v57  ;;  %1479 = vmatpush1.bf16.msra.mxu1 %v3863_v32  ;;  %v4381_v32 = vld [vmem:[#allocation4 + $0x4] ss:$16 sps:$4 sm:$0xff]  }
 0x295   :  { %1439 = vmatprep.subr.bf16.mxu0 %v4365_v28  ;;  %1480 = vmatprep.subr.bf16.mxu1 %v3865_v33  ;;  %5890 = vst [vmem:[#allocation67_spill] sm:$0xff] %v4381_v32  ;;  %v4385_v33 = vld [vmem:[#allocation4] ss:$16 sps:$4 sm:$0xff]  }
 0x296   :  { %5891 = vst [vmem:[#allocation70_spill] sm:$0xff] %v4385_v33 }
 0x298   :  { %1440 = vmatpush1.bf16.msra.mxu0 %v4369_v29  ;;  %1481 = vmatpush1.bf16.msra.mxu1 %v3870_v34  ;;  %v89_v34 = vpop.permute.xlu1 %88 }
 0x299   :  { %1441 = vmatprep.subr.bf16.mxu0 %v4373_v30  ;;  %1482 = vmatprep.subr.bf16.mxu1 %v3873_v35  ;;  %v145_v35 = vmul.f32 %v3920_v48, %v89_v34 }
 0x29c   :  { %1442 = vmatpush1.bf16.msra.mxu0 %v4377_v31  ;;  %1483 = vmatpush1.bf16.msra.mxu1 %v3876_v36  ;;  %v146_v36 = vmul.f32 %v3917_v46, %v89_v34  ;;  %v199_v31 = vadd.f32 %v3931_v53, %v145_v35 }
 0x29d   :  { %1443 = vmatprep.subr.bf16.mxu0 %v4381_v32  ;;  %1484 = vmatprep.subr.bf16.mxu1 %v3879_v37 }
 0x29e   :  { %v200_v32 = vadd.f32 %v3927_v51, %v146_v36  ;;  %v147_v36 = vmul.f32 %v3940_v19, %v89_v34 }
 0x2a0   :  { %1444 = vmatpush1.bf16.msra.mxu0 %v4385_v33  ;;  %1485 = vmatpush1.bf16.msra.mxu1 %v3882_v38 }
 0x2a1   :  { %1540 = vmatprep.subr.bf16.mxu0 %v3903_v39  ;;  %1581 = vmatprep.subr.bf16.mxu1 %v3905_v40  ;;  %v148_v39 = vmul.f32 %v3943_v20, %v89_v34 }
 0x2a3   :  { %v202_v35 = vadd.f32 %v3951_v55, %v148_v39 }
 0x302   :  { %v1238_v37 = vpop.f32.mrf.mxu0  ;;  %v1279_v30 = vpop.f32.mrf.mxu1 }
 0x303   :  { %v1286_v29 = vadd.f32 %v1238_v37, %v199_v31  ;;  %v201_v31 = vadd.f32 %v3947_v50, %v147_v36 }
 0x304   :  { %v1240_v28 = vpop.f32.mrf.mxu0  ;;  %v1281_v33 = vpop.f32.mrf.mxu1 }
 0x305   :  { %v2941_v57 = vmul.f32 -1.442695, %v1286_v29  ;;  %v1287_v38 = vadd.f32 %v1240_v28, %v200_v32  ;;  %v1289_v51 = vadd.f32 %v1281_v33, %v202_v35  ;;  %v1288_v29 = vadd.f32 %v1279_v30, %v201_v31 }
 0x306   :  { %v1242_v21 = vpop.f32.mrf.mxu0  ;;  %v1283_v40 = vpop.f32.mrf.mxu1 }
 0x307   :  { %3234 = vpow2.f32 %v2941_v57  ;;  %v2942_v62 = vmul.f32 -1.442695, %v1287_v38  ;;  %v2943_v37 = vmul.f32 -1.442695, %v1289_v51 }
 0x308   :  { %v1243_v48 = vpop.f32.mrf.mxu0  ;;  %v1284_v49 = vpop.f32.mrf.mxu1 }
 0x309   :  { %3236 = vpow2.f32 %v2942_v62 }
 0x30a   :  { %3238 = vpow2.f32 %v2943_v37 }
 0x314   :  { %v3235_v53 = vpop.eup %3234 }
 0x315   :  { %v1293_v28 = vadd.f32 1.0, %v3235_v53 }
 0x316   :  { %v3237_v32 = vpop.eup %3236 }
 0x317   :  { %3240 = vrcp.f32 %v1293_v28  ;;  %v1299_v21 = vadd.f32 1.0, %v3237_v32  ;;  %v3239_v48 = vpop.eup %3238  ;;  %v5898_v32 = vld [vmem:[#allocation30_spill] sm:$0xff] }
 0x318   :  { %3242 = vtanh.f32 %v1288_v29  ;;  %v1306_v38 = vadd.f32 1.0, %v3239_v48  ;;  %v5895_v29 = vld [vmem:[#allocation28_spill] sm:$0xff] }
 0x319   :  { %3244 = vrcp.f32 %v1299_v21  ;;  %v5899_v21 = vld [vmem:[#allocation31_spill] sm:$0xff]  ;;  %v5900_v48 = vld [vmem:[#allocation32_spill] sm:$0xff] }
 0x31a   :  { %3246 = vrcp.f32 %v1306_v38 }
 0x324   :  { %v3241_v57 = vpop.eup %3240 }
 0x325   :  { %v3243_v49 = vpop.eup %3242 }
 0x326   :  { %v3245_v62 = vpop.eup %3244  ;;  %v1310_v39 = vmul.f32 %v3243_v49, %v3241_v57  ;;  %v5902_v57 = vld [vmem:[#allocation34_spill] sm:$0xff] }
 0x327   :  { %v1309_v33 = vmul.f32 %v3245_v62, %v4213_v15  ;;  %v3247_v51 = vpop.eup %3246  ;;  %v5903_v62 = vld [vmem:[#allocation21_spill] sm:$0xff] }
 0x329   :  { %v4400_v34 = vadd.f32 %v1310_v39, %v1309_v33  ;;  %v5904_v33 = vld [vmem:[#allocation35_spill] sm:$0xff] }
 0x32b   :  { %3248 = vtanh.f32 %v4400_v34 }
 0x338   :  { %v3249_v53 = vpop.eup %3248 }
 0x339   :  { %v1313_v30 = vmul.f32 %v3249_v53, %v3247_v51  ;;  %v5905_v51 = vld [vmem:[#allocation36_spill] sm:$0xff] }
 0x33b   :  { %v4403_v40 = vpack.c.bf16 %v1313_v30, %v1313_v30  ;;  %v5906_v30 = vld [vmem:[#allocation37_spill] sm:$0xff] }
 0x33d   :  { %1462 = vmatmul.mubr.bf16.vlgmr.msra.gmra.mxu0 %v4403_v40  ;;  %1503 = vmatmul.mubr.bf16.vlgmr.msra.gmra.mxu1 %v4403_v40 }
 0x33e   :  { %1541 = vmatpush1.bf16.msra.mxu0 %v3964_v60  ;;  %1582 = vmatpush1.bf16.msra.mxu1 %v3966_v61 }
 0x33f   :  { %1542 = vmatprep.subr.bf16.mxu0 %v3970_v63  ;;  %1583 = vmatprep.subr.bf16.mxu1 %v3972_v47 }
 0x342   :  { %1543 = vmatpush1.bf16.msra.mxu0 %v3978_v23  ;;  %1584 = vmatpush1.bf16.msra.mxu1 %v3980_v24 }
 0x343   :  { %v1349_v15 = vpop.f32.mrf.mxu0  ;;  %v1390_v35 = vpop.f32.mrf.mxu1  ;;  %1544 = vmatprep.subr.bf16.mxu0 %v3984_v41  ;;  %1585 = vmatprep.subr.bf16.mxu1 %v3986_v52  ;;  %v5892_v52 = vld [vmem:[#allocation25_spill] sm:$0xff] }
 0x344   :  { %v1350_v36 = vadd.f32 %v1349_v15, %v4226_v56  ;;  %v1391_v38 = vadd.f32 %v1390_v35, %v5903_v62  ;;  %v5907_v15 = vld [vmem:[#allocation38_spill] sm:$0xff]  ;;  %v5910_v35 = vld [vmem:[#allocation41_spill] sm:$0xff] }
 0x345   :  { %v1351_v31 = vpop.f32.mrf.mxu0  ;;  %v1392_v60 = vpop.f32.mrf.mxu1 }
 0x346   :  { %v2944_v37 = vmul.f32 -1.442695, %v1350_v36  ;;  %v1352_v61 = vadd.f32 %v1351_v31, %v4231_v2  ;;  %1545 = vmatpush1.bf16.msra.mxu0 %v3990_v54  ;;  %1586 = vmatpush1.bf16.msra.mxu1 %v5825_v12  ;;  %v5893_v54 = vld [vmem:[#allocation26_spill] sm:$0xff]  ;;  %v5894_v12 = vld [vmem:[#allocation27_spill] sm:$0xff] }
 0x347   :  { %v1353_v63 = vpop.f32.mrf.mxu0  ;;  %v1394_v47 = vpop.f32.mrf.mxu1  ;;  %1546 = vmatprep.subr.bf16.mxu0 %v5826_v16  ;;  %1587 = vmatprep.subr.bf16.mxu1 %v5827_v18  ;;  %v5896_v16 = vld [vmem:[#allocation20_spill] sm:$0xff]  ;;  %v5897_v18 = vld [vmem:[#allocation29_spill] sm:$0xff]  ;;  %v5908_v31 = vld [vmem:[#allocation39_spill] sm:$0xff] }
 0x348   :  { %3250 = vpow2.f32 %v2944_v37  ;;  %v2945_v23 = vmul.f32 -1.442695, %v1352_v61  ;;  %v1393_v28 = vadd.f32 %v1392_v60, %v5896_v16  ;;  %v5909_v60 = vld [vmem:[#allocation40_spill] sm:$0xff]  ;;  %v5911_v37 = vld [vmem:[#allocation42_spill] sm:$0xff]  ;;  %v5912_v61 = vld [vmem:[#allocation43_spill] sm:$0xff] }
 0x349   :  { %v1354_v24 = vpop.f32.mrf.mxu0  ;;  %v1395_v41 = vpop.f32.mrf.mxu1  ;;  %v5913_v63 = vld [vmem:[#allocation44_spill] sm:$0xff]  ;;  %v5914_v47 = vld [vmem:[#allocation45_spill] sm:$0xff] }
 0x34a   :  { %3252 = vpow2.f32 %v2945_v23  ;;  %1547 = vmatpush1.bf16.msra.mxu0 %v5830_v10  ;;  %1588 = vmatpush1.bf16.msra.mxu1 %v5831_v26  ;;  %v2946_v10 = vmul.f32 -1.442695, %v1393_v28  ;;  %v5901_v26 = vld [vmem:[#allocation33_spill] sm:$0xff]  ;;  %v5915_v23 = vld [vmem:[#allocation46_spill] sm:$0xff]  ;;  %v5916_v24 = vld [vmem:[#allocation47_spill] sm:$0xff] }
 0x34b   :  { %1548 = vmatprep.subr.bf16.mxu0 %v5892_v52  ;;  %1589 = vmatprep.subr.bf16.mxu1 %v5893_v54  ;;  %v5917_v41 = vld [vmem:[#allocation48_spill] sm:$0xff]  ;;  %v5918_v52 = vld [vmem:[#allocation49_spill] sm:$0xff]  ;;  %v5919_v54 = vld [vmem:[#allocation50_spill] sm:$0xff] }
 0x34c   :  { %3254 = vpow2.f32 %v2946_v10 }
 0x34e   :  { %1549 = vmatpush1.bf16.msra.mxu0 %v5894_v12  ;;  %1590 = vmatpush1.bf16.msra.mxu1 %v5895_v29 }
 0x34f   :  { %1550 = vmatprep.subr.bf16.mxu0 %v5897_v18  ;;  %1591 = vmatprep.subr.bf16.mxu1 %v5898_v32  ;;  %v5920_v18 = vld [vmem:[#allocation52_spill] sm:$0xff] }
 0x352   :  { %1551 = vmatpush1.bf16.msra.mxu0 %v5899_v21  ;;  %1592 = vmatpush1.bf16.msra.mxu1 %v5900_v48 }
 0x353   :  { %1552 = vmatprep.subr.bf16.mxu0 %v5901_v26  ;;  %1593 = vmatprep.subr.bf16.mxu1 %v5902_v57  ;;  %v5935_v57 = vld [vmem:[#allocation56_spill] sm:$0xff] }
 0x355   :  { %v3251_v49 = vpop.eup %3250 }
 0x356   :  { %v1400_v39 = vadd.f32 1.0, %v3251_v49  ;;  %1553 = vmatpush1.bf16.msra.mxu0 %v5904_v33  ;;  %1594 = vmatpush1.bf16.msra.mxu1 %v5905_v51  ;;  %v4504_v49 = vld [vmem:[#allocation4 + $0x88] ss:$16 sps:$4 sm:$0xff]   ;;  %v5937_v33 = vld [vmem:[#allocation58_spill] sm:$0xff] }
 0x357   :  { %v3253_v53 = vpop.eup %3252  ;;  %1554 = vmatprep.subr.bf16.mxu0 %v5906_v30  ;;  %1595 = vmatprep.subr.bf16.mxu1 %v5907_v15  ;;  %v4512_v51 = vld [vmem:[#allocation4 + $0x68] ss:$16 sps:$4 sm:$0xff]   ;;  %v4516_v30 = vld [vmem:[#allocation4 + $0x4c] ss:$16 sps:$4 sm:$0xff]   ;;  %v5939_v15 = vld [vmem:[#allocation60_spill] sm:$0xff] }
 0x358   :  { %3256 = vrcp.f32 %v1400_v39  ;;  %v1406_v36 = vadd.f32 1.0, %v3253_v53  ;;  %v4508_v39 = vld [vmem:[#allocation4 + $0x6c] ss:$16 sps:$4 sm:$0xff]  }
 0x359   :  { %3258 = vtanh.f32 %v1391_v38  ;;  %v3255_v12 = vpop.eup %3254  ;;  %v5936_v38 = vld [vmem:[#allocation57_spill] sm:$0xff]  ;;  %v5938_v53 = vld [vmem:[#allocation59_spill] sm:$0xff] }
 0x35a   :  { %3260 = vrcp.f32 %v1406_v36  ;;  %1555 = vmatpush1.bf16.msra.mxu0 %v5908_v31  ;;  %1596 = vmatpush1.bf16.msra.mxu1 %v5909_v60  ;;  %v1413_v21 = vadd.f32 1.0, %v3255_v12  ;;  %v4520_v36 = vld [vmem:[#allocation4 + $0x48] ss:$16 sps:$4 sm:$0xff]   ;;  %v5940_v31 = vld [vmem:[#allocation62_spill] sm:$0xff]  ;;  %v4524_v60 = vld [vmem:[#allocation4 + $0x2c] ss:$16 sps:$4 sm:$0xff]  }
 0x35b   :  { %1556 = vmatprep.subr.bf16.mxu0 %v5910_v35  ;;  %1597 = vmatprep.subr.bf16.mxu1 %v5911_v37  ;;  %v5941_v35 = vld [vmem:[#allocation63_spill] sm:$0xff] }
 0x35c   :  { %3262 = vrcp.f32 %v1413_v21  ;;  %v4528_v37 = vld [vmem:[#allocation4 + $0x28] ss:$16 sps:$4 sm:$0xff]  }
 0x35e   :  { %1557 = vmatpush2.bf16.msra.mxu0 %v5912_v61  ;;  %1598 = vmatpush2.bf16.msra.mxu1 %v5913_v63  ;;  %v5942_v61 = vld [vmem:[#allocation67_spill] sm:$0xff] }
 0x35f   :  { %1558 = vmatprep.subr.bf16.mxu0 %v5914_v47  ;;  %1599 = vmatprep.subr.bf16.mxu1 %v5915_v23  ;;  %v4532_v63 = vld [vmem:[#allocation4 + $0xc] ss:$16 sps:$4 sm:$0xff]   ;;  %v5943_v47 = vld [vmem:[#allocation70_spill] sm:$0xff]  ;;  %v4536_v23 = vld [vmem:[#allocation4 + $0x8] ss:$16 sps:$4 sm:$0xff]  }
 0x362   :  { %1559 = vmatpush2.bf16.msra.mxu0 %v5916_v24  ;;  %1600 = vmatpush2.bf16.msra.mxu1 %v5917_v41  ;;  %v4539_v24 = vld [vmem:[#allocation6 + $0xe4] ss:$16 sps:$4 sm:$0xff]   ;;  %v4542_v41 = vld [vmem:[#allocation6 + $0xec] ss:$16 sps:$4 sm:$0xff]  }
 0x363   :  { %1560 = vmatprep.subr.bf16.mxu0 %v5918_v52  ;;  %1601 = vmatprep.subr.bf16.mxu1 %v5919_v54  ;;  %5944 = vst [vmem:[#allocation26_spill] sm:$0xff] %v4539_v24  ;;  %5945 = vst [vmem:[#allocation27_spill] sm:$0xff] %v4542_v41  ;;  %v94_v52 = vpop.permute.xlu1 %93  ;;  %v5946_v54 = vld [vmem:[#allocation11_spill] sm:$0xff] }
 0x364   :  { %v149_v12 = vmul.f32 %v5946_v54, %v94_v52 }
 0x365   :  { %v3257_v29 = vpop.eup %3256 }
 0x366   :  { %v3259_v28 = vpop.eup %3258  ;;  %1561 = vmatpush2.bf16.msra.mxu0 %v5860_v8  ;;  %1602 = vmatpush2.bf16.msra.mxu1 %v5920_v18 }
 0x367   :  { %v3261_v32 = vpop.eup %3260  ;;  %1562 = vmatprep.subr.bf16.mxu0 %v5862_v3  ;;  %1603 = vmatprep.subr.bf16.mxu1 %v5863_v13  ;;  %v1417_v48 = vmul.f32 %v3259_v28, %v3257_v29  ;;  %v5921_v13 = vld [vmem:[#allocation61_spill] sm:$0xff]  ;;  %v5930_v3 = vmov 0   ;;  %v150_v29 = vmul.f32 %v3917_v46, %v94_v52 }
 0x368   :  { %v1416_v10 = vmul.f32 %v3261_v32, %v4286_v27  ;;  %v5922_v27 = vld [vmem:[#allocation64_spill] sm:$0xff]  ;;  %v5947_v28 = vld [vmem:[#allocation13_spill] sm:$0xff] }
 0x369   :  { %v203_v18 = vadd.f32 %v5947_v28, %v149_v12  ;;  %v151_v28 = vmul.f32 %v3940_v19, %v94_v52 }
 0x36a   :  { %v4456_v26 = vadd.f32 %v1417_v48, %v1416_v10  ;;  %1563 = vmatpush2.bf16.msra.mxu0 %v5864_v4  ;;  %1604 = vmatpush2.bf16.msra.mxu1 %v5865_v25  ;;  %v5923_v4 = vld [vmem:[#allocation65_spill] sm:$0xff]  ;;  %v3263_v25 = vpop.eup %3262  ;;  %v5948_v10 = vld [vmem:[#allocation12_spill] sm:$0xff] }
 0x36b   :  { %1564 = vmatprep.subr.bf16.mxu0 %v5866_v22  ;;  %1605 = vmatprep.subr.bf16.mxu1 %v5867_v1  ;;  %v5924_v22 = vld [vmem:[#allocation66_spill] sm:$0xff]  ;;  %v5931_v1 = vld [vmem:[#allocation51_spill] sm:$0xff] }
 0x36c   :  { %3264 = vtanh.f32 %v4456_v26 }
 0x36e   :  { %1565 = vmatpush2.bf16.msra.mxu0 %v5868_v45  ;;  %1606 = vmatpush2.bf16.msra.mxu1 %v5869_v9  ;;  %v5932_v9 = vld [vmem:[#allocation53_spill] sm:$0xff] }
 0x36f   :  { %1566 = vmatprep.subr.bf16.mxu0 %v5921_v13  ;;  %1607 = vmatprep.subr.bf16.mxu1 %v5871_v7  ;;  %v5933_v7 = vld [vmem:[#allocation54_spill] sm:$0xff]  ;;  %v204_v13 = vadd.f32 %v5948_v10, %v150_v29  ;;  %v205_v29 = vadd.f32 %v3947_v50, %v151_v28 }
 0x372   :  { %1567 = vmatpush2.bf16.msra.mxu0 %v5872_v11  ;;  %1608 = vmatpush2.bf16.msra.mxu1 %v4124_v17  ;;  %v5926_v17 = vld [vmem:[#allocation15_spill] sm:$0xff] }
 0x373   :  { %1568 = vmatprep.subr.bf16.mxu0 %v5922_v27  ;;  %1609 = vmatprep.subr.bf16.mxu1 %v5923_v4  ;;  %v4496_v11 = vld [vmem:[#allocation4 + $0xa8] ss:$16 sps:$4 sm:$0xff]  }
 0x376   :  { %1569 = vmatpush2.bf16.msra.mxu0 %v4134_v44  ;;  %1610 = vmatpush2.bf16.msra.mxu1 %v5924_v22 }
 0x377   :  { %1570 = vmatprep.subr.bf16.mxu0 %v4140_v59  ;;  %1611 = vmatprep.subr.bf16.mxu1 %v5873_v43  ;;  %v5929_v59 = vld [vmem:[#allocation14_spill] sm:$0xff]  ;;  %v5934_v43 = vld [vmem:[#allocation55_spill] sm:$0xff] }
 0x379   :  { %v3265_v8 = vpop.eup %3264 }
 0x37a   :  { %1571 = vmatpush2.bf16.msra.mxu0 %v4146_v0  ;;  %1612 = vmatpush2.bf16.msra.mxu1 %v4148_v14  ;;  %v4477_v45 = vmul.f32 %v3265_v8, %v3263_v25  ;;  %v5927_v0 = vld [vmem:[#allocation23_spill] sm:$0xff]  ;;  %v5928_v14 = vld [vmem:[#allocation24_spill] sm:$0xff] }
 0x37b   :  { %1654 = vmatprep.subr.bf16.mxu0 %v5926_v17  ;;  %1695 = vmatprep.subr.bf16.mxu1 %v4314_v58 }
 0x37c   :  { %5925 = vst [vmem:[#allocation25_spill] sm:$0xff] %v4477_v45  ;;  %v1539_v44 = vpack.c.bf16 %v4477_v45, %v4477_v45 }
 0x37e   :  { %1572 = vmatprep.mubr.bf16.mxu0 %v1539_v44  ;;  %1613 = vmatprep.mubr.bf16.mxu1 %v1539_v44 }
 0x37f   :  { %1573 = vmatmul.mubr.bf16.vlgmr.msra.gmra.mxu0 %v4403_v40  ;;  %1614 = vmatmul.mubr.bf16.vlgmr.msra.gmra.mxu1 %v4403_v40  ;;  %v4500_v40 = vld [vmem:[#allocation4 + $0x8c] ss:$16 sps:$4 sm:$0xff]  }
 0x380   :  { %1655 = vmatpush1.bf16.msra.mxu0 %v4319_v6  ;;  %1696 = vmatpush1.bf16.msra.mxu1 %v5927_v0 }
 0x381   :  { %1656 = vmatprep.subr.bf16.mxu0 %v5928_v14  ;;  %1697 = vmatprep.subr.bf16.mxu1 %v5929_v59 }
 0x382   :  { %1686 = vmatprep.mubr.bf16.mxu0 %v5930_v3  ;;  %1727 = vmatprep.mubr.bf16.mxu1 %v5930_v3 }
 0x384   :  { %1657 = vmatpush1.bf16.msra.mxu0 %v4333_v42  ;;  %1698 = vmatpush1.bf16.msra.mxu1 %v5931_v1 }
 0x385   :  { %1658 = vmatprep.subr.bf16.mxu0 %v5932_v9  ;;  %1699 = vmatprep.subr.bf16.mxu1 %v4342_v5 }
 0x388   :  { %1659 = vmatpush1.bf16.msra.mxu0 %v5933_v7  ;;  %1700 = vmatpush1.bf16.msra.mxu1 %v4496_v11 }
 0x389   :  { %1660 = vmatprep.subr.bf16.mxu0 %v5934_v43  ;;  %1701 = vmatprep.subr.bf16.mxu1 %v4500_v40 }
 0x38c   :  { %1661 = vmatpush1.bf16.msra.mxu0 %v5935_v57  ;;  %1702 = vmatpush1.bf16.msra.mxu1 %v4504_v49 }
 0x38d   :  { %1662 = vmatprep.subr.bf16.mxu0 %v5936_v38  ;;  %1703 = vmatprep.subr.bf16.mxu1 %v4508_v39 }
 0x390   :  { %1663 = vmatpush1.bf16.msra.mxu0 %v5937_v33  ;;  %1704 = vmatpush1.bf16.msra.mxu1 %v4512_v51 }
 0x391   :  { %1664 = vmatprep.subr.bf16.mxu0 %v5938_v53  ;;  %1705 = vmatprep.subr.bf16.mxu1 %v4516_v30 }
 0x394   :  { %1665 = vmatpush1.bf16.msra.mxu0 %v5939_v15  ;;  %1706 = vmatpush1.bf16.msra.mxu1 %v4520_v36 }
 0x395   :  { %1666 = vmatprep.subr.bf16.mxu0 %v5940_v31  ;;  %1707 = vmatprep.subr.bf16.mxu1 %v4524_v60 }
 0x398   :  { %1667 = vmatpush1.bf16.msra.mxu0 %v5941_v35  ;;  %1708 = vmatpush1.bf16.msra.mxu1 %v4528_v37 }
 0x399   :  { %1668 = vmatprep.subr.bf16.mxu0 %v5942_v61  ;;  %1709 = vmatprep.subr.bf16.mxu1 %v4532_v63 }
 0x39c   :  { %1669 = vmatpush1.bf16.msra.mxu0 %v5943_v47  ;;  %1710 = vmatpush1.bf16.msra.mxu1 %v4536_v23 }
 0x39d   :  { %1765 = vmatprep.subr.bf16.mxu0 %v4539_v24  ;;  %1806 = vmatprep.subr.bf16.mxu1 %v4542_v41  ;;  %v152_v41 = vmul.f32 %v3943_v20, %v94_v52 }
 0x39f   :  { %v206_v12 = vadd.f32 %v3951_v55, %v152_v41 }
 0x3fd   :  { %v1463_v32 = vpop.f32.mrf.mxu0  ;;  %v1504_v21 = vpop.f32.mrf.mxu1 }
 0x3fe   :  { %v1511_v48 = vadd.f32 %v1463_v32, %v203_v18 }
 0x3ff   :  { %v1465_v27 = vpop.f32.mrf.mxu0  ;;  %v1506_v4 = vpop.f32.mrf.mxu1 }
 0x400   :  { %v2947_v22 = vmul.f32 -1.442695, %v1511_v48  ;;  %v1512_v25 = vadd.f32 %v1465_v27, %v204_v13  ;;  %v1514_v18 = vadd.f32 %v1506_v4, %v206_v12  ;;  %v1513_v48 = vadd.f32 %v1504_v21, %v205_v29  ;;  %v4561_v12 = vld [vmem:[#allocation6 + $0xe0] ss:$16 sps:$4 sm:$0xff]   ;;  %v4570_v29 = vld [vmem:[#allocation6 + $0xcc] ss:$16 sps:$4 sm:$0xff]  }
 0x401   :  { %v1467_v8 = vpop.f32.mrf.mxu0  ;;  %v1508_v44 = vpop.f32.mrf.mxu1 }
 0x402   :  { %3266 = vpow2.f32 %v2947_v22  ;;  %v2948_v45 = vmul.f32 -1.442695, %v1512_v25  ;;  %v2949_v32 = vmul.f32 -1.442695, %v1514_v18  ;;  %v4564_v18 = vld [vmem:[#allocation6 + $0xe8] ss:$16 sps:$4 sm:$0xff]  }
 0x403   :  { %v1468_v54 = vpop.f32.mrf.mxu0  ;;  %v1509_v24 = vpop.f32.mrf.mxu1 }
 0x404   :  { %3268 = vpow2.f32 %v2948_v45 }
 0x405   :  { %3270 = vpow2.f32 %v2949_v32  ;;  %v4573_v32 = vld [vmem:[#allocation6 + $0xc0] ss:$16 sps:$4 sm:$0xff]  }
 0x40f   :  { %v3267_v10 = vpop.eup %3266 }
 0x410   :  { %v1518_v13 = vadd.f32 1.0, %v3267_v10 }
 0x411   :  { %v3269_v27 = vpop.eup %3268 }
 0x412   :  { %3272 = vrcp.f32 %v1518_v13  ;;  %v1524_v22 = vadd.f32 1.0, %v3269_v27  ;;  %v3271_v54 = vpop.eup %3270  ;;  %v4579_v13 = vld [vmem:[#allocation6 + $0xa4] ss:$16 sps:$4 sm:$0xff]   ;;  %v4582_v27 = vld [vmem:[#allocation6 + $0xac] ss:$16 sps:$4 sm:$0xff]  }
 0x413   :  { %3274 = vtanh.f32 %v1513_v48  ;;  %v1531_v41 = vadd.f32 1.0, %v3271_v54  ;;  %v4576_v48 = vld [vmem:[#allocation6 + $0xc8] ss:$16 sps:$4 sm:$0xff]   ;;  %5950 = vst [vmem:[#allocation29_spill] sm:$0xff] %v4579_v13  ;;  %5951 = vst [vmem:[#allocation30_spill] sm:$0xff] %v4582_v27 }
 0x414   :  { %3276 = vrcp.f32 %v1524_v22  ;;  %5949 = vst [vmem:[#allocation28_spill] sm:$0xff] %v4576_v48 }
 0x415   :  { %3278 = vrcp.f32 %v1531_v41  ;;  %v4586_v41 = vld [vmem:[#allocation6 + $0xa0] ss:$16 sps:$4 sm:$0xff]  }
 0x416   :  { %5952 = vst [vmem:[#allocation31_spill] sm:$0xff] %v4586_v41 }
 0x41f   :  { %v3273_v24 = vpop.eup %3272 }
 0x420   :  { %v3275_v45 = vpop.eup %3274 }
 0x421   :  { %v3277_v25 = vpop.eup %3276  ;;  %v1535_v8 = vmul.f32 %v3275_v45, %v3273_v24 }
 0x422   :  { %v1534_v52 = vmul.f32 %v3277_v25, %v4400_v34  ;;  %v3279_v28 = vpop.eup %3278  ;;  %v4567_v34 = vld [vmem:[#allocation6 + $0xc4] ss:$16 sps:$4 sm:$0xff]  }
 0x424   :  { %v4554_v4 = vadd.f32 %v1535_v8, %v1534_v52  ;;  %v4589_v8 = vld [vmem:[#allocation6 + $0xa8] ss:$16 sps:$4 sm:$0xff]  }
 0x426   :  { %3280 = vtanh.f32 %v4554_v4 }
 0x433   :  { %v3281_v21 = vpop.eup %3280 }
 0x434   :  { %v1538_v10 = vmul.f32 %v3281_v21, %v3279_v28  ;;  %v4593_v21 = vld [vmem:[#allocation6 + $0x84] ss:$16 sps:$4 sm:$0xff]  }
 0x436   :  { %v4557_v44 = vpack.c.bf16 %v1538_v10, %v1538_v10  ;;  %v4596_v10 = vld [vmem:[#allocation6 + $0x8c] ss:$16 sps:$4 sm:$0xff]  }
 0x438   :  { %1687 = vmatmul.mubr.bf16.vlgmr.msra.gmra.mxu0 %v4557_v44  ;;  %1728 = vmatmul.mubr.bf16.vlgmr.msra.gmra.mxu1 %v4557_v44 }
 0x439   :  { %1766 = vmatpush1.bf16.msra.mxu0 %v4561_v12  ;;  %1807 = vmatpush1.bf16.msra.mxu1 %v4564_v18 }
 0x43a   :  { %1767 = vmatprep.subr.bf16.mxu0 %v4567_v34  ;;  %1808 = vmatprep.subr.bf16.mxu1 %v4570_v29 }
 0x43d   :  { %1768 = vmatpush1.bf16.msra.mxu0 %v4573_v32  ;;  %1809 = vmatpush1.bf16.msra.mxu1 %v4576_v48  ;;  %v4599_v48 = vld [vmem:[#allocation6 + $0x80] ss:$16 sps:$4 sm:$0xff]  }
 0x43e   :  { %1769 = vmatprep.subr.bf16.mxu0 %v4579_v13  ;;  %1810 = vmatprep.subr.bf16.mxu1 %v4582_v27 }
 0x43f   :  { %v1574_v22 = vpop.f32.mrf.mxu0  ;;  %v1615_v54 = vpop.f32.mrf.mxu1 }
 0x440   :  { %v1575_v24 = vadd.f32 %v1574_v22, %v4226_v56 }
 0x441   :  { %v1576_v45 = vpop.f32.mrf.mxu0  ;;  %v1617_v25 = vpop.f32.mrf.mxu1  ;;  %1770 = vmatpush1.bf16.msra.mxu0 %v4586_v41  ;;  %1811 = vmatpush1.bf16.msra.mxu1 %v4589_v8 }
 0x442   :  { %v2950_v52 = vmul.f32 -1.442695, %v1575_v24  ;;  %v1577_v28 = vadd.f32 %v1576_v45, %v4231_v2  ;;  %1771 = vmatprep.subr.bf16.mxu0 %v4593_v21  ;;  %1812 = vmatprep.subr.bf16.mxu1 %v4596_v10  ;;  %v4602_v24 = vld [vmem:[#allocation6 + $0x88] ss:$16 sps:$4 sm:$0xff]   ;;  %v4605_v45 = vld [vmem:[#allocation6 + $0x64] ss:$16 sps:$4 sm:$0xff]  }
 0x443   :  { %v1578_v22 = vpop.f32.mrf.mxu0  ;;  %v1619_v56 = vpop.f32.mrf.mxu1  ;;  %5953 = vst [vmem:[#allocation32_spill] sm:$0xff] %v4602_v24  ;;  %5954 = vst [vmem:[#allocation33_spill] sm:$0xff] %v4605_v45  ;;  %v4608_v2 = vld [vmem:[#allocation6 + $0x6c] ss:$16 sps:$4 sm:$0xff]  }
 0x444   :  { %3282 = vpow2.f32 %v2950_v52  ;;  %v2951_v27 = vmul.f32 -1.442695, %v1577_v28  ;;  %5955 = vst [vmem:[#allocation34_spill] sm:$0xff] %v4608_v2  ;;  %v4611_v56 = vld [vmem:[#allocation6 + $0x60] ss:$16 sps:$4 sm:$0xff]   ;;  %v1618_v52 = vadd.f32 %v1617_v25, %v5896_v16  ;;  %v1616_v25 = vadd.f32 %v1615_v54, %v5903_v62 }
 0x445   :  { %v1579_v41 = vpop.f32.mrf.mxu0  ;;  %v1620_v13 = vpop.f32.mrf.mxu1  ;;  %1772 = vmatpush1.bf16.msra.mxu0 %v4599_v48  ;;  %1813 = vmatpush1.bf16.msra.mxu1 %v4602_v24  ;;  %5956 = vst [vmem:[#allocation35_spill] sm:$0xff] %v4611_v56  ;;  %v4624_v28 = vld [vmem:[#allocation6 + $0x40] ss:$16 sps:$4 sm:$0xff]   ;;  %v4627_v22 = vld [vmem:[#allocation6 + $0x48] ss:$16 sps:$4 sm:$0xff]  }
 0x446   :  { %3284 = vpow2.f32 %v2951_v27  ;;  %1773 = vmatprep.subr.bf16.mxu0 %v4605_v45  ;;  %1814 = vmatprep.subr.bf16.mxu1 %v4608_v2  ;;  %v4614_v13 = vld [vmem:[#allocation6 + $0x68] ss:$16 sps:$4 sm:$0xff]   ;;  %v4617_v41 = vld [vmem:[#allocation6 + $0x44] ss:$16 sps:$4 sm:$0xff]   ;;  %v4620_v27 = vld [vmem:[#allocation6 + $0x4c] ss:$16 sps:$4 sm:$0xff]  }
 0x447   :  { %5957 = vst [vmem:[#allocation36_spill] sm:$0xff] %v4614_v13  ;;  %5958 = vst [vmem:[#allocation37_spill] sm:$0xff] %v4617_v41  ;;  %v4637_v16 = vld [vmem:[#allocation6 + $0x20] ss:$16 sps:$4 sm:$0xff]   ;;  %v4643_v2 = vld [vmem:[#allocation6 + $0x4] ss:$16 sps:$4 sm:$0xff]  }
 0x448   :  { %5959 = vst [vmem:[#allocation38_spill] sm:$0xff] %v4620_v27  ;;  %5960 = vst [vmem:[#allocation39_spill] sm:$0xff] %v4624_v28  ;;  %v4649_v62 = vld [vmem:[#allocation6] ss:$16 sps:$4 sm:$0xff]  }
 0x449   :  { %1774 = vmatpush1.bf16.msra.mxu0 %v4611_v56  ;;  %1815 = vmatpush1.bf16.msra.mxu1 %v4614_v13  ;;  %5961 = vst [vmem:[#allocation40_spill] sm:$0xff] %v4627_v22  ;;  %v4630_v56 = vld [vmem:[#allocation6 + $0x24] ss:$16 sps:$4 sm:$0xff]   ;;  %v4633_v13 = vld [vmem:[#allocation6 + $0x2c] ss:$16 sps:$4 sm:$0xff]   ;;  %5964 = vst [vmem:[#allocation43_spill] sm:$0xff] %v4637_v16 }
 0x44a   :  { %1775 = vmatprep.subr.bf16.mxu0 %v4617_v41  ;;  %1816 = vmatprep.subr.bf16.mxu1 %v4620_v27  ;;  %5962 = vst [vmem:[#allocation41_spill] sm:$0xff] %v4630_v56  ;;  %5963 = vst [vmem:[#allocation42_spill] sm:$0xff] %v4633_v13  ;;  %v2952_v41 = vmul.f32 -1.442695, %v1618_v52 }
 0x44b   :  { %5966 = vst [vmem:[#allocation45_spill] sm:$0xff] %v4643_v2  ;;  %5968 = vst [vmem:[#allocation47_spill] sm:$0xff] %v4649_v62 }
 0x44c   :  { %3286 = vpow2.f32 %v2952_v41  ;;  %v4661_v41 = vld [vmem:[#allocation6 + $0x1e0] ss:$16 sps:$4 sm:$0xff]  }
 0x44d   :  { %1776 = vmatpush1.bf16.msra.mxu0 %v4624_v28  ;;  %1817 = vmatpush1.bf16.msra.mxu1 %v4627_v22  ;;  %v4640_v28 = vld [vmem:[#allocation6 + $0x28] ss:$16 sps:$4 sm:$0xff]   ;;  %5972 = vst [vmem:[#allocation52_spill] sm:$0xff] %v4661_v41 }
 0x44e   :  { %1777 = vmatprep.subr.bf16.mxu0 %v4630_v56  ;;  %1818 = vmatprep.subr.bf16.mxu1 %v4633_v13  ;;  %5965 = vst [vmem:[#allocation44_spill] sm:$0xff] %v4640_v28  ;;  %v4646_v56 = vld [vmem:[#allocation6 + $0xc] ss:$16 sps:$4 sm:$0xff]   ;;  %v4698_v13 = vld [vmem:[#allocation6 + $0x180] ss:$16 sps:$4 sm:$0xff]  }
 0x44f   :  { %5967 = vst [vmem:[#allocation46_spill] sm:$0xff] %v4646_v56 }
 0x451   :  { %v3283_v27 = vpop.eup %3282  ;;  %1778 = vmatpush1.bf16.msra.mxu0 %v4637_v16  ;;  %1819 = vmatpush1.bf16.msra.mxu1 %v4640_v28  ;;  %v4652_v16 = vld [vmem:[#allocation6 + $0x8] ss:$16 sps:$4 sm:$0xff]  }
 0x452   :  { %v1625_v22 = vadd.f32 1.0, %v3283_v27  ;;  %1779 = vmatprep.subr.bf16.mxu0 %v4643_v2  ;;  %1820 = vmatprep.subr.bf16.mxu1 %v4646_v56  ;;  %5969 = vst [vmem:[#allocation48_spill] sm:$0xff] %v4652_v16  ;;  %v4655_v27 = vld [vmem:[#allocation6 + $0x1e4] ss:$16 sps:$4 sm:$0xff]   ;;  %v4658_v2 = vld [vmem:[#allocation6 + $0x1ec] ss:$16 sps:$4 sm:$0xff]  }
 0x453   :  { %v3285_v52 = vpop.eup %3284  ;;  %5970 = vst [vmem:[#allocation49_spill] sm:$0xff] %v4655_v27  ;;  %5971 = vst [vmem:[#allocation50_spill] sm:$0xff] %v4658_v2 }
 0x454   :  { %3288 = vrcp.f32 %v1625_v22  ;;  %v1631_v54 = vadd.f32 1.0, %v3285_v52  ;;  %v4664_v22 = vld [vmem:[#allocation6 + $0x1e8] ss:$16 sps:$4 sm:$0xff]   ;;  %v4670_v52 = vld [vmem:[#allocation6 + $0x1cc] ss:$16 sps:$4 sm:$0xff]  }
 0x455   :  { %3290 = vtanh.f32 %v1616_v25  ;;  %1780 = vmatpush1.bf16.msra.mxu0 %v4649_v62  ;;  %1821 = vmatpush1.bf16.msra.mxu1 %v4652_v16  ;;  %5973 = vst [vmem:[#allocation61_spill] sm:$0xff] %v4664_v22  ;;  %v4667_v25 = vld [vmem:[#allocation6 + $0x1c4] ss:$16 sps:$4 sm:$0xff]   ;;  %5975 = vst [vmem:[#allocation65_spill] sm:$0xff] %v4670_v52  ;;  %v4685_v16 = vld [vmem:[#allocation6 + $0x1a0] ss:$16 sps:$4 sm:$0xff]  }
 0x456   :  { %3292 = vrcp.f32 %v1631_v54  ;;  %1781 = vmatprep.subr.bf16.mxu0 %v4655_v27  ;;  %1822 = vmatprep.subr.bf16.mxu1 %v4658_v2  ;;  %5974 = vst [vmem:[#allocation64_spill] sm:$0xff] %v4667_v25  ;;  %v4673_v54 = vld [vmem:[#allocation6 + $0x1c0] ss:$16 sps:$4 sm:$0xff]   ;;  %v4676_v2 = vld [vmem:[#allocation6 + $0x1c8] ss:$16 sps:$4 sm:$0xff]   ;;  %5980 = vst [vmem:[#allocation14_spill] sm:$0xff] %v4685_v16 }
 0x457   :  { %5976 = vst [vmem:[#allocation66_spill] sm:$0xff] %v4673_v54  ;;  %5977 = vst [vmem:[#allocation15_spill] sm:$0xff] %v4676_v2 }
 0x459   :  { %1782 = vmatpush2.bf16.msra.mxu0 %v4661_v41  ;;  %1823 = vmatpush2.bf16.msra.mxu1 %v4664_v22  ;;  %v4679_v41 = vld [vmem:[#allocation6 + $0x1a4] ss:$16 sps:$4 sm:$0xff]   ;;  %v4682_v22 = vld [vmem:[#allocation6 + $0x1ac] ss:$16 sps:$4 sm:$0xff]  }
 0x45a   :  { %1783 = vmatprep.subr.bf16.mxu0 %v4667_v25  ;;  %1824 = vmatprep.subr.bf16.mxu1 %v4670_v52  ;;  %5978 = vst [vmem:[#allocation23_spill] sm:$0xff] %v4679_v41  ;;  %5979 = vst [vmem:[#allocation24_spill] sm:$0xff] %v4682_v22  ;;  %v3287_v25 = vpop.eup %3286  ;;  %v4688_v52 = vld [vmem:[#allocation6 + $0x1a8] ss:$16 sps:$4 sm:$0xff]  }
 0x45b   :  { %5981 = vst [vmem:[#allocation51_spill] sm:$0xff] %v4688_v52  ;;  %v1638_v62 = vadd.f32 1.0, %v3287_v25  ;;  %v4731_v25 = vld [vmem:[#allocation6 + $0x124] ss:$16 sps:$4 sm:$0xff]  }
 0x45c   :  { %5991 = vst [vmem:[#allocation63_spill] sm:$0xff] %v4731_v25 }
 0x45d   :  { %1784 = vmatpush2.bf16.msra.mxu0 %v4673_v54  ;;  %1825 = vmatpush2.bf16.msra.mxu1 %v4676_v2  ;;  %v4691_v2 = vld [vmem:[#allocation6 + $0x184] ss:$16 sps:$4 sm:$0xff]   ;;  %3294 = vrcp.f32 %v1638_v62  ;;  %v4728_v62 = vld [vmem:[#allocation6 + $0x148] ss:$16 sps:$4 sm:$0xff]  }
 0x45e   :  { %1785 = vmatprep.subr.bf16.mxu0 %v4679_v41  ;;  %1826 = vmatprep.subr.bf16.mxu1 %v4682_v22  ;;  %5982 = vst [vmem:[#allocation53_spill] sm:$0xff] %v4691_v2  ;;  %v4694_v41 = vld [vmem:[#allocation6 + $0x18c] ss:$16 sps:$4 sm:$0xff]   ;;  %5990 = vst [vmem:[#allocation62_spill] sm:$0xff] %v4728_v62 }
 0x45f   :  { %5983 = vst [vmem:[#allocation54_spill] sm:$0xff] %v4694_v41 }
 0x461   :  { %v3289_v27 = vpop.eup %3288  ;;  %1786 = vmatpush2.bf16.msra.mxu0 %v4685_v16  ;;  %1827 = vmatpush2.bf16.msra.mxu1 %v4688_v52  ;;  %v4701_v16 = vld [vmem:[#allocation6 + $0x188] ss:$16 sps:$4 sm:$0xff]  }
 0x462   :  { %v3291_v54 = vpop.eup %3290  ;;  %1787 = vmatprep.subr.bf16.mxu0 %v4691_v2  ;;  %1828 = vmatprep.subr.bf16.mxu1 %v4694_v41  ;;  %v4706_v2 = vld [vmem:[#allocation6 + $0x164] ss:$16 sps:$4 sm:$0xff]   ;;  %v4709_v41 = vld [vmem:[#allocation6 + $0x16c] ss:$16 sps:$4 sm:$0xff]  }
 0x463   :  { %v3293_v22 = vpop.eup %3292  ;;  %v1642_v56 = vmul.f32 %v3291_v54, %v3289_v27  ;;  %5984 = vst [vmem:[#allocation55_spill] sm:$0xff] %v4709_v41  ;;  %v4716_v27 = vld [vmem:[#allocation6 + $0x168] ss:$16 sps:$4 sm:$0xff]   ;;  %v4734_v54 = vld [vmem:[#allocation6 + $0x12c] ss:$16 sps:$4 sm:$0xff]  }
 0x464   :  { %v1641_v28 = vmul.f32 %v3293_v22, %v4456_v26  ;;  %v4713_v26 = vld [vmem:[#allocation6 + $0x160] ss:$16 sps:$4 sm:$0xff]   ;;  %5986 = vst [vmem:[#allocation57_spill] sm:$0xff] %v4716_v27  ;;  %5992 = vst [vmem:[#allocation67_spill] sm:$0xff] %v4734_v54 }
 0x465   :  { %1788 = vmatpush2.bf16.msra.mxu0 %v4698_v13  ;;  %1829 = vmatpush2.bf16.msra.mxu1 %v4701_v16  ;;  %5985 = vst [vmem:[#allocation56_spill] sm:$0xff] %v4713_v26  ;;  %v4725_v22 = vld [vmem:[#allocation6 + $0x140] ss:$16 sps:$4 sm:$0xff]  }
 0x466   :  { %v4704_v52 = vadd.f32 %v1642_v56, %v1641_v28  ;;  %1789 = vmatprep.subr.bf16.mxu0 %v4706_v2  ;;  %1830 = vmatprep.subr.bf16.mxu1 %v4709_v41  ;;  %v4719_v56 = vld [vmem:[#allocation6 + $0x144] ss:$16 sps:$4 sm:$0xff]   ;;  %v4722_v28 = vld [vmem:[#allocation6 + $0x14c] ss:$16 sps:$4 sm:$0xff]   ;;  %5989 = vst [vmem:[#allocation60_spill] sm:$0xff] %v4725_v22 }
 0x467   :  { %5987 = vst [vmem:[#allocation58_spill] sm:$0xff] %v4719_v56  ;;  %5988 = vst [vmem:[#allocation59_spill] sm:$0xff] %v4722_v28 }
 0x468   :  { %3296 = vtanh.f32 %v4704_v52 }
 0x469   :  { %1790 = vmatpush2.bf16.msra.mxu0 %v4713_v26  ;;  %1831 = vmatpush2.bf16.msra.mxu1 %v4716_v27  ;;  %v4749_v26 = vld [vmem:[#allocation6 + $0x100] ss:$16 sps:$4 sm:$0xff]  }
 0x46a   :  { %1791 = vmatprep.subr.bf16.mxu0 %v4719_v56  ;;  %1832 = vmatprep.subr.bf16.mxu1 %v4722_v28  ;;  %v4737_v56 = vld [vmem:[#allocation6 + $0x120] ss:$16 sps:$4 sm:$0xff]   ;;  %v4740_v28 = vld [vmem:[#allocation6 + $0x128] ss:$16 sps:$4 sm:$0xff]  }
 0x46b   :  { %5993 = vst [vmem:[#allocation70_spill] sm:$0xff] %v4737_v56 }
 0x46d   :  { %1792 = vmatpush2.bf16.msra.mxu0 %v4725_v22  ;;  %1833 = vmatpush2.bf16.msra.mxu1 %v4728_v62  ;;  %v4743_v22 = vld [vmem:[#allocation6 + $0x104] ss:$16 sps:$4 sm:$0xff]   ;;  %v4746_v62 = vld [vmem:[#allocation6 + $0x10c] ss:$16 sps:$4 sm:$0xff]  }
 0x46e   :  { %1793 = vmatprep.subr.bf16.mxu0 %v4731_v25  ;;  %1834 = vmatprep.subr.bf16.mxu1 %v4734_v54  ;;  %5994 = vst [vmem:[#allocation71_spill] sm:$0xff] %v4743_v22  ;;  %v3295_v25 = vpop.eup %3294  ;;  %v4752_v54 = vld [vmem:[#allocation6 + $0x108] ss:$16 sps:$4 sm:$0xff]  }
 0x46f   :  { %5995 = vst [vmem:[#allocation72_spill] sm:$0xff] %v4752_v54 }
 0x471   :  { %1794 = vmatpush2.bf16.msra.mxu0 %v4737_v56  ;;  %1835 = vmatpush2.bf16.msra.mxu1 %v4740_v28 }
 0x472   :  { %1795 = vmatprep.subr.bf16.mxu0 %v4743_v22  ;;  %1836 = vmatprep.subr.bf16.mxu1 %v4746_v62 }
 0x475   :  { %v3297_v27 = vpop.eup %3296  ;;  %1796 = vmatpush2.bf16.msra.mxu0 %v4749_v26  ;;  %1837 = vmatpush2.bf16.msra.mxu1 %v4752_v54 }
 0x476   :  { %v4755_v56 = vmul.f32 %v3297_v27, %v3295_v25  ;;  %1879 = vmatprep.subr.bf16.mxu0 %v5926_v17  ;;  %1920 = vmatprep.subr.bf16.mxu1 %v4314_v58  ;;  %v5997_v58 = vld [vmem:[#allocation26_spill] sm:$0xff] }
 0x478   :  { %5996 = vst [vmem:[#allocation73_spill] sm:$0xff] %v4755_v56  ;;  %v1764_v22 = vpack.c.bf16 %v4755_v56, %v4755_v56  ;;  %v6015_v56 = vld [vmem:[#allocation40_spill] sm:$0xff] }
 0x47a   :  { %1797 = vmatprep.mubr.bf16.mxu0 %v1764_v22  ;;  %1838 = vmatprep.mubr.bf16.mxu1 %v1764_v22 }
 0x47b   :  { %1798 = vmatmul.mubr.bf16.vlgmr.msra.gmra.mxu0 %v4557_v44  ;;  %1839 = vmatmul.mubr.bf16.vlgmr.msra.gmra.mxu1 %v4557_v44 }
 0x47c   :  { %1880 = vmatpush1.bf16.msra.mxu0 %v4319_v6  ;;  %1921 = vmatpush1.bf16.msra.mxu1 %v5927_v0  ;;  %v99_v6 = vpop.permute.xlu0 %98 }
 0x47d   :  { %1881 = vmatprep.subr.bf16.mxu0 %v5928_v14  ;;  %1922 = vmatprep.subr.bf16.mxu1 %v5929_v59  ;;  %v154_v0 = vmul.f32 %v3917_v46, %v99_v6  ;;  %v6000_v14 = vld [vmem:[#allocation13_spill] sm:$0xff]  ;;  %v155_v25 = vmul.f32 %v3940_v19, %v99_v6 }
 0x47e   :  { %1911 = vmatprep.mubr.bf16.mxu0 %v5930_v3  ;;  %1952 = vmatprep.mubr.bf16.mxu1 %v5930_v3 }
 0x480   :  { %1882 = vmatpush1.bf16.msra.mxu0 %v4333_v42  ;;  %1923 = vmatpush1.bf16.msra.mxu1 %v5931_v1  ;;  %v5999_v42 = vld [vmem:[#allocation11_spill] sm:$0xff] }
 0x481   :  { %1883 = vmatprep.subr.bf16.mxu0 %v5932_v9  ;;  %1924 = vmatprep.subr.bf16.mxu1 %v4342_v5  ;;  %v5998_v5 = vld [vmem:[#allocation27_spill] sm:$0xff]  ;;  %v153_v17 = vmul.f32 %v5999_v42, %v99_v6 }
 0x483   :  { %v207_v59 = vadd.f32 %v6000_v14, %v153_v17 }
 0x484   :  { %1884 = vmatpush1.bf16.msra.mxu0 %v5933_v7  ;;  %1925 = vmatpush1.bf16.msra.mxu1 %v4496_v11 }
 0x485   :  { %1885 = vmatprep.subr.bf16.mxu0 %v5934_v43  ;;  %1926 = vmatprep.subr.bf16.mxu1 %v4500_v40  ;;  %v6001_v43 = vld [vmem:[#allocation12_spill] sm:$0xff] }
 0x488   :  { %1886 = vmatpush1.bf16.msra.mxu0 %v5935_v57  ;;  %1927 = vmatpush1.bf16.msra.mxu1 %v4504_v49  ;;  %v208_v57 = vadd.f32 %v6001_v43, %v154_v0  ;;  %v209_v0 = vadd.f32 %v3947_v50, %v155_v25 }
 0x489   :  { %1887 = vmatprep.subr.bf16.mxu0 %v5936_v38  ;;  %1928 = vmatprep.subr.bf16.mxu1 %v4508_v39 }
 0x48c   :  { %1888 = vmatpush1.bf16.msra.mxu0 %v5937_v33  ;;  %1929 = vmatpush1.bf16.msra.mxu1 %v4512_v51 }
 0x48d   :  { %1889 = vmatprep.subr.bf16.mxu0 %v5938_v53  ;;  %1930 = vmatprep.subr.bf16.mxu1 %v4516_v30 }
 0x490   :  { %1890 = vmatpush1.bf16.msra.mxu0 %v5939_v15  ;;  %1931 = vmatpush1.bf16.msra.mxu1 %v4520_v36 }
 0x491   :  { %1891 = vmatprep.subr.bf16.mxu0 %v5940_v31  ;;  %1932 = vmatprep.subr.bf16.mxu1 %v4524_v60 }
 0x494   :  { %1892 = vmatpush1.bf16.msra.mxu0 %v5941_v35  ;;  %1933 = vmatpush1.bf16.msra.mxu1 %v4528_v37 }
 0x495   :  { %1893 = vmatprep.subr.bf16.mxu0 %v5942_v61  ;;  %1934 = vmatprep.subr.bf16.mxu1 %v4532_v63 }
 0x498   :  { %1894 = vmatpush1.bf16.msra.mxu0 %v5943_v47  ;;  %1935 = vmatpush1.bf16.msra.mxu1 %v4536_v23  ;;  %v156_v47 = vmul.f32 %v3943_v20, %v99_v6 }
 0x499   :  { %1990 = vmatprep.subr.bf16.mxu0 %v5997_v58  ;;  %2031 = vmatprep.subr.bf16.mxu1 %v5998_v5 }
 0x49a   :  { %v210_v22 = vadd.f32 %v3951_v55, %v156_v47 }
 0x4f8   :  { %v1688_v1 = vpop.f32.mrf.mxu0  ;;  %v1729_v9 = vpop.f32.mrf.mxu1 }
 0x4f9   :  { %v1736_v7 = vadd.f32 %v1688_v1, %v207_v59 }
 0x4fa   :  { %v1690_v38 = vpop.f32.mrf.mxu0  ;;  %v1731_v33 = vpop.f32.mrf.mxu1 }
 0x4fb   :  { %v2953_v53 = vmul.f32 -1.442695, %v1736_v7  ;;  %v1737_v15 = vadd.f32 %v1690_v38, %v208_v57  ;;  %v1739_v17 = vadd.f32 %v1731_v33, %v210_v22  ;;  %v1738_v7 = vadd.f32 %v1729_v9, %v209_v0  ;;  %v6004_v0 = vld [vmem:[#allocation30_spill] sm:$0xff] }
 0x4fc   :  { %v1692_v31 = vpop.f32.mrf.mxu0  ;;  %v1733_v35 = vpop.f32.mrf.mxu1 }
 0x4fd   :  { %3298 = vpow2.f32 %v2953_v53  ;;  %v2954_v61 = vmul.f32 -1.442695, %v1737_v15  ;;  %v2955_v59 = vmul.f32 -1.442695, %v1739_v17  ;;  %v6003_v17 = vld [vmem:[#allocation29_spill] sm:$0xff] }
 0x4fe   :  { %v1693_v44 = vpop.f32.mrf.mxu0  ;;  %v1734_v27 = vpop.f32.mrf.mxu1 }
 0x4ff   :  { %3300 = vpow2.f32 %v2954_v61 }
 0x500   :  { %3302 = vpow2.f32 %v2955_v59 }
 0x50a   :  { %v3299_v1 = vpop.eup %3298 }
 0x50b   :  { %v1743_v57 = vadd.f32 1.0, %v3299_v1 }
 0x50c   :  { %v3301_v38 = vpop.eup %3300 }
 0x50d   :  { %3304 = vrcp.f32 %v1743_v57  ;;  %v1749_v53 = vadd.f32 1.0, %v3301_v38  ;;  %v3303_v15 = vpop.eup %3302  ;;  %v6006_v38 = vld [vmem:[#allocation31_spill] sm:$0xff] }
 0x50e   :  { %3306 = vtanh.f32 %v1738_v7  ;;  %v1756_v47 = vadd.f32 1.0, %v3303_v15  ;;  %v6005_v7 = vld [vmem:[#allocation68_spill] sm:$0xff] }
 0x50f   :  { %3308 = vrcp.f32 %v1749_v53 }
 0x510   :  { %3310 = vrcp.f32 %v1756_v47 }
 0x51a   :  { %v3305_v31 = vpop.eup %3304 }
 0x51b   :  { %v3307_v35 = vpop.eup %3306 }
 0x51c   :  { %v3309_v61 = vpop.eup %3308  ;;  %v1760_v44 = vmul.f32 %v3307_v35, %v3305_v31  ;;  %v6007_v35 = vld [vmem:[#allocation69_spill] sm:$0xff] }
 0x51d   :  { %v1759_v6 = vmul.f32 %v3309_v61, %v4554_v4  ;;  %v3311_v9 = vpop.eup %3310  ;;  %v6002_v4 = vld [vmem:[#allocation28_spill] sm:$0xff] }
 0x51f   :  { %v4806_v33 = vadd.f32 %v1760_v44, %v1759_v6 }
 0x521   :  { %3312 = vtanh.f32 %v4806_v33 }
 0x52e   :  { %v3313_v27 = vpop.eup %3312 }
 0x52f   :  { %v1763_v22 = vmul.f32 %v3313_v27, %v3311_v9 }
 0x531   :  { %v4809_v25 = vpack.c.bf16 %v1763_v22, %v1763_v22  ;;  %v6008_v22 = vld [vmem:[#allocation34_spill] sm:$0xff] }
 0x533   :  { %1912 = vmatmul.mubr.bf16.vlgmr.msra.gmra.mxu0 %v4809_v25  ;;  %1953 = vmatmul.mubr.bf16.vlgmr.msra.gmra.mxu1 %v4809_v25 }
 0x534   :  { %1991 = vmatpush1.bf16.msra.mxu0 %v4561_v12  ;;  %2032 = vmatpush1.bf16.msra.mxu1 %v4564_v18 }
 0x535   :  { %1992 = vmatprep.subr.bf16.mxu0 %v4567_v34  ;;  %2033 = vmatprep.subr.bf16.mxu1 %v4570_v29 }
 0x538   :  { %1993 = vmatpush1.bf16.msra.mxu0 %v4573_v32  ;;  %2034 = vmatpush1.bf16.msra.mxu1 %v6002_v4 }
 0x539   :  { %1994 = vmatprep.subr.bf16.mxu0 %v6003_v17  ;;  %2035 = vmatprep.subr.bf16.mxu1 %v6004_v0 }
 0x53b   :  { %v1799_v59 = vpop.f32.mrf.mxu0  ;;  %v1840_v1 = vpop.f32.mrf.mxu1 }
 0x53c   :  { %v1800_v57 = vadd.f32 %v1799_v59, %v6005_v7  ;;  %1995 = vmatpush1.bf16.msra.mxu0 %v6006_v38  ;;  %2036 = vmatpush1.bf16.msra.mxu1 %v4589_v8  ;;  %v6009_v59 = vld [vmem:[#allocation35_spill] sm:$0xff] }
 0x53d   :  { %v1801_v53 = vpop.f32.mrf.mxu0  ;;  %v1842_v15 = vpop.f32.mrf.mxu1  ;;  %1996 = vmatprep.subr.bf16.mxu0 %v4593_v21  ;;  %2037 = vmatprep.subr.bf16.mxu1 %v4596_v10 }
 0x53e   :  { %v2956_v31 = vmul.f32 -1.442695, %v1800_v57  ;;  %v1802_v61 = vadd.f32 %v1801_v53, %v6007_v35  ;;  %v6010_v57 = vld [vmem:[#allocation36_spill] sm:$0xff]  ;;  %v6011_v53 = vld [vmem:[#allocation37_spill] sm:$0xff] }
 0x53f   :  { %v1803_v47 = vpop.f32.mrf.mxu0  ;;  %v1844_v44 = vpop.f32.mrf.mxu1 }
 0x540   :  { %3314 = vpow2.f32 %v2956_v31  ;;  %v2957_v6 = vmul.f32 -1.442695, %v1802_v61  ;;  %1997 = vmatpush1.bf16.msra.mxu0 %v4599_v48  ;;  %2038 = vmatpush1.bf16.msra.mxu1 %v4602_v24  ;;  %v6012_v47 = vld [vmem:[#allocation38_spill] sm:$0xff]  ;;  %v6013_v31 = vld [vmem:[#allocation20_spill] sm:$0xff]  ;;  %v6014_v44 = vld [vmem:[#allocation39_spill] sm:$0xff] }
 0x541   :  { %v1804_v9 = vpop.f32.mrf.mxu0  ;;  %v1845_v27 = vpop.f32.mrf.mxu1  ;;  %1998 = vmatprep.subr.bf16.mxu0 %v4605_v45  ;;  %2039 = vmatprep.subr.bf16.mxu1 %v6008_v22  ;;  %v1843_v61 = vadd.f32 %v1842_v15, %v6013_v31  ;;  %v6020_v45 = vld [vmem:[#allocation21_spill] sm:$0xff] }
 0x542   :  { %3316 = vpow2.f32 %v2957_v6  ;;  %v6016_v9 = vld [vmem:[#allocation41_spill] sm:$0xff]  ;;  %v6017_v27 = vld [vmem:[#allocation42_spill] sm:$0xff]  ;;  %v6018_v6 = vld [vmem:[#allocation43_spill] sm:$0xff] }
 0x543   :  { %v2958_v22 = vmul.f32 -1.442695, %v1843_v61  ;;  %v6021_v24 = vld [vmem:[#allocation45_spill] sm:$0xff] }
 0x544   :  { %1999 = vmatpush1.bf16.msra.mxu0 %v6009_v59  ;;  %2040 = vmatpush1.bf16.msra.mxu1 %v6010_v57  ;;  %v6019_v59 = vld [vmem:[#allocation44_spill] sm:$0xff]  ;;  %v6025_v61 = vld [vmem:[#allocation49_spill] sm:$0xff] }
 0x545   :  { %2000 = vmatprep.subr.bf16.mxu0 %v6011_v53  ;;  %2041 = vmatprep.subr.bf16.mxu1 %v6012_v47  ;;  %v1841_v53 = vadd.f32 %v1840_v1, %v6020_v45  ;;  %v6022_v47 = vld [vmem:[#allocation46_spill] sm:$0xff]  ;;  %3318 = vpow2.f32 %v2958_v22  ;;  %v6027_v1 = vld [vmem:[#allocation52_spill] sm:$0xff]  ;;  %v6028_v45 = vld [vmem:[#allocation61_spill] sm:$0xff] }
 0x546   :  { %v6031_v22 = vld [vmem:[#allocation66_spill] sm:$0xff] }
 0x548   :  { %2001 = vmatpush1.bf16.msra.mxu0 %v6014_v44  ;;  %2042 = vmatpush1.bf16.msra.mxu1 %v6015_v56 }
 0x549   :  { %2002 = vmatprep.subr.bf16.mxu0 %v6016_v9  ;;  %2043 = vmatprep.subr.bf16.mxu1 %v6017_v27  ;;  %v6023_v9 = vld [vmem:[#allocation47_spill] sm:$0xff]  ;;  %v6024_v27 = vld [vmem:[#allocation48_spill] sm:$0xff] }
 0x54c   :  { %2003 = vmatpush1.bf16.msra.mxu0 %v6018_v6  ;;  %2044 = vmatpush1.bf16.msra.mxu1 %v6019_v59  ;;  %v6026_v59 = vld [vmem:[#allocation50_spill] sm:$0xff] }
 0x54d   :  { %v3315_v57 = vpop.eup %3314  ;;  %2004 = vmatprep.subr.bf16.mxu0 %v6021_v24  ;;  %2045 = vmatprep.subr.bf16.mxu1 %v6022_v47  ;;  %v6029_v47 = vld [vmem:[#allocation64_spill] sm:$0xff] }
 0x54e   :  { %v1850_v15 = vadd.f32 1.0, %v3315_v57  ;;  %v6030_v57 = vld [vmem:[#allocation65_spill] sm:$0xff] }
 0x54f   :  { %v3317_v44 = vpop.eup %3316 }
 0x550   :  { %3320 = vrcp.f32 %v1850_v15  ;;  %v1856_v56 = vadd.f32 1.0, %v3317_v44  ;;  %2005 = vmatpush1.bf16.msra.mxu0 %v6023_v9  ;;  %2046 = vmatpush1.bf16.msra.mxu1 %v6024_v27  ;;  %v6032_v44 = vld [vmem:[#allocation15_spill] sm:$0xff]  ;;  %v6035_v27 = vld [vmem:[#allocation14_spill] sm:$0xff] }
 0x551   :  { %3322 = vtanh.f32 %v1841_v53  ;;  %2006 = vmatprep.subr.bf16.mxu0 %v6025_v61  ;;  %2047 = vmatprep.subr.bf16.mxu1 %v6026_v59  ;;  %v6033_v15 = vld [vmem:[#allocation23_spill] sm:$0xff]  ;;  %v6034_v53 = vld [vmem:[#allocation24_spill] sm:$0xff]  ;;  %v6037_v59 = vld [vmem:[#allocation53_spill] sm:$0xff] }
 0x552   :  { %3324 = vrcp.f32 %v1856_v56  ;;  %v3319_v61 = vpop.eup %3318  ;;  %v6036_v56 = vld [vmem:[#allocation51_spill] sm:$0xff] }
 0x553   :  { %v1863_v9 = vadd.f32 1.0, %v3319_v61  ;;  %v6043_v61 = vld [vmem:[#allocation60_spill] sm:$0xff] }
 0x554   :  { %2007 = vmatpush2.bf16.msra.mxu0 %v6027_v1  ;;  %2048 = vmatpush2.bf16.msra.mxu1 %v6028_v45  ;;  %v6038_v45 = vld [vmem:[#allocation54_spill] sm:$0xff] }
 0x555   :  { %2008 = vmatprep.subr.bf16.mxu0 %v6029_v47  ;;  %2049 = vmatprep.subr.bf16.mxu1 %v6030_v57  ;;  %3326 = vrcp.f32 %v1863_v9  ;;  %v6048_v9 = vld [vmem:[#allocation71_spill] sm:$0xff] }
 0x558   :  { %2009 = vmatpush2.bf16.msra.mxu0 %v6031_v22  ;;  %2050 = vmatpush2.bf16.msra.mxu1 %v6032_v44 }
 0x559   :  { %2010 = vmatprep.subr.bf16.mxu0 %v6033_v15  ;;  %2051 = vmatprep.subr.bf16.mxu1 %v6034_v53 }
 0x55c   :  { %2011 = vmatpush2.bf16.msra.mxu0 %v6035_v27  ;;  %2052 = vmatpush2.bf16.msra.mxu1 %v6036_v56 }
 0x55d   :  { %v3321_v1 = vpop.eup %3320  ;;  %2012 = vmatprep.subr.bf16.mxu0 %v6037_v59  ;;  %2053 = vmatprep.subr.bf16.mxu1 %v6038_v45  ;;  %v6039_v59 = vld [vmem:[#allocation56_spill] sm:$0xff]  ;;  %v6040_v45 = vld [vmem:[#allocation57_spill] sm:$0xff] }
 0x55e   :  { %v3323_v47 = vpop.eup %3322 }
 0x55f   :  { %v3325_v57 = vpop.eup %3324  ;;  %v1867_v22 = vmul.f32 %v3323_v47, %v3321_v1  ;;  %v6041_v47 = vld [vmem:[#allocation58_spill] sm:$0xff] }
 0x560   :  { %v1866_v44 = vmul.f32 %v3325_v57, %v4704_v52  ;;  %2013 = vmatpush2.bf16.msra.mxu0 %v4698_v13  ;;  %2054 = vmatpush2.bf16.msra.mxu1 %v4701_v16  ;;  %v6042_v52 = vld [vmem:[#allocation59_spill] sm:$0xff]  ;;  %v6044_v1 = vld [vmem:[#allocation62_spill] sm:$0xff] }
 0x561   :  { %2014 = vmatprep.subr.bf16.mxu0 %v4706_v2  ;;  %2055 = vmatprep.subr.bf16.mxu1 %v4709_v41  ;;  %v6045_v57 = vld [vmem:[#allocation63_spill] sm:$0xff] }
 0x562   :  { %v4866_v56 = vadd.f32 %v1867_v22, %v1866_v44  ;;  %v6046_v41 = vld [vmem:[#allocation67_spill] sm:$0xff]  ;;  %v6047_v22 = vld [vmem:[#allocation70_spill] sm:$0xff]  ;;  %v3327_v44 = vpop.eup %3326 }
 0x564   :  { %2015 = vmatpush2.bf16.msra.mxu0 %v6039_v59  ;;  %2056 = vmatpush2.bf16.msra.mxu1 %v6040_v45  ;;  %3328 = vtanh.f32 %v4866_v56 }
 0x565   :  { %2016 = vmatprep.subr.bf16.mxu0 %v6041_v47  ;;  %2057 = vmatprep.subr.bf16.mxu1 %v6042_v52  ;;  %v4883_v52 = vld [vmem:[#allocation4 + $0xe4] ss:$16 sps:$4 sm:$0xff]  }
 0x566   :  { %6049 = vst [vmem:[#allocation26_spill] sm:$0xff] %v4883_v52 }
 0x568   :  { %2017 = vmatpush2.bf16.msra.mxu0 %v6043_v61  ;;  %2058 = vmatpush2.bf16.msra.mxu1 %v6044_v1 }
 0x569   :  { %2018 = vmatprep.subr.bf16.mxu0 %v6045_v57  ;;  %2059 = vmatprep.subr.bf16.mxu1 %v6046_v41  ;;  %v4886_v57 = vld [vmem:[#allocation4 + $0xec] ss:$16 sps:$4 sm:$0xff]  }
 0x56a   :  { %6050 = vst [vmem:[#allocation27_spill] sm:$0xff] %v4886_v57 }
 0x56c   :  { %2019 = vmatpush2.bf16.msra.mxu0 %v6047_v22  ;;  %2060 = vmatpush2.bf16.msra.mxu1 %v4740_v28 }
 0x56d   :  { %2020 = vmatprep.subr.bf16.mxu0 %v6048_v9  ;;  %2061 = vmatprep.subr.bf16.mxu1 %v4746_v62 }
 0x570   :  { %2021 = vmatpush2.bf16.msra.mxu0 %v4749_v26  ;;  %2062 = vmatpush2.bf16.msra.mxu1 %v4752_v54  ;;  %v4895_v54 = vld [vmem:[#allocation4 + $0xe0] ss:$16 sps:$4 sm:$0xff]  }
 0x571   :  { %v3329_v61 = vpop.eup %3328  ;;  %2104 = vmatprep.subr.bf16.mxu0 %v4883_v52  ;;  %2145 = vmatprep.subr.bf16.mxu1 %v4886_v57  ;;  %v4898_v52 = vld [vmem:[#allocation4 + $0xe8] ss:$16 sps:$4 sm:$0xff]   ;;  %v4901_v57 = vld [vmem:[#allocation4 + $0xc4] ss:$16 sps:$4 sm:$0xff]  }
 0x572   :  { %v4889_v22 = vmul.f32 %v3329_v61, %v3327_v44  ;;  %v4904_v61 = vld [vmem:[#allocation4 + $0xcc] ss:$16 sps:$4 sm:$0xff]   ;;  %v4915_v44 = vld [vmem:[#allocation4 + $0xa4] ss:$16 sps:$4 sm:$0xff]  }
 0x573   :  { %6052 = vst [vmem:[#allocation29_spill] sm:$0xff] %v4904_v61  ;;  %6054 = vst [vmem:[#allocation31_spill] sm:$0xff] %v4915_v44 }
 0x574   :  { %6051 = vst [vmem:[#allocation28_spill] sm:$0xff] %v4889_v22  ;;  %v1989_v9 = vpack.c.bf16 %v4889_v22, %v4889_v22  ;;  %v4918_v22 = vld [vmem:[#allocation4 + $0xac] ss:$16 sps:$4 sm:$0xff]  }
 0x576   :  { %2022 = vmatprep.mubr.bf16.mxu0 %v1989_v9  ;;  %2063 = vmatprep.mubr.bf16.mxu1 %v1989_v9  ;;  %v4912_v9 = vld [vmem:[#allocation4 + $0xc8] ss:$16 sps:$4 sm:$0xff]  }
 0x577   :  { %2023 = vmatmul.mubr.bf16.vlgmr.msra.gmra.mxu0 %v4809_v25  ;;  %2064 = vmatmul.mubr.bf16.vlgmr.msra.gmra.mxu1 %v4809_v25  ;;  %v4909_v25 = vld [vmem:[#allocation4 + $0xc0] ss:$16 sps:$4 sm:$0xff]   ;;  %6053 = vst [vmem:[#allocation30_spill] sm:$0xff] %v4912_v9 }
 0x578   :  { %2105 = vmatpush1.bf16.msra.mxu0 %v4895_v54  ;;  %2146 = vmatpush1.bf16.msra.mxu1 %v4898_v52 }
 0x579   :  { %2106 = vmatprep.subr.bf16.mxu0 %v4901_v57  ;;  %2147 = vmatprep.subr.bf16.mxu1 %v4904_v61  ;;  %v4921_v61 = vld [vmem:[#allocation4 + $0xa0] ss:$16 sps:$4 sm:$0xff]  }
 0x57a   :  { %2136 = vmatprep.mubr.bf16.mxu0 %v5930_v3  ;;  %2177 = vmatprep.mubr.bf16.mxu1 %v5930_v3  ;;  %6055 = vst [vmem:[#allocation43_spill] sm:$0xff] %v4921_v61  ;;  %v4925_v3 = vld [vmem:[#allocation4 + $0x84] ss:$16 sps:$4 sm:$0xff]  }
 0x57b   :  { %6056 = vst [vmem:[#allocation45_spill] sm:$0xff] %v4925_v3 }
 0x57c   :  { %2107 = vmatpush1.bf16.msra.mxu0 %v4909_v25  ;;  %2148 = vmatpush1.bf16.msra.mxu1 %v4912_v9  ;;  %v4929_v9 = vld [vmem:[#allocation4 + $0x80] ss:$16 sps:$4 sm:$0xff]  }
 0x57d   :  { %2108 = vmatprep.subr.bf16.mxu0 %v4915_v44  ;;  %2149 = vmatprep.subr.bf16.mxu1 %v4918_v22  ;;  %6057 = vst [vmem:[#allocation23_spill] sm:$0xff] %v4929_v9  ;;  %v4933_v44 = vld [vmem:[#allocation4 + $0x64] ss:$16 sps:$4 sm:$0xff]  }
 0x57e   :  { %6058 = vst [vmem:[#allocation24_spill] sm:$0xff] %v4933_v44 }
 0x580   :  { %2109 = vmatpush1.bf16.msra.mxu0 %v4921_v61  ;;  %2150 = vmatpush1.bf16.msra.mxu1 %v4496_v11  ;;  %v4937_v61 = vld [vmem:[#allocation4 + $0x60] ss:$16 sps:$4 sm:$0xff]   ;;  %v4941_v11 = vld [vmem:[#allocation4 + $0x44] ss:$16 sps:$4 sm:$0xff]  }
 0x581   :  { %2110 = vmatprep.subr.bf16.mxu0 %v4925_v3  ;;  %2151 = vmatprep.subr.bf16.mxu1 %v4500_v40  ;;  %6059 = vst [vmem:[#allocation14_spill] sm:$0xff] %v4937_v61  ;;  %6060 = vst [vmem:[#allocation56_spill] sm:$0xff] %v4941_v11  ;;  %v4945_v40 = vld [vmem:[#allocation4 + $0x40] ss:$16 sps:$4 sm:$0xff]  }
 0x582   :  { %6061 = vst [vmem:[#allocation57_spill] sm:$0xff] %v4945_v40 }
 0x584   :  { %2111 = vmatpush1.bf16.msra.mxu0 %v4929_v9  ;;  %2152 = vmatpush1.bf16.msra.mxu1 %v4504_v49  ;;  %v4949_v49 = vld [vmem:[#allocation4 + $0x24] ss:$16 sps:$4 sm:$0xff]  }
 0x585   :  { %2112 = vmatprep.subr.bf16.mxu0 %v4933_v44  ;;  %2153 = vmatprep.subr.bf16.mxu1 %v4508_v39  ;;  %6062 = vst [vmem:[#allocation58_spill] sm:$0xff] %v4949_v49  ;;  %v4953_v39 = vld [vmem:[#allocation4 + $0x20] ss:$16 sps:$4 sm:$0xff]  }
 0x586   :  { %6063 = vst [vmem:[#allocation62_spill] sm:$0xff] %v4953_v39 }
 0x588   :  { %2113 = vmatpush1.bf16.msra.mxu0 %v4937_v61  ;;  %2154 = vmatpush1.bf16.msra.mxu1 %v4512_v51  ;;  %v4957_v51 = vld [vmem:[#allocation4 + $0x4] ss:$16 sps:$4 sm:$0xff]  }
 0x589   :  { %2114 = vmatprep.subr.bf16.mxu0 %v4941_v11  ;;  %2155 = vmatprep.subr.bf16.mxu1 %v4516_v30  ;;  %6064 = vst [vmem:[#allocation67_spill] sm:$0xff] %v4957_v51  ;;  %v4961_v30 = vld [vmem:[#allocation4] ss:$16 sps:$4 sm:$0xff]  }
 0x58a   :  { %6065 = vst [vmem:[#allocation74_spill] sm:$0xff] %v4961_v30 }
 0x58c   :  { %2115 = vmatpush1.bf16.msra.mxu0 %v4945_v40  ;;  %2156 = vmatpush1.bf16.msra.mxu1 %v4520_v36  ;;  %v104_v36 = vpop.permute.xlu1 %103 }
 0x58d   :  { %2116 = vmatprep.subr.bf16.mxu0 %v4949_v49  ;;  %2157 = vmatprep.subr.bf16.mxu1 %v4524_v60  ;;  %v157_v60 = vmul.f32 %v5999_v42, %v104_v36  ;;  %v160_v9 = vmul.f32 %v3943_v20, %v104_v36 }
 0x590   :  { %2117 = vmatpush1.bf16.msra.mxu0 %v4953_v39  ;;  %2158 = vmatpush1.bf16.msra.mxu1 %v4528_v37  ;;  %v158_v37 = vmul.f32 %v3917_v46, %v104_v36  ;;  %v211_v39 = vadd.f32 %v6000_v14, %v157_v60  ;;  %v214_v60 = vadd.f32 %v3951_v55, %v160_v9 }
 0x591   :  { %2118 = vmatprep.subr.bf16.mxu0 %v4957_v51  ;;  %2159 = vmatprep.subr.bf16.mxu1 %v4532_v63  ;;  %v159_v14 = vmul.f32 %v3940_v19, %v104_v36 }
 0x592   :  { %v212_v40 = vadd.f32 %v6001_v43, %v158_v37 }
 0x594   :  { %2119 = vmatpush1.bf16.msra.mxu0 %v4961_v30  ;;  %2160 = vmatpush1.bf16.msra.mxu1 %v4536_v23 }
 0x595   :  { %2215 = vmatprep.subr.bf16.mxu0 %v5997_v58  ;;  %2256 = vmatprep.subr.bf16.mxu1 %v5998_v5 }
 0x5f3   :  { %v1913_v51 = vpop.f32.mrf.mxu0  ;;  %v1954_v49 = vpop.f32.mrf.mxu1 }
 0x5f4   :  { %v1961_v63 = vadd.f32 %v1913_v51, %v211_v39  ;;  %v213_v51 = vadd.f32 %v3947_v50, %v159_v14 }
 0x5f5   :  { %v1915_v11 = vpop.f32.mrf.mxu0  ;;  %v1956_v30 = vpop.f32.mrf.mxu1 }
 0x5f6   :  { %v2959_v61 = vmul.f32 -1.442695, %v1961_v63  ;;  %v1962_v23 = vadd.f32 %v1915_v11, %v212_v40  ;;  %v1964_v39 = vadd.f32 %v1956_v30, %v214_v60  ;;  %v1963_v63 = vadd.f32 %v1954_v49, %v213_v51 }
 0x5f7   :  { %v1917_v44 = vpop.f32.mrf.mxu0  ;;  %v1958_v58 = vpop.f32.mrf.mxu1 }
 0x5f8   :  { %3330 = vpow2.f32 %v2959_v61  ;;  %v2960_v5 = vmul.f32 -1.442695, %v1962_v23  ;;  %v2961_v37 = vmul.f32 -1.442695, %v1964_v39  ;;  %v6068_v39 = vld [vmem:[#allocation34_spill] sm:$0xff] }
 0x5f9   :  { %v1918_v42 = vpop.f32.mrf.mxu0  ;;  %v1959_v3 = vpop.f32.mrf.mxu1 }
 0x5fa   :  { %3332 = vpow2.f32 %v2960_v5 }
 0x5fb   :  { %3334 = vpow2.f32 %v2961_v37  ;;  %v6070_v37 = vld [vmem:[#allocation36_spill] sm:$0xff] }
 0x605   :  { %v3331_v43 = vpop.eup %3330 }
 0x606   :  { %v1968_v11 = vadd.f32 1.0, %v3331_v43 }
 0x607   :  { %v3333_v44 = vpop.eup %3332 }
 0x608   :  { %3336 = vrcp.f32 %v1968_v11  ;;  %v1974_v61 = vadd.f32 1.0, %v3333_v44  ;;  %v3335_v42 = vpop.eup %3334  ;;  %v6072_v11 = vld [vmem:[#allocation38_spill] sm:$0xff]  ;;  %v6073_v44 = vld [vmem:[#allocation39_spill] sm:$0xff] }
 0x609   :  { %3338 = vtanh.f32 %v1963_v63  ;;  %v1981_v9 = vadd.f32 1.0, %v3335_v42  ;;  %v6071_v63 = vld [vmem:[#allocation37_spill] sm:$0xff] }
 0x60a   :  { %3340 = vrcp.f32 %v1974_v61  ;;  %v6074_v61 = vld [vmem:[#allocation40_spill] sm:$0xff]  ;;  %v6075_v42 = vld [vmem:[#allocation41_spill] sm:$0xff] }
 0x60b   :  { %3342 = vrcp.f32 %v1981_v9  ;;  %v6078_v9 = vld [vmem:[#allocation46_spill] sm:$0xff] }
 0x615   :  { %v3337_v3 = vpop.eup %3336 }
 0x616   :  { %v3339_v40 = vpop.eup %3338 }
 0x617   :  { %v3341_v23 = vpop.eup %3340  ;;  %v1985_v58 = vmul.f32 %v3339_v40, %v3337_v3  ;;  %v6076_v3 = vld [vmem:[#allocation42_spill] sm:$0xff] }
 0x618   :  { %v1984_v30 = vmul.f32 %v3341_v23, %v4806_v33  ;;  %v3343_v14 = vpop.eup %3342  ;;  %v6077_v23 = vld [vmem:[#allocation44_spill] sm:$0xff] }
 0x61a   :  { %v4976_v36 = vadd.f32 %v1985_v58, %v1984_v30  ;;  %v6079_v30 = vld [vmem:[#allocation21_spill] sm:$0xff] }
 0x61c   :  { %3344 = vtanh.f32 %v4976_v36 }
 0x629   :  { %v3345_v43 = vpop.eup %3344 }
 0x62a   :  { %v1988_v49 = vmul.f32 %v3345_v43, %v3343_v14 }
 0x62c   :  { %v4979_v5 = vpack.c.bf16 %v1988_v49, %v1988_v49 }
 0x62e   :  { %2137 = vmatmul.mubr.bf16.vlgmr.msra.gmra.mxu0 %v4979_v5  ;;  %2178 = vmatmul.mubr.bf16.vlgmr.msra.gmra.mxu1 %v4979_v5 }
 0x62f   :  { %2216 = vmatpush1.bf16.msra.mxu0 %v4561_v12  ;;  %2257 = vmatpush1.bf16.msra.mxu1 %v4564_v18 }
 0x630   :  { %2217 = vmatprep.subr.bf16.mxu0 %v4567_v34  ;;  %2258 = vmatprep.subr.bf16.mxu1 %v4570_v29 }
 0x633   :  { %2218 = vmatpush1.bf16.msra.mxu0 %v4573_v32  ;;  %2259 = vmatpush1.bf16.msra.mxu1 %v6002_v4 }
 0x634   :  { %2219 = vmatprep.subr.bf16.mxu0 %v6003_v17  ;;  %2260 = vmatprep.subr.bf16.mxu1 %v6004_v0  ;;  %v6066_v0 = vld [vmem:[#allocation32_spill] sm:$0xff] }
 0x637   :  { %v2024_v33 = vpop.f32.mrf.mxu0  ;;  %v2065_v60 = vpop.f32.mrf.mxu1  ;;  %2220 = vmatpush1.bf16.msra.mxu0 %v6006_v38  ;;  %2261 = vmatpush1.bf16.msra.mxu1 %v4589_v8  ;;  %v6067_v8 = vld [vmem:[#allocation33_spill] sm:$0xff] }
 0x638   :  { %v2025_v12 = vadd.f32 %v2024_v33, %v6005_v7  ;;  %2221 = vmatprep.subr.bf16.mxu0 %v4593_v21  ;;  %2262 = vmatprep.subr.bf16.mxu1 %v4596_v10  ;;  %v6069_v10 = vld [vmem:[#allocation35_spill] sm:$0xff]  ;;  %v2066_v14 = vadd.f32 %v2065_v60, %v6079_v30  ;;  %v6086_v60 = vld [vmem:[#allocation64_spill] sm:$0xff] }
 0x639   :  { %v2026_v18 = vpop.f32.mrf.mxu0  ;;  %v2067_v34 = vpop.f32.mrf.mxu1  ;;  %v6080_v33 = vld [vmem:[#allocation47_spill] sm:$0xff] }
 0x63a   :  { %v2962_v29 = vmul.f32 -1.442695, %v2025_v12  ;;  %v2027_v32 = vadd.f32 %v2026_v18, %v6007_v35  ;;  %v6081_v12 = vld [vmem:[#allocation48_spill] sm:$0xff] }
 0x63b   :  { %v2028_v4 = vpop.f32.mrf.mxu0  ;;  %v2069_v17 = vpop.f32.mrf.mxu1  ;;  %2222 = vmatpush1.bf16.msra.mxu0 %v4599_v48  ;;  %2263 = vmatpush1.bf16.msra.mxu1 %v6066_v0  ;;  %v2068_v48 = vadd.f32 %v2067_v34, %v6013_v31  ;;  %v6082_v34 = vld [vmem:[#allocation49_spill] sm:$0xff]  ;;  %v6090_v0 = vld [vmem:[#allocation51_spill] sm:$0xff] }
 0x63c   :  { %3346 = vpow2.f32 %v2962_v29  ;;  %v2963_v38 = vmul.f32 -1.442695, %v2027_v32  ;;  %2223 = vmatprep.subr.bf16.mxu0 %v6067_v8  ;;  %2264 = vmatprep.subr.bf16.mxu1 %v6068_v39  ;;  %v6085_v29 = vld [vmem:[#allocation61_spill] sm:$0xff]  ;;  %v6088_v4 = vld [vmem:[#allocation66_spill] sm:$0xff]  ;;  %v6089_v17 = vld [vmem:[#allocation15_spill] sm:$0xff] }
 0x63d   :  { %v2029_v21 = vpop.f32.mrf.mxu0  ;;  %v2070_v51 = vpop.f32.mrf.mxu1  ;;  %v2964_v40 = vmul.f32 -1.442695, %v2068_v48  ;;  %v6087_v32 = vld [vmem:[#allocation65_spill] sm:$0xff]  ;;  %v6092_v39 = vld [vmem:[#allocation54_spill] sm:$0xff] }
 0x63e   :  { %3348 = vpow2.f32 %v2963_v38  ;;  %v6091_v8 = vld [vmem:[#allocation53_spill] sm:$0xff] }
 0x63f   :  { %2224 = vmatpush1.bf16.msra.mxu0 %v6069_v10  ;;  %2265 = vmatpush1.bf16.msra.mxu1 %v6070_v37  ;;  %3350 = vpow2.f32 %v2964_v40  ;;  %v6110_v40 = vld [vmem:[#allocation24_spill] sm:$0xff] }
 0x640   :  { %2225 = vmatprep.subr.bf16.mxu0 %v6071_v63  ;;  %2266 = vmatprep.subr.bf16.mxu1 %v6072_v11  ;;  %v6094_v11 = vld [vmem:[#allocation59_spill] sm:$0xff] }
 0x643   :  { %2226 = vmatpush1.bf16.msra.mxu0 %v6073_v44  ;;  %2267 = vmatpush1.bf16.msra.mxu1 %v6074_v61  ;;  %v6106_v61 = vld [vmem:[#allocation31_spill] sm:$0xff] }
 0x644   :  { %2227 = vmatprep.subr.bf16.mxu0 %v6075_v42  ;;  %2268 = vmatprep.subr.bf16.mxu1 %v6076_v3  ;;  %v6109_v42 = vld [vmem:[#allocation23_spill] sm:$0xff] }
 0x645   :  { %v3561_v3 = vld [vmem:[#allocation4 + $0x88] ss:$16 sps:$4 sm:$0xff]  }
 0x647   :  { %2228 = vmatpush1.bf16.msra.mxu0 %v6018_v6  ;;  %2269 = vmatpush1.bf16.msra.mxu1 %v6077_v23  ;;  %v6083_v6 = vld [vmem:[#allocation50_spill] sm:$0xff] }
 0x648   :  { %2229 = vmatprep.subr.bf16.mxu0 %v6021_v24  ;;  %2270 = vmatprep.subr.bf16.mxu1 %v6078_v9  ;;  %v6084_v24 = vld [vmem:[#allocation52_spill] sm:$0xff]  ;;  %v6111_v23 = vld [vmem:[#allocation14_spill] sm:$0xff]  ;;  %v3563_v9 = vld [vmem:[#allocation4 + $0x68] ss:$16 sps:$4 sm:$0xff]  }
 0x649   :  { %v3347_v58 = vpop.eup %3346 }
 0x64a   :  { %v2075_v43 = vadd.f32 1.0, %v3347_v58  ;;  %v3564_v58 = vld [vmem:[#allocation4 + $0x4c] ss:$16 sps:$4 sm:$0xff]  }
 0x64b   :  { %v3349_v49 = vpop.eup %3348  ;;  %2230 = vmatpush1.bf16.msra.mxu0 %v6080_v33  ;;  %2271 = vmatpush1.bf16.msra.mxu1 %v6081_v12  ;;  %v3566_v33 = vld [vmem:[#allocation4 + $0x2c] ss:$16 sps:$4 sm:$0xff]   ;;  %v6115_v12 = vld [vmem:[#allocation62_spill] sm:$0xff] }
 0x64c   :  { %3352 = vrcp.f32 %v2075_v43  ;;  %v2081_v18 = vadd.f32 1.0, %v3349_v49  ;;  %2231 = vmatprep.subr.bf16.mxu0 %v6082_v34  ;;  %2272 = vmatprep.subr.bf16.mxu1 %v6083_v6  ;;  %v3351_v38 = vpop.eup %3350  ;;  %v3565_v43 = vld [vmem:[#allocation4 + $0x48] ss:$16 sps:$4 sm:$0xff]   ;;  %v6114_v49 = vld [vmem:[#allocation58_spill] sm:$0xff]  ;;  %v3568_v6 = vld [vmem:[#allocation4 + $0xc] ss:$16 sps:$4 sm:$0xff]  }
 0x64d   :  { %3354 = vtanh.f32 %v2066_v14  ;;  %v2088_v37 = vadd.f32 1.0, %v3351_v38  ;;  %v6113_v14 = vld [vmem:[#allocation57_spill] sm:$0xff]  ;;  %v6116_v34 = vld [vmem:[#allocation67_spill] sm:$0xff] }
 0x64e   :  { %3356 = vrcp.f32 %v2081_v18  ;;  %v3567_v18 = vld [vmem:[#allocation4 + $0x28] ss:$16 sps:$4 sm:$0xff]  }
 0x64f   :  { %2232 = vmatpush2.bf16.msra.mxu0 %v6084_v24  ;;  %2273 = vmatpush2.bf16.msra.mxu1 %v6085_v29  ;;  %3358 = vrcp.f32 %v2088_v37  ;;  %v6117_v24 = vld [vmem:[#allocation74_spill] sm:$0xff]  ;;  %v3569_v29 = vld [vmem:[#allocation4 + $0x8] ss:$16 sps:$4 sm:$0xff]   ;;  %v6120_v37 = vld [vmem:[#allocation12_spill] sm:$0xff] }
 0x650   :  { %2233 = vmatprep.subr.bf16.mxu0 %v6086_v60  ;;  %2274 = vmatprep.subr.bf16.mxu1 %v6087_v32  ;;  %v5082_v60 = vld [vmem:[#allocation6 + $0xe4] ss:$16 sps:$4 sm:$0xff]   ;;  %v5085_v32 = vld [vmem:[#allocation6 + $0xec] ss:$16 sps:$4 sm:$0xff]  }
 0x653   :  { %2234 = vmatpush2.bf16.msra.mxu0 %v6088_v4  ;;  %2275 = vmatpush2.bf16.msra.mxu1 %v6089_v17  ;;  %v109_v4 = vpop.permute.xlu0 %108  ;;  %v6118_v17 = vld [vmem:[#allocation11_spill] sm:$0xff] }
 0x654   :  { %2235 = vmatprep.subr.bf16.mxu0 %v6033_v15  ;;  %2276 = vmatprep.subr.bf16.mxu1 %v6034_v53  ;;  %v162_v38 = vmul.f32 %v3917_v46, %v109_v4  ;;  %v5264_v46 = vld [vmem:[#allocation6 + $0x14c] ss:$16 sps:$4 sm:$0xff]  }
 0x657   :  { %2236 = vmatpush2.bf16.msra.mxu0 %v6035_v27  ;;  %2277 = vmatpush2.bf16.msra.mxu1 %v6090_v0  ;;  %v6093_v27 = vld [vmem:[#allocation55_spill] sm:$0xff]  ;;  %v161_v0 = vmul.f32 %v6118_v17, %v109_v4  ;;  %v5292_v17 = vld [vmem:[#allocation6 + $0x100] ss:$16 sps:$4 sm:$0xff]  }
 0x658   :  { %2237 = vmatprep.subr.bf16.mxu0 %v6091_v8  ;;  %2278 = vmatprep.subr.bf16.mxu1 %v6092_v39  ;;  %v6119_v8 = vld [vmem:[#allocation13_spill] sm:$0xff] }
 0x659   :  { %v3353_v21 = vpop.eup %3352  ;;  %v215_v39 = vadd.f32 %v6119_v8, %v161_v0  ;;  %v5131_v0 = vld [vmem:[#allocation6 + $0xa8] ss:$16 sps:$4 sm:$0xff]  }
 0x65a   :  { %v3355_v51 = vpop.eup %3354  ;;  %v5258_v8 = vld [vmem:[#allocation6 + $0x168] ss:$16 sps:$4 sm:$0xff]  }
 0x65b   :  { %v3357_v10 = vpop.eup %3356  ;;  %2238 = vmatpush2.bf16.msra.mxu0 %v4698_v13  ;;  %2279 = vmatpush2.bf16.msra.mxu1 %v4701_v16  ;;  %v2092_v15 = vmul.f32 %v3355_v51, %v3353_v21  ;;  %v6095_v16 = vld [vmem:[#allocation60_spill] sm:$0xff]  ;;  %v6097_v13 = vld [vmem:[#allocation70_spill] sm:$0xff] }
 0x65c   :  { %v2091_v53 = vmul.f32 %v3357_v10, %v4866_v56  ;;  %2239 = vmatprep.subr.bf16.mxu0 %v4706_v2  ;;  %2280 = vmatprep.subr.bf16.mxu1 %v6093_v27  ;;  %v6096_v2 = vld [vmem:[#allocation63_spill] sm:$0xff]  ;;  %v3359_v56 = vpop.eup %3358 }
 0x65e   :  { %v5036_v63 = vadd.f32 %v2092_v15, %v2091_v53  ;;  %v216_v15 = vadd.f32 %v6120_v37, %v162_v38  ;;  %v5255_v37 = vld [vmem:[#allocation6 + $0x160] ss:$16 sps:$4 sm:$0xff]  }
 0x65f   :  { %2240 = vmatpush2.bf16.msra.mxu0 %v6039_v59  ;;  %2281 = vmatpush2.bf16.msra.mxu1 %v6040_v45  ;;  %v6098_v59 = vld [vmem:[#allocation71_spill] sm:$0xff]  ;;  %v6099_v45 = vld [vmem:[#allocation72_spill] sm:$0xff] }
 0x660   :  { %2241 = vmatprep.subr.bf16.mxu0 %v6041_v47  ;;  %2282 = vmatprep.subr.bf16.mxu1 %v6094_v11  ;;  %3360 = vtanh.f32 %v5036_v63  ;;  %v6100_v47 = vld [vmem:[#allocation26_spill] sm:$0xff] }
 0x663   :  { %2242 = vmatpush2.bf16.msra.mxu0 %v6095_v16  ;;  %2283 = vmatpush2.bf16.msra.mxu1 %v6044_v1  ;;  %v6101_v1 = vld [vmem:[#allocation27_spill] sm:$0xff] }
 0x664   :  { %2243 = vmatprep.subr.bf16.mxu0 %v6096_v2  ;;  %2284 = vmatprep.subr.bf16.mxu1 %v6046_v41 }
 0x667   :  { %2244 = vmatpush2.bf16.msra.mxu0 %v6097_v13  ;;  %2285 = vmatpush2.bf16.msra.mxu1 %v4740_v28  ;;  %v6104_v28 = vmov 0  }
 0x668   :  { %2245 = vmatprep.subr.bf16.mxu0 %v6098_v59  ;;  %2286 = vmatprep.subr.bf16.mxu1 %v4746_v62  ;;  %v6105_v62 = vld [vmem:[#allocation30_spill] sm:$0xff] }
 0x66b   :  { %2246 = vmatpush2.bf16.msra.mxu0 %v4749_v26  ;;  %2287 = vmatpush2.bf16.msra.mxu1 %v6099_v45  ;;  %v6103_v26 = vld [vmem:[#allocation29_spill] sm:$0xff]  ;;  %v164_v45 = vmul.f32 %v3943_v20, %v109_v4 }
 0x66c   :  { %2329 = vmatprep.subr.bf16.mxu0 %v6100_v47  ;;  %2370 = vmatprep.subr.bf16.mxu1 %v6101_v1 }
 0x66d   :  { %v3361_v48 = vpop.eup %3360  ;;  %v218_v1 = vadd.f32 %v3951_v55, %v164_v45  ;;  %v5148_v45 = vld [vmem:[#allocation6 + $0x64] ss:$16 sps:$4 sm:$0xff]  }
 0x66e   :  { %v5055_v44 = vmul.f32 %v3361_v48, %v3359_v56  ;;  %v163_v48 = vmul.f32 %v3940_v19, %v109_v4  ;;  %v5128_v4 = vld [vmem:[#allocation6 + $0xa0] ss:$16 sps:$4 sm:$0xff]  }
 0x670   :  { %6102 = vst [vmem:[#allocation32_spill] sm:$0xff] %v5055_v44  ;;  %v2214_v41 = vpack.c.bf16 %v5055_v44, %v5055_v44 }
 0x672   :  { %2247 = vmatprep.mubr.bf16.mxu0 %v2214_v41  ;;  %2288 = vmatprep.mubr.bf16.mxu1 %v2214_v41 }
 0x673   :  { %2248 = vmatmul.mubr.bf16.vlgmr.msra.gmra.mxu0 %v4979_v5  ;;  %2289 = vmatmul.mubr.bf16.vlgmr.msra.gmra.mxu1 %v4979_v5  ;;  %v6107_v5 = vld [vmem:[#allocation43_spill] sm:$0xff] }
 0x674   :  { %2330 = vmatpush1.bf16.msra.mxu0 %v4895_v54  ;;  %2371 = vmatpush1.bf16.msra.mxu1 %v4898_v52  ;;  %v3559_v54 = vld [vmem:[#allocation4 + $0xa8] ss:$16 sps:$4 sm:$0xff]  }
 0x675   :  { %2331 = vmatprep.subr.bf16.mxu0 %v4901_v57  ;;  %2372 = vmatprep.subr.bf16.mxu1 %v6103_v26  ;;  %v6108_v52 = vld [vmem:[#allocation45_spill] sm:$0xff]  ;;  %v217_v26 = vadd.f32 %v3947_v50, %v163_v48 }
 0x676   :  { %2361 = vmatprep.mubr.bf16.mxu0 %v6104_v28  ;;  %2402 = vmatprep.mubr.bf16.mxu1 %v6104_v28  ;;  %v3560_v57 = vld [vmem:[#allocation4 + $0x8c] ss:$16 sps:$4 sm:$0xff]  }
 0x677   :  { %v5249_v50 = vld [vmem:[#allocation6 + $0x16c] ss:$16 sps:$4 sm:$0xff]  }
 0x678   :  { %2332 = vmatpush1.bf16.msra.mxu0 %v4909_v25  ;;  %2373 = vmatpush1.bf16.msra.mxu1 %v6105_v62  ;;  %v3562_v25 = vld [vmem:[#allocation4 + $0x6c] ss:$16 sps:$4 sm:$0xff]  }
 0x679   :  { %2333 = vmatprep.subr.bf16.mxu0 %v6106_v61  ;;  %2374 = vmatprep.subr.bf16.mxu1 %v4918_v22  ;;  %v6112_v22 = vld [vmem:[#allocation56_spill] sm:$0xff] }
 0x67c   :  { %2334 = vmatpush1.bf16.msra.mxu0 %v6107_v5  ;;  %2375 = vmatpush1.bf16.msra.mxu1 %v3559_v54 }
 0x67d   :  { %2335 = vmatprep.subr.bf16.mxu0 %v6108_v52  ;;  %2376 = vmatprep.subr.bf16.mxu1 %v3560_v57 }
 0x680   :  { %2336 = vmatpush1.bf16.msra.mxu0 %v6109_v42  ;;  %2377 = vmatpush1.bf16.msra.mxu1 %v3561_v3 }
 0x681   :  { %2337 = vmatprep.subr.bf16.mxu0 %v6110_v40  ;;  %2378 = vmatprep.subr.bf16.mxu1 %v3562_v25 }
 0x684   :  { %2338 = vmatpush1.bf16.msra.mxu0 %v6111_v23  ;;  %2379 = vmatpush1.bf16.msra.mxu1 %v3563_v9 }
 0x685   :  { %2339 = vmatprep.subr.bf16.mxu0 %v6112_v22  ;;  %2380 = vmatprep.subr.bf16.mxu1 %v3564_v58 }
 0x688   :  { %2340 = vmatpush1.bf16.msra.mxu0 %v6113_v14  ;;  %2381 = vmatpush1.bf16.msra.mxu1 %v3565_v43 }
 0x689   :  { %2341 = vmatprep.subr.bf16.mxu0 %v6114_v49  ;;  %2382 = vmatprep.subr.bf16.mxu1 %v3566_v33  ;;  %v5104_v33 = vld [vmem:[#allocation6 + $0xe0] ss:$16 sps:$4 sm:$0xff]  }
 0x68c   :  { %2342 = vmatpush1.bf16.msra.mxu0 %v6115_v12  ;;  %2383 = vmatpush1.bf16.msra.mxu1 %v3567_v18  ;;  %v5107_v12 = vld [vmem:[#allocation6 + $0xe8] ss:$16 sps:$4 sm:$0xff]   ;;  %v5113_v18 = vld [vmem:[#allocation6 + $0xcc] ss:$16 sps:$4 sm:$0xff]  }
 0x68d   :  { %2343 = vmatprep.subr.bf16.mxu0 %v6116_v34  ;;  %2384 = vmatprep.subr.bf16.mxu1 %v3568_v6  ;;  %v5116_v34 = vld [vmem:[#allocation6 + $0xc0] ss:$16 sps:$4 sm:$0xff]   ;;  %v5119_v6 = vld [vmem:[#allocation6 + $0xc8] ss:$16 sps:$4 sm:$0xff]  }
 0x690   :  { %2344 = vmatpush1.bf16.msra.mxu0 %v6117_v24  ;;  %2385 = vmatpush1.bf16.msra.mxu1 %v3569_v29  ;;  %v5122_v24 = vld [vmem:[#allocation6 + $0xa4] ss:$16 sps:$4 sm:$0xff]   ;;  %v5125_v29 = vld [vmem:[#allocation6 + $0xac] ss:$16 sps:$4 sm:$0xff]  }
 0x691   :  { %2440 = vmatprep.subr.bf16.mxu0 %v5082_v60  ;;  %2481 = vmatprep.subr.bf16.mxu1 %v5085_v32 }
 0x6ee   :  { %v2138_v21 = vpop.f32.mrf.mxu0  ;;  %v2179_v51 = vpop.f32.mrf.mxu1 }
 0x6ef   :  { %v2186_v10 = vadd.f32 %v2138_v21, %v215_v39  ;;  %v2188_v61 = vadd.f32 %v2179_v51, %v217_v26  ;;  %v5134_v21 = vld [vmem:[#allocation6 + $0x84] ss:$16 sps:$4 sm:$0xff]   ;;  %v5137_v51 = vld [vmem:[#allocation6 + $0x8c] ss:$16 sps:$4 sm:$0xff]   ;;  %v5157_v26 = vld [vmem:[#allocation6 + $0x68] ss:$16 sps:$4 sm:$0xff]  }
 0x6f0   :  { %v2140_v53 = vpop.f32.mrf.mxu0  ;;  %v2181_v27 = vpop.f32.mrf.mxu1 }
 0x6f1   :  { %v2965_v11 = vmul.f32 -1.442695, %v2186_v10  ;;  %v2187_v16 = vadd.f32 %v2140_v53, %v216_v15  ;;  %v2189_v41 = vadd.f32 %v2181_v27, %v218_v1 }
 0x6f2   :  { %v2142_v2 = vpop.f32.mrf.mxu0  ;;  %v2183_v13 = vpop.f32.mrf.mxu1 }
 0x6f3   :  { %3362 = vpow2.f32 %v2965_v11  ;;  %v2966_v59 = vmul.f32 -1.442695, %v2187_v16  ;;  %v2967_v28 = vmul.f32 -1.442695, %v2189_v41  ;;  %v5142_v16 = vld [vmem:[#allocation6 + $0x80] ss:$16 sps:$4 sm:$0xff]  }
 0x6f4   :  { %v2143_v56 = vpop.f32.mrf.mxu0  ;;  %v2184_v47 = vpop.f32.mrf.mxu1  ;;  %v5145_v2 = vld [vmem:[#allocation6 + $0x88] ss:$16 sps:$4 sm:$0xff]   ;;  %v5154_v41 = vld [vmem:[#allocation6 + $0x60] ss:$16 sps:$4 sm:$0xff]  }
 0x6f5   :  { %3364 = vpow2.f32 %v2966_v59  ;;  %v5151_v56 = vld [vmem:[#allocation6 + $0x6c] ss:$16 sps:$4 sm:$0xff]  }
 0x6f6   :  { %3366 = vpow2.f32 %v2967_v28  ;;  %v5160_v28 = vld [vmem:[#allocation6 + $0x44] ss:$16 sps:$4 sm:$0xff]  }
 0x700   :  { %v3363_v62 = vpop.eup %3362 }
 0x701   :  { %v2193_v5 = vadd.f32 1.0, %v3363_v62  ;;  %v5163_v62 = vld [vmem:[#allocation6 + $0x4c] ss:$16 sps:$4 sm:$0xff]  }
 0x702   :  { %v3365_v54 = vpop.eup %3364 }
 0x703   :  { %3368 = vrcp.f32 %v2193_v5  ;;  %v2199_v52 = vadd.f32 1.0, %v3365_v54  ;;  %v3367_v57 = vpop.eup %3366  ;;  %v5169_v5 = vld [vmem:[#allocation6 + $0x48] ss:$16 sps:$4 sm:$0xff]  }
 0x704   :  { %3370 = vtanh.f32 %v2188_v61  ;;  %v2206_v25 = vadd.f32 1.0, %v3367_v57  ;;  %v5166_v61 = vld [vmem:[#allocation6 + $0x40] ss:$16 sps:$4 sm:$0xff]   ;;  %v5176_v57 = vld [vmem:[#allocation6 + $0x2c] ss:$16 sps:$4 sm:$0xff]  }
 0x705   :  { %3372 = vrcp.f32 %v2199_v52  ;;  %v5173_v52 = vld [vmem:[#allocation6 + $0x24] ss:$16 sps:$4 sm:$0xff]  }
 0x706   :  { %3374 = vrcp.f32 %v2206_v25  ;;  %v5185_v25 = vld [vmem:[#allocation6 + $0x4] ss:$16 sps:$4 sm:$0xff]  }
 0x710   :  { %v3369_v42 = vpop.eup %3368 }
 0x711   :  { %v3371_v3 = vpop.eup %3370 }
 0x712   :  { %v3373_v40 = vpop.eup %3372  ;;  %v2210_v23 = vmul.f32 %v3371_v3, %v3369_v42  ;;  %v5179_v42 = vld [vmem:[#allocation6 + $0x20] ss:$16 sps:$4 sm:$0xff]   ;;  %v5182_v3 = vld [vmem:[#allocation6 + $0x28] ss:$16 sps:$4 sm:$0xff]  }
 0x713   :  { %v2209_v9 = vmul.f32 %v3373_v40, %v4976_v36  ;;  %v3375_v58 = vpop.eup %3374  ;;  %v5110_v36 = vld [vmem:[#allocation6 + $0xc4] ss:$16 sps:$4 sm:$0xff]  }
 0x715   :  { %v5097_v22 = vadd.f32 %v2210_v23, %v2209_v9  ;;  %v5188_v23 = vld [vmem:[#allocation6 + $0xc] ss:$16 sps:$4 sm:$0xff]  }
 0x717   :  { %6121 = vst [vmem:[#allocation33_spill] sm:$0xff] %v5097_v22  ;;  %3376 = vtanh.f32 %v5097_v22  ;;  %v5246_v22 = vld [vmem:[#allocation6 + $0x164] ss:$16 sps:$4 sm:$0xff]  }
 0x724   :  { %v3377_v14 = vpop.eup %3376 }
 0x725   :  { %v2213_v43 = vmul.f32 %v3377_v14, %v3375_v58 }
 0x727   :  { %v5100_v49 = vpack.c.bf16 %v2213_v43, %v2213_v43  ;;  %v5192_v43 = vld [vmem:[#allocation6] ss:$16 sps:$4 sm:$0xff]  }
 0x729   :  { %2362 = vmatmul.mubr.bf16.vlgmr.msra.gmra.mxu0 %v5100_v49  ;;  %2403 = vmatmul.mubr.bf16.vlgmr.msra.gmra.mxu1 %v5100_v49 }
 0x72a   :  { %2441 = vmatpush1.bf16.msra.mxu0 %v5104_v33  ;;  %2482 = vmatpush1.bf16.msra.mxu1 %v5107_v12 }
 0x72b   :  { %2442 = vmatprep.subr.bf16.mxu0 %v5110_v36  ;;  %2483 = vmatprep.subr.bf16.mxu1 %v5113_v18 }
 0x72e   :  { %2443 = vmatpush1.bf16.msra.mxu0 %v5116_v34  ;;  %2484 = vmatpush1.bf16.msra.mxu1 %v5119_v6 }
 0x72f   :  { %2444 = vmatprep.subr.bf16.mxu0 %v5122_v24  ;;  %2485 = vmatprep.subr.bf16.mxu1 %v5125_v29 }
 0x732   :  { %2445 = vmatpush1.bf16.msra.mxu0 %v5128_v4  ;;  %2486 = vmatpush1.bf16.msra.mxu1 %v5131_v0 }
 0x733   :  { %v2249_v38 = vpop.f32.mrf.mxu0  ;;  %v2290_v39 = vpop.f32.mrf.mxu1  ;;  %2446 = vmatprep.subr.bf16.mxu0 %v5134_v21  ;;  %2487 = vmatprep.subr.bf16.mxu1 %v5137_v51 }
 0x734   :  { %v2250_v10 = vadd.f32 %v2249_v38, %v6005_v7  ;;  %v2291_v58 = vadd.f32 %v2290_v39, %v6079_v30  ;;  %v5195_v38 = vld [vmem:[#allocation6 + $0x8] ss:$16 sps:$4 sm:$0xff]   ;;  %v5240_v30 = vld [vmem:[#allocation6 + $0x180] ss:$16 sps:$4 sm:$0xff]  }
 0x735   :  { %v2251_v15 = vpop.f32.mrf.mxu0  ;;  %v2292_v53 = vpop.f32.mrf.mxu1 }
 0x736   :  { %v2968_v27 = vmul.f32 -1.442695, %v2250_v10  ;;  %v2252_v11 = vadd.f32 %v2251_v15, %v6007_v35  ;;  %2447 = vmatpush1.bf16.msra.mxu0 %v5142_v16  ;;  %2488 = vmatpush1.bf16.msra.mxu1 %v5145_v2  ;;  %v2293_v54 = vadd.f32 %v2292_v53, %v6013_v31  ;;  %v5198_v15 = vld [vmem:[#allocation6 + $0x1e4] ss:$16 sps:$4 sm:$0xff]   ;;  %v5201_v53 = vld [vmem:[#allocation6 + $0x1ec] ss:$16 sps:$4 sm:$0xff]  }
 0x737   :  { %v2253_v13 = vpop.f32.mrf.mxu0  ;;  %v2294_v59 = vpop.f32.mrf.mxu1  ;;  %2448 = vmatprep.subr.bf16.mxu0 %v5148_v45  ;;  %2489 = vmatprep.subr.bf16.mxu1 %v5151_v56  ;;  %v5243_v31 = vld [vmem:[#allocation6 + $0x188] ss:$16 sps:$4 sm:$0xff]  }
 0x738   :  { %3378 = vpow2.f32 %v2968_v27  ;;  %v2969_v47 = vmul.f32 -1.442695, %v2252_v11  ;;  %v2970_v40 = vmul.f32 -1.442695, %v2293_v54  ;;  %v5204_v27 = vld [vmem:[#allocation6 + $0x1e0] ss:$16 sps:$4 sm:$0xff]  }
 0x739   :  { %v2254_v1 = vpop.f32.mrf.mxu0  ;;  %v2295_v48 = vpop.f32.mrf.mxu1  ;;  %v5207_v11 = vld [vmem:[#allocation6 + $0x1e8] ss:$16 sps:$4 sm:$0xff]   ;;  %v5210_v13 = vld [vmem:[#allocation6 + $0x1c4] ss:$16 sps:$4 sm:$0xff]   ;;  %v5213_v59 = vld [vmem:[#allocation6 + $0x1cc] ss:$16 sps:$4 sm:$0xff]  }
 0x73a   :  { %3380 = vpow2.f32 %v2969_v47  ;;  %2449 = vmatpush1.bf16.msra.mxu0 %v5154_v41  ;;  %2490 = vmatpush1.bf16.msra.mxu1 %v5157_v26  ;;  %v5216_v47 = vld [vmem:[#allocation6 + $0x1c0] ss:$16 sps:$4 sm:$0xff]   ;;  %v5219_v1 = vld [vmem:[#allocation6 + $0x1c8] ss:$16 sps:$4 sm:$0xff]   ;;  %v5222_v48 = vld [vmem:[#allocation6 + $0x1a4] ss:$16 sps:$4 sm:$0xff]  }
 0x73b   :  { %2450 = vmatprep.subr.bf16.mxu0 %v5160_v28  ;;  %2491 = vmatprep.subr.bf16.mxu1 %v5163_v62  ;;  %3382 = vpow2.f32 %v2970_v40  ;;  %v5225_v54 = vld [vmem:[#allocation6 + $0x1ac] ss:$16 sps:$4 sm:$0xff]   ;;  %v5228_v40 = vld [vmem:[#allocation6 + $0x1a0] ss:$16 sps:$4 sm:$0xff]  }
 0x73e   :  { %2451 = vmatpush1.bf16.msra.mxu0 %v5166_v61  ;;  %2492 = vmatpush1.bf16.msra.mxu1 %v5169_v5 }
 0x73f   :  { %2452 = vmatprep.subr.bf16.mxu0 %v5173_v52  ;;  %2493 = vmatprep.subr.bf16.mxu1 %v5176_v57 }
 0x742   :  { %2453 = vmatpush1.bf16.msra.mxu0 %v5179_v42  ;;  %2494 = vmatpush1.bf16.msra.mxu1 %v5182_v3 }
 0x743   :  { %2454 = vmatprep.subr.bf16.mxu0 %v5185_v25  ;;  %2495 = vmatprep.subr.bf16.mxu1 %v5188_v23 }
 0x745   :  { %v3379_v9 = vpop.eup %3378 }
 0x746   :  { %v2300_v14 = vadd.f32 1.0, %v3379_v9  ;;  %2455 = vmatpush1.bf16.msra.mxu0 %v5192_v43  ;;  %2496 = vmatpush1.bf16.msra.mxu1 %v5195_v38  ;;  %v5231_v9 = vld [vmem:[#allocation6 + $0x1a8] ss:$16 sps:$4 sm:$0xff]  }
 0x747   :  { %v3381_v10 = vpop.eup %3380  ;;  %2456 = vmatprep.subr.bf16.mxu0 %v5198_v15  ;;  %2497 = vmatprep.subr.bf16.mxu1 %v5201_v53 }
 0x748   :  { %3384 = vrcp.f32 %v2300_v14  ;;  %v2306_v39 = vadd.f32 1.0, %v3381_v10  ;;  %v5237_v14 = vld [vmem:[#allocation6 + $0x18c] ss:$16 sps:$4 sm:$0xff]   ;;  %v3383_v10 = vpop.eup %3382 }
 0x749   :  { %3386 = vtanh.f32 %v2291_v58  ;;  %v5234_v58 = vld [vmem:[#allocation6 + $0x184] ss:$16 sps:$4 sm:$0xff]   ;;  %v2313_v7 = vadd.f32 1.0, %v3383_v10 }
 0x74a   :  { %3388 = vrcp.f32 %v2306_v39  ;;  %2457 = vmatpush2.bf16.msra.mxu0 %v5204_v27  ;;  %2498 = vmatpush2.bf16.msra.mxu1 %v5207_v11  ;;  %v5261_v10 = vld [vmem:[#allocation6 + $0x144] ss:$16 sps:$4 sm:$0xff]  }
 0x74b   :  { %2458 = vmatprep.subr.bf16.mxu0 %v5210_v13  ;;  %2499 = vmatprep.subr.bf16.mxu1 %v5213_v59  ;;  %3390 = vrcp.f32 %v2313_v7  ;;  %v5277_v7 = vld [vmem:[#allocation6 + $0x12c] ss:$16 sps:$4 sm:$0xff]  }
 0x74c   :  { %6124 = vst [vmem:[#allocation36_spill] sm:$0xff] %v5277_v7 }
 0x74e   :  { %2459 = vmatpush2.bf16.msra.mxu0 %v5216_v47  ;;  %2500 = vmatpush2.bf16.msra.mxu1 %v5219_v1 }
 0x74f   :  { %2460 = vmatprep.subr.bf16.mxu0 %v5222_v48  ;;  %2501 = vmatprep.subr.bf16.mxu1 %v5225_v54 }
 0x752   :  { %2461 = vmatpush2.bf16.msra.mxu0 %v5228_v40  ;;  %2502 = vmatpush2.bf16.msra.mxu1 %v5231_v9 }
 0x753   :  { %2462 = vmatprep.subr.bf16.mxu0 %v5234_v58  ;;  %2503 = vmatprep.subr.bf16.mxu1 %v5237_v14 }
 0x755   :  { %v3385_v39 = vpop.eup %3384 }
 0x756   :  { %v3387_v44 = vpop.eup %3386  ;;  %2463 = vmatpush2.bf16.msra.mxu0 %v5240_v30  ;;  %2504 = vmatpush2.bf16.msra.mxu1 %v5243_v31 }
 0x757   :  { %v3389_v35 = vpop.eup %3388  ;;  %2464 = vmatprep.subr.bf16.mxu0 %v5246_v22  ;;  %2505 = vmatprep.subr.bf16.mxu1 %v5249_v50  ;;  %v2317_v19 = vmul.f32 %v3387_v44, %v3385_v39  ;;  %v5283_v44 = vld [vmem:[#allocation6 + $0x128] ss:$16 sps:$4 sm:$0xff]   ;;  %v5286_v39 = vld [vmem:[#allocation6 + $0x104] ss:$16 sps:$4 sm:$0xff]  }
 0x758   :  { %v2316_v55 = vmul.f32 %v3389_v35, %v5036_v63  ;;  %v5274_v35 = vld [vmem:[#allocation6 + $0x124] ss:$16 sps:$4 sm:$0xff]   ;;  %v5280_v63 = vld [vmem:[#allocation6 + $0x120] ss:$16 sps:$4 sm:$0xff]   ;;  %6126 = vst [vmem:[#allocation38_spill] sm:$0xff] %v5283_v44  ;;  %6127 = vst [vmem:[#allocation39_spill] sm:$0xff] %v5286_v39 }
 0x759   :  { %6123 = vst [vmem:[#allocation35_spill] sm:$0xff] %v5274_v35  ;;  %6125 = vst [vmem:[#allocation37_spill] sm:$0xff] %v5280_v63 }
 0x75a   :  { %v5253_v20 = vadd.f32 %v2317_v19, %v2316_v55  ;;  %2465 = vmatpush2.bf16.msra.mxu0 %v5255_v37  ;;  %2506 = vmatpush2.bf16.msra.mxu1 %v5258_v8  ;;  %v5268_v19 = vld [vmem:[#allocation6 + $0x140] ss:$16 sps:$4 sm:$0xff]   ;;  %v5271_v55 = vld [vmem:[#allocation6 + $0x148] ss:$16 sps:$4 sm:$0xff]  }
 0x75b   :  { %2466 = vmatprep.subr.bf16.mxu0 %v5261_v10  ;;  %2507 = vmatprep.subr.bf16.mxu1 %v5264_v46 }
 0x75c   :  { %6122 = vst [vmem:[#allocation34_spill] sm:$0xff] %v5253_v20  ;;  %3392 = vtanh.f32 %v5253_v20  ;;  %v5289_v20 = vld [vmem:[#allocation6 + $0x10c] ss:$16 sps:$4 sm:$0xff]  }
 0x75e   :  { %2467 = vmatpush2.bf16.msra.mxu0 %v5268_v19  ;;  %2508 = vmatpush2.bf16.msra.mxu1 %v5271_v55 }
 0x75f   :  { %2468 = vmatprep.subr.bf16.mxu0 %v5274_v35  ;;  %2509 = vmatprep.subr.bf16.mxu1 %v5277_v7  ;;  %v5295_v7 = vld [vmem:[#allocation6 + $0x108] ss:$16 sps:$4 sm:$0xff]  }
 0x762   :  { %2469 = vmatpush2.bf16.msra.mxu0 %v5280_v63  ;;  %2510 = vmatpush2.bf16.msra.mxu1 %v5283_v44  ;;  %v3391_v44 = vpop.eup %3390 }
 0x763   :  { %2470 = vmatprep.subr.bf16.mxu0 %v5286_v39  ;;  %2511 = vmatprep.subr.bf16.mxu1 %v5289_v20 }
 0x766   :  { %2471 = vmatpush2.bf16.msra.mxu0 %v5292_v17  ;;  %2512 = vmatpush2.bf16.msra.mxu1 %v5295_v7 }
 0x767   :  { %2550 = vmatprep.subr.bf16.mxu0 %v5082_v60  ;;  %2591 = vmatprep.subr.bf16.mxu1 %v5085_v32  ;;  %v6128_v60 = vld [vmem:[#allocation35_spill] sm:$0xff]  ;;  %v6131_v32 = vld [vmem:[#allocation38_spill] sm:$0xff] }
 0x769   :  { %v3393_v63 = vpop.eup %3392 }
 0x76a   :  { %v5300_v35 = vmul.f32 %v3393_v63, %v3391_v44  ;;  %v6143_v44 = vld [vmem:[#allocation69_spill] sm:$0xff] }
 0x76c   :  { %v2439_v39 = vpack.c.bf16 %v5300_v35, %v5300_v35 }
 0x76e   :  { %2472 = vmatprep.mubr.bf16.mxu0 %v2439_v39  ;;  %2513 = vmatprep.mubr.bf16.mxu1 %v2439_v39 }
 0x76f   :  { %2473 = vmatmul.mubr.bf16.vlgmr.msra.gmra.mxu0 %v5100_v49  ;;  %2514 = vmatmul.mubr.bf16.vlgmr.msra.gmra.mxu1 %v5100_v49 }
 0x770   :  { %2551 = vmatpush1.bf16.msra.mxu0 %v5104_v33  ;;  %2592 = vmatpush1.bf16.msra.mxu1 %v5107_v12  ;;  %v6135_v33 = vld [vmem:[#allocation13_spill] sm:$0xff] }
 0x771   :  { %2552 = vmatprep.subr.bf16.mxu0 %v5110_v36  ;;  %2593 = vmatprep.subr.bf16.mxu1 %v5113_v18 }
 0x774   :  { %2553 = vmatpush1.bf16.msra.mxu0 %v5116_v34  ;;  %2594 = vmatpush1.bf16.msra.mxu1 %v5119_v6  ;;  %v5374_v34 = vld [vmem:[%s5474_s6 + $0x38] sm:$0xff]  }
 0x775   :  { %2554 = vmatprep.subr.bf16.mxu0 %v5122_v24  ;;  %2595 = vmatprep.subr.bf16.mxu1 %v5125_v29 }
 0x778   :  { %2555 = vmatpush1.bf16.msra.mxu0 %v5128_v4  ;;  %2596 = vmatpush1.bf16.msra.mxu1 %v5131_v0 }
 0x779   :  { %2556 = vmatprep.subr.bf16.mxu0 %v5134_v21  ;;  %2597 = vmatprep.subr.bf16.mxu1 %v5137_v51 }
 0x77c   :  { %2557 = vmatpush1.bf16.msra.mxu0 %v5142_v16  ;;  %2598 = vmatpush1.bf16.msra.mxu1 %v5145_v2  ;;  %v6137_v2 = vld [vmem:[#allocation17_spill] sm:$0xff] }
 0x77d   :  { %2558 = vmatprep.subr.bf16.mxu0 %v5148_v45  ;;  %2599 = vmatprep.subr.bf16.mxu1 %v5151_v56 }
 0x780   :  { %2559 = vmatpush1.bf16.msra.mxu0 %v5154_v41  ;;  %2600 = vmatpush1.bf16.msra.mxu1 %v5157_v26  ;;  %v6138_v26 = vld [vmem:[#allocation19_spill] sm:$0xff] }
 0x781   :  { %2560 = vmatprep.subr.bf16.mxu0 %v5160_v28  ;;  %2601 = vmatprep.subr.bf16.mxu1 %v5163_v62  ;;  %v6139_v62 = vld [vmem:[#allocation16_spill] sm:$0xff] }
 0x784   :  { %2561 = vmatpush1.bf16.msra.mxu0 %v5166_v61  ;;  %2602 = vmatpush1.bf16.msra.mxu1 %v5169_v5 }
 0x785   :  { %2562 = vmatprep.subr.bf16.mxu0 %v5173_v52  ;;  %2603 = vmatprep.subr.bf16.mxu1 %v5176_v57  ;;  %v6140_v52 = vld [vmem:[#allocation18_spill] sm:$0xff] }
 0x788   :  { %2563 = vmatpush1.bf16.msra.mxu0 %v5179_v42  ;;  %2604 = vmatpush1.bf16.msra.mxu1 %v5182_v3 }
 0x789   :  { %2564 = vmatprep.subr.bf16.mxu0 %v5185_v25  ;;  %2605 = vmatprep.subr.bf16.mxu1 %v5188_v23 }
 0x78c   :  { %2565 = vmatpush1.bf16.msra.mxu0 %v5192_v43  ;;  %2606 = vmatpush1.bf16.msra.mxu1 %v5195_v38 }
 0x78d   :  { %2566 = vmatprep.subr.bf16.mxu0 %v5198_v15  ;;  %2607 = vmatprep.subr.bf16.mxu1 %v5201_v53 }
 0x790   :  { %2567 = vmatpush2.bf16.msra.mxu0 %v5204_v27  ;;  %2608 = vmatpush2.bf16.msra.mxu1 %v5207_v11 }
 0x791   :  { %2568 = vmatprep.subr.bf16.mxu0 %v5210_v13  ;;  %2609 = vmatprep.subr.bf16.mxu1 %v5213_v59 }
 0x794   :  { %2569 = vmatpush2.bf16.msra.mxu0 %v5216_v47  ;;  %2610 = vmatpush2.bf16.msra.mxu1 %v5219_v1  ;;  %v6141_v47 = vld [vmem:[#allocation33_spill] sm:$0xff] }
 0x795   :  { %2570 = vmatprep.subr.bf16.mxu0 %v5222_v48  ;;  %2611 = vmatprep.subr.bf16.mxu1 %v5225_v54 }
 0x798   :  { %2571 = vmatpush2.bf16.msra.mxu0 %v5228_v40  ;;  %2612 = vmatpush2.bf16.msra.mxu1 %v5231_v9 }
 0x799   :  { %2572 = vmatprep.subr.bf16.mxu0 %v5234_v58  ;;  %2613 = vmatprep.subr.bf16.mxu1 %v5237_v14 }
 0x79c   :  { %2573 = vmatpush2.bf16.msra.mxu0 %v5240_v30  ;;  %2614 = vmatpush2.bf16.msra.mxu1 %v5243_v31  ;;  %v6129_v30 = vld [vmem:[#allocation36_spill] sm:$0xff]  ;;  %v6130_v31 = vld [vmem:[#allocation37_spill] sm:$0xff] }
 0x79d   :  { %2574 = vmatprep.subr.bf16.mxu0 %v5246_v22  ;;  %2615 = vmatprep.subr.bf16.mxu1 %v5249_v50  ;;  %v6132_v50 = vld [vmem:[#allocation39_spill] sm:$0xff]  ;;  %v6134_v22 = vld [vmem:[#allocation10_spill] sm:$0xff] }
 0x7a0   :  { %2575 = vmatpush2.bf16.msra.mxu0 %v5255_v37  ;;  %2616 = vmatpush2.bf16.msra.mxu1 %v5258_v8  ;;  %v6133_v8 = vld [vmem:[#allocation11_spill] sm:$0xff] }
 0x7a1   :  { %2576 = vmatprep.subr.bf16.mxu0 %v5261_v10  ;;  %2617 = vmatprep.subr.bf16.mxu1 %v5264_v46  ;;  %v114_v46 = vpop.permute.xlu1 %113  ;;  %v6142_v10 = vld [vmem:[#allocation68_spill] sm:$0xff] }
 0x7a2   :  { %v165_v37 = vmul.f32 %v6133_v8, %v114_v46  ;;  %v166_v49 = vmul.f32 %v6134_v22, %v114_v46  ;;  %v168_v45 = vmul.f32 %v6137_v2, %v114_v46  ;;  %v167_v61 = vmul.f32 %v6139_v62, %v114_v46  ;;  %v6144_v46 = vld [vmem:[#allocation20_spill] sm:$0xff]  ;;  %v6148_v62 = vld [vmem:[#allocation25_spill] sm:$0xff] }
 0x7a4   :  { %2577 = vmatpush2.bf16.msra.mxu0 %v5268_v19  ;;  %2618 = vmatpush2.bf16.msra.mxu1 %v5271_v55  ;;  %v219_v12 = vadd.f32 %v6135_v33, %v165_v37  ;;  %v222_v28 = vadd.f32 %v6138_v26, %v168_v45  ;;  %v221_v57 = vadd.f32 %v6140_v52, %v167_v61  ;;  %v3179_v26 = vld [vmem:[%s5474_s6 + $0x30] sm:$0xff]   ;;  %v3181_v52 = vld [vmem:[%s5474_s6 + $0x20] sm:$0xff]  }
 0x7a5   :  { %2578 = vmatprep.subr.bf16.mxu0 %v6128_v60  ;;  %2619 = vmatprep.subr.bf16.mxu1 %v6129_v30 }
 0x7a8   :  { %2579 = vmatpush2.bf16.msra.mxu0 %v6130_v31  ;;  %2620 = vmatpush2.bf16.msra.mxu1 %v6131_v32 }
 0x7a9   :  { %2580 = vmatprep.subr.bf16.mxu0 %v6132_v50  ;;  %2621 = vmatprep.subr.bf16.mxu1 %v5289_v20  ;;  %v6136_v20 = vld [vmem:[#allocation12_spill] sm:$0xff] }
 0x7aa   :  { %v220_v24 = vadd.f32 %v6136_v20, %v166_v49  ;;  %v6145_v49 = vld [vmem:[#allocation21_spill] sm:$0xff] }
 0x7ac   :  { %2581 = vmatpush2.bf16.msra.mxu0 %v5292_v17  ;;  %2622 = vmatpush2.bf16.msra.mxu1 %v5295_v7 }
 0x7ad   :  { %3003 = vmatprep.subr.bf16.mxu0 %v5374_v34 }
 0x7e9   :  { %v2363_v36 = vpop.f32.mrf.mxu0  ;;  %v2404_v18 = vpop.f32.mrf.mxu1 }
 0x7ea   :  { %v2411_v6 = vadd.f32 %v2363_v36, %v219_v12  ;;  %v2413_v25 = vadd.f32 %v2404_v18, %v221_v57  ;;  %v3182_v57 = vld [vmem:[%s5474_s6 + $0x18] sm:$0xff]  }
 0x7eb   :  { %v2365_v17 = vpop.f32.mrf.mxu0  ;;  %v2406_v29 = vpop.f32.mrf.mxu1 }
 0x7ec   :  { %v2971_v4 = vmul.f32 -1.442695, %v2411_v6  ;;  %v2412_v0 = vadd.f32 %v2365_v17, %v220_v24  ;;  %v2414_v5 = vadd.f32 %v2406_v29, %v222_v28  ;;  %v6147_v28 = vld [vmem:[#allocation22_spill] sm:$0xff] }
 0x7ed   :  { %v2367_v21 = vpop.f32.mrf.mxu0  ;;  %v2408_v51 = vpop.f32.mrf.mxu1  ;;  %v2672_v61 = vpack.c.bf16 %v6148_v62, %v6147_v28 }
 0x7ee   :  { %3394 = vpow2.f32 %v2971_v4  ;;  %v2972_v16 = vmul.f32 -1.442695, %v2412_v0  ;;  %v2973_v42 = vmul.f32 -1.442695, %v2414_v5  ;;  %v6146_v0 = vld [vmem:[#allocation34_spill] sm:$0xff]  ;;  %v3180_v5 = vld [vmem:[%s5474_s6 + $0x28] sm:$0xff]  }
 0x7ef   :  { %v2368_v56 = vpop.f32.mrf.mxu0  ;;  %v2409_v41 = vpop.f32.mrf.mxu1 }
 0x7f0   :  { %3396 = vpow2.f32 %v2972_v16 }
 0x7f1   :  { %3398 = vpow2.f32 %v2973_v42  ;;  %v3184_v42 = vld [vmem:[%s5474_s6 + $0x8] sm:$0xff]  }
 0x7fb   :  { %v3395_v3 = vpop.eup %3394 }
 0x7fc   :  { %v2418_v23 = vadd.f32 1.0, %v3395_v3  ;;  %v3185_v3 = vld [vmem:[%s5474_s6] sm:$0xff]  }
 0x7fd   :  { %v3397_v43 = vpop.eup %3396 }
 0x7fe   :  { %3400 = vrcp.f32 %v2418_v23  ;;  %v2424_v38 = vadd.f32 1.0, %v3397_v43  ;;  %v3399_v15 = vpop.eup %3398  ;;  %v6150_v23 = vld [vmem:[#allocation28_spill] sm:$0xff] }
 0x7ff   :  { %3402 = vtanh.f32 %v2413_v25  ;;  %v2431_v13 = vadd.f32 1.0, %v3399_v15  ;;  %v6149_v25 = vld [vmem:[#allocation73_spill] sm:$0xff] }
 0x800   :  { %3404 = vrcp.f32 %v2424_v38  ;;  %v2673_v43 = vpack.c.bf16 %v6150_v23, %v6149_v25  ;;  %v6151_v38 = vld [vmem:[#allocation32_spill] sm:$0xff] }
 0x801   :  { %3406 = vrcp.f32 %v2431_v13  ;;  %v2674_v15 = vpack.c.bf16 %v5300_v35, %v6151_v38 }
 0x80b   :  { %v3401_v53 = vpop.eup %3400 }
 0x80c   :  { %v3403_v27 = vpop.eup %3402 }
 0x80d   :  { %v3405_v11 = vpop.eup %3404  ;;  %v2435_v59 = vmul.f32 %v3403_v27, %v3401_v53 }
 0x80e   :  { %v2434_v1 = vmul.f32 %v3405_v11, %v6141_v47  ;;  %v3407_v54 = vpop.eup %3406 }
 0x810   :  { %v2436_v48 = vadd.f32 %v2435_v59, %v2434_v1 }
 0x812   :  { %2659 = vst [vmem:[%s5480_s12] sm:$0xff] %v2436_v48  ;;  %3408 = vtanh.f32 %v2436_v48 }
 0x81f   :  { %v3409_v40 = vpop.eup %3408 }
 0x820   :  { %v2438_v9 = vmul.f32 %v3409_v40, %v3407_v54 }
 0x822   :  { %2658 = vst [vmem:[%s5479_s11] sm:$0xff] %v2438_v9  ;;  %v2548_v41 = vpack.c.bf16 %v2438_v9, %v2438_v9 }
 0x82f   :  { %v2474_v58 = vpop.f32.mrf.mxu0  ;;  %v2515_v14 = vpop.f32.mrf.mxu1 }
 0x830   :  { %v2475_v19 = vadd.f32 %v2474_v58, %v6142_v10  ;;  %v2516_v33 = vadd.f32 %v2515_v14, %v6145_v49 }
 0x831   :  { %v2476_v55 = vpop.f32.mrf.mxu0  ;;  %v2517_v7 = vpop.f32.mrf.mxu1 }
 0x832   :  { %v2974_v63 = vmul.f32 -1.442695, %v2475_v19  ;;  %v2477_v39 = vadd.f32 %v2476_v55, %v6143_v44  ;;  %v2518_v8 = vadd.f32 %v2517_v7, %v6144_v46 }
 0x833   :  { %v2478_v60 = vpop.f32.mrf.mxu0  ;;  %v2519_v30 = vpop.f32.mrf.mxu1 }
 0x834   :  { %3410 = vpow2.f32 %v2974_v63  ;;  %v2975_v31 = vmul.f32 -1.442695, %v2477_v39  ;;  %v2976_v37 = vmul.f32 -1.442695, %v2518_v8 }
 0x835   :  { %v2479_v32 = vpop.f32.mrf.mxu0  ;;  %v2520_v50 = vpop.f32.mrf.mxu1 }
 0x836   :  { %3412 = vpow2.f32 %v2975_v31 }
 0x837   :  { %3414 = vpow2.f32 %v2976_v37 }
 0x841   :  { %v3411_v22 = vpop.eup %3410 }
 0x842   :  { %v2525_v12 = vadd.f32 1.0, %v3411_v22 }
 0x843   :  { %v3413_v36 = vpop.eup %3412 }
 0x844   :  { %3416 = vrcp.f32 %v2525_v12  ;;  %v2531_v18 = vadd.f32 1.0, %v3413_v36  ;;  %v3415_v6 = vpop.eup %3414 }
 0x845   :  { %3418 = vtanh.f32 %v2516_v33  ;;  %v2538_v29 = vadd.f32 1.0, %v3415_v6 }
 0x846   :  { %3420 = vrcp.f32 %v2531_v18 }
 0x847   :  { %3422 = vrcp.f32 %v2538_v29 }
 0x851   :  { %v3417_v20 = vpop.eup %3416 }
 0x852   :  { %v3419_v24 = vpop.eup %3418 }
 0x853   :  { %v3421_v17 = vpop.eup %3420  ;;  %v2542_v4 = vmul.f32 %v3419_v24, %v3417_v20 }
 0x854   :  { %v2541_v21 = vmul.f32 %v3421_v17, %v6146_v0  ;;  %v3423_v16 = vpop.eup %3422 }
 0x856   :  { %v5394_v51 = vadd.f32 %v2542_v4, %v2541_v21 }
 0x858   :  { %3424 = vtanh.f32 %v5394_v51 }
 0x865   :  { %v3425_v2 = vpop.eup %3424 }
 0x866   :  { %v5397_v45 = vmul.f32 %v3425_v2, %v3423_v16 }
 0x868   :  { %v2549_v56 = vpack.c.bf16 %v5397_v45, %v5397_v45 }
 0x86a   :  { %2582 = vmatprep.mubr.bf16.mxu0 %v2549_v56  ;;  %2623 = vmatprep.mubr.bf16.mxu1 %v2549_v56 }
 0x86b   :  { %2583 = vmatmul.mubr.bf16.vlgmr.msra.gmra.mxu0 %v2548_v41  ;;  %2624 = vmatmul.mubr.bf16.vlgmr.msra.gmra.mxu1 %v2548_v41 }
 0x86c   :  { %3004 = vmatpush3.bf16.msra.mxu0 %v5374_v34  ;;  %3019 = vmatprep.mubr.bf16.mxu0 %v2672_v61  ;;  %v3183_v34 = vld [vmem:[%s5474_s6 + $0x10] sm:$0xff]  }
 0x86d   :  { %3005 = vmatprep.subr.bf16.mxu0 %v3179_v26 }
 0x870   :  { %3006 = vmatpush3.bf16.msra.mxu0 %v3179_v26 }
 0x871   :  { %3007 = vmatprep.subr.bf16.mxu0 %v3180_v5 }
 0x874   :  { %3008 = vmatpush3.bf16.msra.mxu0 %v3180_v5 }
 0x875   :  { %3009 = vmatprep.subr.bf16.mxu0 %v3181_v52 }
 0x878   :  { %3010 = vmatpush3.bf16.msra.mxu0 %v3181_v52 }
 0x879   :  { %3011 = vmatprep.subr.bf16.mxu0 %v3182_v57 }
 0x87c   :  { %3012 = vmatpush3.bf16.msra.mxu0 %v3182_v57 }
 0x87d   :  { %3013 = vmatprep.subr.bf16.mxu0 %v3183_v34 }
 0x880   :  { %3014 = vmatpush3.bf16.msra.mxu0 %v3183_v34 }
 0x881   :  { %3015 = vmatprep.subr.bf16.mxu0 %v3184_v42 }
 0x884   :  { %3016 = vmatpush3.bf16.msra.mxu0 %v3184_v42 }
 0x885   :  { %3017 = vmatprep.subr.bf16.mxu0 %v3185_v3 }
 0x888   :  { %3018 = vmatpush3.bf16.msra.mxu0 %v3185_v3 }
 0x88b   :  { %3020 = vmatmul.mubr.bf16.vlgmr.msra.gmra.mxu0 %v2673_v43 }
 0x88c   :  { %3023 = vmatprep.mubr.bf16.mxu0 %v2674_v15 }
 0x92b   :  { %v2584_v53 = vpop.f32.mrf.mxu0  ;;  %v2625_v27 = vpop.f32.mrf.mxu1 }
 0x92c   :  { %v2585_v11 = vadd.f32 %v2584_v53, %v6142_v10  ;;  %v2626_v55 = vadd.f32 %v2625_v27, %v6145_v49 }
 0x92d   :  { %v2586_v13 = vpop.f32.mrf.mxu0  ;;  %v2627_v59 = vpop.f32.mrf.mxu1 }
 0x92e   :  { %v2977_v47 = vmul.f32 -1.442695, %v2585_v11  ;;  %v2587_v1 = vadd.f32 %v2586_v13, %v6143_v44  ;;  %v2628_v35 = vadd.f32 %v2627_v59, %v6144_v46  ;;  %v2982_v44 = vld [vmem:[%s5475_s7] ss:$0 sm:$0xff] }
 0x92f   :  { %v2588_v48 = vpop.f32.mrf.mxu0  ;;  %v2629_v54 = vpop.f32.mrf.mxu1 }
 0x930   :  { %3426 = vpow2.f32 %v2977_v47  ;;  %v2978_v40 = vmul.f32 -1.442695, %v2587_v1  ;;  %v2979_v14 = vmul.f32 -1.442695, %v2628_v35 }
 0x931   :  { %v2589_v9 = vpop.f32.mrf.mxu0  ;;  %v2630_v58 = vpop.f32.mrf.mxu1 }
 0x932   :  { %3428 = vpow2.f32 %v2978_v40 }
 0x933   :  { %3430 = vpow2.f32 %v2979_v14 }
 0x93d   :  { %v3427_v19 = vpop.eup %3426 }
 0x93e   :  { %v2635_v7 = vadd.f32 1.0, %v3427_v19 }
 0x93f   :  { %v3429_v10 = vpop.eup %3428 }
 0x940   :  { %3432 = vrcp.f32 %v2635_v7  ;;  %v2641_v63 = vadd.f32 1.0, %v3429_v10  ;;  %v3431_v60 = vpop.eup %3430 }
 0x941   :  { %3434 = vtanh.f32 %v2626_v55  ;;  %v2648_v37 = vadd.f32 1.0, %v3431_v60 }
 0x942   :  { %3436 = vrcp.f32 %v2641_v63 }
 0x943   :  { %3438 = vrcp.f32 %v2648_v37 }
 0x94b   :  { %v3021_v39 = vpop.f32.mrf.mxu0 }
 0x94c   :  { %v2790_v30 = vadd.f32 %v3021_v39, %v2982_v44 }
 0x94d   :  { %v3433_v31 = vpop.eup %3432  ;;  %v2781_v32 = vpop.f32.mrf.mxu0 }
 0x94e   :  { %v3435_v50 = vpop.eup %3434  ;;  %2814 = vst [vmem:[%s5478_s10 + $0x10] sm:$0xff] %v2790_v30  ;;  %v2782_v46 = vadd.f32 %v2982_v44, %v2781_v32 }
 0x94f   :  { %v3437_v8 = vpop.eup %3436  ;;  %v3022_v22 = vpop.f32.mrf.mxu0  ;;  %v2652_v49 = vmul.f32 %v3435_v50, %v3433_v31 }
 0x950   :  { %v2651_v33 = vmul.f32 %v3437_v8, %v5394_v51  ;;  %2812 = vst [vmem:[%s5478_s10] sm:$0xff] %v2782_v46  ;;  %v2793_v12 = vadd.f32 %v3022_v22, %v2982_v44  ;;  %v3439_v20 = vpop.eup %3438 }
 0x951   :  { %v2784_v36 = vpop.f32.mrf.mxu0 }
 0x952   :  { %v2653_v18 = vadd.f32 %v2652_v49, %v2651_v33  ;;  %2815 = vst [vmem:[%s5478_s10 + $0x18] sm:$0xff] %v2793_v12  ;;  %v2785_v6 = vadd.f32 %v2982_v44, %v2784_v36 }
 0x954   :  { %2981 = vst [vmem:[%s5480_s12 + $0x8] sm:$0xff] %v2653_v18  ;;  %2813 = vst [vmem:[%s5478_s10 + $0x8] sm:$0xff] %v2785_v6  ;;  %3440 = vtanh.f32 %v2653_v18 }
 0x961   :  { %v3441_v24 = vpop.eup %3440 }
 0x962   :  { %v2655_v17 = vmul.f32 %v3441_v24, %v3439_v20 }
 0x964   :  { %2980 = vst [vmem:[%s5479_s11 + $0x8] sm:$0xff] %v2655_v17  ;;  %v2675_v29 = vpack.c.bf16 %v2655_v17, %v5397_v45 }
 0x966   :  { %3024 = vmatmul.mubr.bf16.gmra.mxu0 %v2675_v29 }
 0xa26   :  { %v3025_v4 = vpop.f32.mrf.mxu0 }
 0xa27   :  { %v2806_v0 = vadd.f32 %v3025_v4, %v2982_v44 }
 0xa28   :  { %v2797_v21 = vpop.f32.mrf.mxu0 }
 0xa29   :  { %2818 = vst [vmem:[%s5478_s10 + $0x30] sm:$0xff] %v2806_v0  ;;  %v2798_v51 = vadd.f32 %v2982_v44, %v2797_v21 }
 0xa2a   :  { %v3026_v16 = vpop.f32.mrf.mxu0 }
 0xa2b   :  { %2816 = vst [vmem:[%s5478_s10 + $0x20] sm:$0xff] %v2798_v51  ;;  %v2809_v2 = vadd.f32 %v3026_v16, %v2982_v44 }
 0xa2c   :  { %v2800_v56 = vpop.f32.mrf.mxu0 }
 0xa2d   :  { %2819 = vst [vmem:[%s5478_s10 + $0x38] sm:$0xff] %v2809_v2  ;;  %v2801_v45 = vadd.f32 %v2982_v44, %v2800_v56 }
 0xa2f   :  { %2817 = vst [vmem:[%s5478_s10 + $0x28] sm:$0xff] %v2801_v45 }
 0xa30   :  { %2832 = vsyncpa [#allocation5], 1 }
 0xa31   :  { %2833 = vsyncpa [#allocation7], 1 }

</bundles_post_ra>
